<compile_context>
chip_gen: v7x
topology: tpu7x:2x2x1
jax: 0.10.0
libtpu: 0.0.40
codegen_flags: <defaults>
</compile_context>

<pallas_src>
import functools

import jax
import jax.numpy as jnp
from jax import lax
from jax.experimental import pallas as pl
from jax.experimental.pallas import tpu as pltpu


def _cdiv(a, b):
    return (a + b - 1) // b


def _round_up(a, b):
    return _cdiv(a, b) * b


def _moments_kernel(t_ref, x_ref, y_ref,
                    sx_ref, sy_ref, sxx_ref, syy_ref, sxy_ref,
                    *, tk, ks, needs_mask):
    """Five-moment accumulation kernel.

    grid = (time_splits [parallel], row_tiles [parallel], time_tiles [arbitrary]).
    Outputs are per-lane partial sums of shape (TR, 128); the cross-lane reduce
    and the SI-SDR finalize happen in the JAX wrapper.
    """
    s = pl.program_id(0)
    k = pl.program_id(2)

    @pl.when(k == 0)
    def _init():
        sx_ref[...] = jnp.zeros_like(sx_ref)
        sy_ref[...] = jnp.zeros_like(sy_ref)
        sxx_ref[...] = jnp.zeros_like(sxx_ref)
        syy_ref[...] = jnp.zeros_like(syy_ref)
        sxy_ref[...] = jnp.zeros_like(sxy_ref)

    tr = sx_ref.shape[0]

    if needs_mask:
        t_true = t_ref[0]                       # true time length (SMEM scalar)
        base = (s * ks + k) * tk                # logical global column of tile start
        col = lax.broadcasted_iota(jnp.int32, (tr, 128), 1)

    # VALU-only accumulation over 128-lane chunks of the (TR, TK) tile.
    for c in range(tk // 128):
        xc = x_ref[:, c * 128:(c + 1) * 128].astype(jnp.float32)
        yc = y_ref[:, c * 128:(c + 1) * 128].astype(jnp.float32)
        if needs_mask:
            valid = (base + c * 128 + col) < t_true
            xc = jnp.where(valid, xc, 0.0)
            yc = jnp.where(valid, yc, 0.0)
        sx_ref[...] += xc
        sy_ref[...] += yc
        sxx_ref[...] += xc * xc
        syy_ref[...] += yc * yc
        sxy_ref[...] += xc * yc


def sisdr_loss(input, target, zero_mean=True, eps=1e-8, reduction="mean",
               tile_rows=None, tile_time=None):
    """Negative SI-SDR, matching auraloss.SISDRLoss semantics.

    input, target: (batch, nchs, ..., time); SI-SDR is computed over the last axis.
    """
    assert input.shape == target.shape
    lead_shape = input.shape[:-1]
    T = int(input.shape[-1])
    R = 1
    for d in lead_shape:
        R *= int(d)
    R = max(R, 1)

    x2d = input.reshape(R, T)
    y2d = target.reshape(R, T)

    # ---- tile-size selection -------------------------------------------------
    if tile_time is None:
        TK = min(4096, _round_up(T, 128))
    else:
        TK = min(_round_up(int(tile_time), 128), _round_up(T, 128))
    KT = _cdiv(T, TK)                           # number of real time tiles

    if R < 8:
        TR = R                                  # full-extent row block (< one sublane tile)
    elif tile_rows is not None:
        TR = min(_round_up(int(tile_rows), 8), _round_up(R, 8))
    else:
        # Enough row tiles to feed both v7x TensorCores, with tight row padding.
        n_tiles = max(2, _cdiv(R, 256)) if R >= 16 else 1
        TR = min(_round_up(_cdiv(R, n_tiles), 8), _round_up(R, 8))
    n_row_tiles = _cdiv(R, TR)

    # Time-split across cores only when the row axis cannot (tiny R, long T).
    S = 2 if (n_row_tiles < 2 and KT >= 2) else 1
    KS = _cdiv(KT, S)                           # time tiles handled per split
    needs_mask = (S * KS * TK) != T             # ragged tail and/or overhanging blocks

    kernel = functools.partial(_moments_kernel, tk=TK, ks=KS, needs_mask=needs_mask)

    if S * KS == KT:
        in_map = lambda s, i, k, t: (i, s * KS + k)
    else:  # clamp overhanging blocks; the in-kernel mask zeroes their contribution
        in_map = lambda s, i, k, t: (i, jnp.minimum(s * KS + k, KT - 1))
    out_map = lambda s, i, k, t: (s, i, 0)

    t_scalar = jnp.array([T], dtype=jnp.int32)
    mom_shape = jax.ShapeDtypeStruct((S, R, 128), jnp.float32)

    moments = pl.pallas_call(
        kernel,
        out_shape=(mom_shape,) * 5,
        grid_spec=pltpu.PrefetchScalarGridSpec(
            num_scalar_prefetch=1,
            grid=(S, n_row_tiles, KS),
            in_specs=[
                pl.BlockSpec((TR, TK), in_map),
                pl.BlockSpec((TR, TK), in_map),
            ],
            out_specs=tuple(pl.BlockSpec((None, TR, 128), out_map) for _ in range(5)),
        ),
        compiler_params=pltpu.CompilerParams(
            dimension_semantics=("parallel", "parallel", "arbitrary"),
            vmem_limit_bytes=48 * 1024 * 1024,
        ),
    )(t_scalar, x2d, y2d)

    # ---- tiny per-row finalize in plain XLA (R elements) ----------------------
    sx, sy, sxx, syy, sxy = [m.sum(axis=(0, 2)) for m in moments]   # each (R,)

    inv_t = 1.0 / float(T)
    if zero_mean:
        xx_c = sxx - sx * sx * inv_t
        yy_c = syy - sy * sy * inv_t
        xy_c = sxy - sx * sy * inv_t
    else:
        xx_c, yy_c, xy_c = sxx, syy, sxy

    alpha = xy_c / (yy_c + eps)
    t_energy = alpha * alpha * yy_c                      # sum((alpha*y_c)^2)
    r_energy = xx_c - 2.0 * alpha * xy_c + t_energy      # sum((x_c - alpha*y_c)^2)
    r_energy = jnp.maximum(r_energy, 0.0)                # guard cancellation
    losses = 10.0 * jnp.log10(t_energy / (r_energy + eps) + eps)

    if reduction == "mean":
        return -jnp.mean(losses)
    elif reduction == "sum":
        return -jnp.sum(losses)
    return -losses.reshape(lead_shape)


def _reference(input, target, zero_mean=True, eps=1e-8, reduction="mean"):
    x = input.astype(jnp.float32)
    y = target.astype(jnp.float32)
    if zero_mean:
        x = x - jnp.mean(x, axis=-1, keepdims=True)
        y = y - jnp.mean(y, axis=-1, keepdims=True)
    alpha = jnp.sum(x * y, -1) / (jnp.sum(y * y, -1) + eps)
    t = y * alpha[..., None]
    res = x - t
    losses = 10.0 * jnp.log10(jnp.sum(t * t, -1) / (jnp.sum(res * res, -1) + eps) + eps)
    if reduction == "mean":
        losses = losses.mean()
    elif reduction == "sum":
        losses = losses.sum()
    return -losses


if __name__ == "__main__":
    key = jax.random.PRNGKey(0)
    k1, k2, k3, k4 = jax.random.split(key, 4)

    # Test 1: correlated signals, default (auto) tiling, mean reduction.
    # R=8 -> single row tile, single time tile, masked ragged tail (2500 < 2560).
    batch, nchs, time_len = 2, 4, 2500
    tgt = jax.random.normal(k1, (batch, nchs, time_len), dtype=jnp.float32)
    est = tgt + 0.3 * jax.random.normal(k2, (batch, nchs, time_len), dtype=jnp.float32)

    out = jax.block_until_ready(sisdr_loss(est, tgt, reduction="mean"))
    ref = _reference(est, tgt, reduction="mean")
    assert jnp.allclose(out, ref, rtol=1e-4, atol=1e-3), (out, ref)

    # Test 2: independent signals, forced small tiles -> multiple row and time
    # tiles with a masked tail tile, reduction='none'.
    batch2, nchs2 = 4, 4
    x2 = jax.random.normal(k3, (batch2, nchs2, time_len), dtype=jnp.float32)
    y2 = jax.random.normal(k4, (batch2, nchs2, time_len), dtype=jnp.float32)

    out2 = jax.block_until_ready(
        sisdr_loss(x2, y2, reduction="none", tile_rows=8, tile_time=256)
    )
    ref2 = _reference(x2, y2, reduction="none")
    assert out2.shape == (batch2, nchs2), out2.shape
    assert jnp.allclose(out2, ref2, rtol=1e-4, atol=1e-3), (out2, ref2)

    # Test 3: tiny-R path with the size-2 parallel time-split axis (engages both
    # v7x TensorCores), including a clamped + fully-masked overhang block.
    out3 = jax.block_until_ready(
        sisdr_loss(est, tgt, reduction="sum", tile_time=1024)
    )
    ref3 = _reference(est, tgt, reduction="sum")
    assert jnp.allclose(out3, ref3, rtol=1e-4, atol=1e-3), (out3, ref3)

    print("KERNEL_OK")
</pallas_src>

<mosaic_0001>
module attributes {stable_mosaic.version = 11 : i64} {
  func.func @_moments_kernel(%arg0: i32, %arg1: i32, %arg2: i32, %arg3: memref<1xi32, #tpu.memory_space<smem>>, %arg4: memref<8x2560xf32, #tpu.memory_space<vmem>>, %arg5: memref<8x2560xf32, #tpu.memory_space<vmem>>, %arg6: memref<1x8x128xf32, #tpu.memory_space<vmem>>, %arg7: memref<1x8x128xf32, #tpu.memory_space<vmem>>, %arg8: memref<1x8x128xf32, #tpu.memory_space<vmem>>, %arg9: memref<1x8x128xf32, #tpu.memory_space<vmem>>, %arg10: memref<1x8x128xf32, #tpu.memory_space<vmem>>) attributes {dimension_semantics = [#tpu.dimension_semantics<parallel>, #tpu.dimension_semantics<parallel>, #tpu.dimension_semantics<arbitrary>], iteration_bounds = array<i64: 1, 1, 1>, scalar_prefetch = 1 : i64, scratch_operands = 0 : i64, tpu.core_type = #tpu.core_type<tc>, window_params = [{transform_indices = @transform_0, window_bounds = array<i64: 8, 2560>}, {transform_indices = @transform_1, window_bounds = array<i64: 8, 2560>}, {transform_indices = @transform_2, window_bounds = array<i64: 1, 8, 128>}, {transform_indices = @transform_3, window_bounds = array<i64: 1, 8, 128>}, {transform_indices = @transform_4, window_bounds = array<i64: 1, 8, 128>}, {transform_indices = @transform_5, window_bounds = array<i64: 1, 8, 128>}, {transform_indices = @transform_6, window_bounds = array<i64: 1, 8, 128>}]} {
    %c0_i32 = arith.constant 0 : i32
    %0 = arith.cmpi eq, %arg2, %c0_i32 : i32
    %1 = arith.extui %0 : i1 to i32
    %c0_i32_0 = arith.constant 0 : i32
    %2 = arith.cmpi ne, %1, %c0_i32_0 : i32
    scf.if %2 {
      %cst_702 = arith.constant 0.000000e+00 : f32
      %888 = vector.broadcast %cst_702 : f32 to vector<8x128xf32>
      %c0_703 = arith.constant 0 : index
      %c0_704 = arith.constant 0 : index
      %c0_705 = arith.constant 0 : index
      %889 = vector.load %arg6[%c0_703, %c0_704, %c0_705] : memref<1x8x128xf32, #tpu.memory_space<vmem>>, vector<1x8x128xf32>
      %890 = vector.shape_cast %889 : vector<1x8x128xf32> to vector<8x128xf32>
      %891 = vector.shape_cast %888 : vector<8x128xf32> to vector<1x8x128xf32>
      tpu.vector_store %arg6[%c0_703, %c0_704, %c0_705], %891 {strides = array<i32>} : memref<1x8x128xf32, #tpu.memory_space<vmem>>, vector<1x8x128xf32>,
      %cst_706 = arith.constant 0.000000e+00 : f32
      %892 = vector.broadcast %cst_706 : f32 to vector<8x128xf32>
      %c0_707 = arith.constant 0 : index
      %c0_708 = arith.constant 0 : index
      %c0_709 = arith.constant 0 : index
      %893 = vector.load %arg7[%c0_707, %c0_708, %c0_709] : memref<1x8x128xf32, #tpu.memory_space<vmem>>, vector<1x8x128xf32>
      %894 = vector.shape_cast %893 : vector<1x8x128xf32> to vector<8x128xf32>
      %895 = vector.shape_cast %892 : vector<8x128xf32> to vector<1x8x128xf32>
      tpu.vector_store %arg7[%c0_707, %c0_708, %c0_709], %895 {strides = array<i32>} : memref<1x8x128xf32, #tpu.memory_space<vmem>>, vector<1x8x128xf32>,
      %cst_710 = arith.constant 0.000000e+00 : f32
      %896 = vector.broadcast %cst_710 : f32 to vector<8x128xf32>
      %c0_711 = arith.constant 0 : index
      %c0_712 = arith.constant 0 : index
      %c0_713 = arith.constant 0 : index
      %897 = vector.load %arg8[%c0_711, %c0_712, %c0_713] : memref<1x8x128xf32, #tpu.memory_space<vmem>>, vector<1x8x128xf32>
      %898 = vector.shape_cast %897 : vector<1x8x128xf32> to vector<8x128xf32>
      %899 = vector.shape_cast %896 : vector<8x128xf32> to vector<1x8x128xf32>
      tpu.vector_store %arg8[%c0_711, %c0_712, %c0_713], %899 {strides = array<i32>} : memref<1x8x128xf32, #tpu.memory_space<vmem>>, vector<1x8x128xf32>,
      %cst_714 = arith.constant 0.000000e+00 : f32
      %900 = vector.broadcast %cst_714 : f32 to vector<8x128xf32>
      %c0_715 = arith.constant 0 : index
      %c0_716 = arith.constant 0 : index
      %c0_717 = arith.constant 0 : index
      %901 = vector.load %arg9[%c0_715, %c0_716, %c0_717] : memref<1x8x128xf32, #tpu.memory_space<vmem>>, vector<1x8x128xf32>
      %902 = vector.shape_cast %901 : vector<1x8x128xf32> to vector<8x128xf32>
      %903 = vector.shape_cast %900 : vector<8x128xf32> to vector<1x8x128xf32>
      tpu.vector_store %arg9[%c0_715, %c0_716, %c0_717], %903 {strides = array<i32>} : memref<1x8x128xf32, #tpu.memory_space<vmem>>, vector<1x8x128xf32>,
      %cst_718 = arith.constant 0.000000e+00 : f32
      %904 = vector.broadcast %cst_718 : f32 to vector<8x128xf32>
      %c0_719 = arith.constant 0 : index
      %c0_720 = arith.constant 0 : index
      %c0_721 = arith.constant 0 : index
      %905 = vector.load %arg10[%c0_719, %c0_720, %c0_721] : memref<1x8x128xf32, #tpu.memory_space<vmem>>, vector<1x8x128xf32>
      %906 = vector.shape_cast %905 : vector<1x8x128xf32> to vector<8x128xf32>
      %907 = vector.shape_cast %904 : vector<8x128xf32> to vector<1x8x128xf32>
      tpu.vector_store %arg10[%c0_719, %c0_720, %c0_721], %907 {strides = array<i32>} : memref<1x8x128xf32, #tpu.memory_space<vmem>>, vector<1x8x128xf32>,
    } else {
    }
    %c0 = arith.constant 0 : index
    %3 = memref.load %arg3[%c0] : memref<1xi32, #tpu.memory_space<smem>>
    %c1_i32 = arith.constant 1 : i32
    %4 = arith.muli %arg0, %c1_i32 : i32
    %5 = arith.addi %4, %arg2 : i32
    %c2560_i32 = arith.constant 2560 : i32
    %6 = arith.muli %5, %c2560_i32 : i32
    %7 = tpu.iota {dimensions = array<i32: 1>} : vector<8x128xi32>
    %c0_1 = arith.constant 0 : index
    %c0_2 = arith.constant 0 : index
    %8 = vector.load %arg4[%c0_1, %c0_2] : memref<8x2560xf32, #tpu.memory_space<vmem>>, vector<8x128xf32>
    %c0_3 = arith.constant 0 : index
    %c0_4 = arith.constant 0 : index
    %9 = vector.load %arg5[%c0_3, %c0_4] : memref<8x2560xf32, #tpu.memory_space<vmem>>, vector<8x128xf32>
    %c0_i32_5 = arith.constant 0 : i32
    %10 = arith.addi %6, %c0_i32_5 : i32
    %11 = vector.broadcast %10 : i32 to vector<8x128xi32>
    %12 = arith.addi %11, %7 : vector<8x128xi32>
    %13 = vector.broadcast %3 : i32 to vector<8x128xi32>
    %14 = arith.cmpi slt, %12, %13 : vector<8x128xi32>
    %cst = arith.constant 0.000000e+00 : f32
    %15 = vector.broadcast %cst : f32 to vector<8x128xf32>
    %16 = arith.select %14, %8, %15 : vector<8x128xi1>, vector<8x128xf32>
    %cst_6 = arith.constant 0.000000e+00 : f32
    %17 = vector.broadcast %cst_6 : f32 to vector<8x128xf32>
    %18 = arith.select %14, %9, %17 : vector<8x128xi1>, vector<8x128xf32>
    %c0_7 = arith.constant 0 : index
    %c0_8 = arith.constant 0 : index
    %c0_9 = arith.constant 0 : index
    %19 = vector.load %arg6[%c0_7, %c0_8, %c0_9] : memref<1x8x128xf32, #tpu.memory_space<vmem>>, vector<1x8x128xf32>
    %20 = vector.shape_cast %19 : vector<1x8x128xf32> to vector<8x128xf32>
    %21 = arith.addf %20, %16 : vector<8x128xf32>
    %c0_10 = arith.constant 0 : index
    %c0_11 = arith.constant 0 : index
    %c0_12 = arith.constant 0 : index
    %22 = vector.load %arg6[%c0_10, %c0_11, %c0_12] : memref<1x8x128xf32, #tpu.memory_space<vmem>>, vector<1x8x128xf32>
    %23 = vector.shape_cast %22 : vector<1x8x128xf32> to vector<8x128xf32>
    %24 = vector.shape_cast %21 : vector<8x128xf32> to vector<1x8x128xf32>
    tpu.vector_store %arg6[%c0_10, %c0_11, %c0_12], %24 {strides = array<i32>} : memref<1x8x128xf32, #tpu.memory_space<vmem>>, vector<1x8x128xf32>,
    %c0_13 = arith.constant 0 : index
    %c0_14 = arith.constant 0 : index
    %c0_15 = arith.constant 0 : index
    %25 = vector.load %arg7[%c0_13, %c0_14, %c0_15] : memref<1x8x128xf32, #tpu.memory_space<vmem>>, vector<1x8x128xf32>
    %26 = vector.shape_cast %25 : vector<1x8x128xf32> to vector<8x128xf32>
    %27 = arith.addf %26, %18 : vector<8x128xf32>
    %c0_16 = arith.constant 0 : index
    %c0_17 = arith.constant 0 : index
    %c0_18 = arith.constant 0 : index
    %28 = vector.load %arg7[%c0_16, %c0_17, %c0_18] : memref<1x8x128xf32, #tpu.memory_space<vmem>>, vector<1x8x128xf32>
    %29 = vector.shape_cast %28 : vector<1x8x128xf32> to vector<8x128xf32>
    %30 = vector.shape_cast %27 : vector<8x128xf32> to vector<1x8x128xf32>
    tpu.vector_store %arg7[%c0_16, %c0_17, %c0_18], %30 {strides = array<i32>} : memref<1x8x128xf32, #tpu.memory_space<vmem>>, vector<1x8x128xf32>,
    %c0_19 = arith.constant 0 : index
    %c0_20 = arith.constant 0 : index
    %c0_21 = arith.constant 0 : index
    %31 = vector.load %arg8[%c0_19, %c0_20, %c0_21] : memref<1x8x128xf32, #tpu.memory_space<vmem>>, vector<1x8x128xf32>
    %32 = vector.shape_cast %31 : vector<1x8x128xf32> to vector<8x128xf32>
    %33 = arith.mulf %16, %16 : vector<8x128xf32>
    %34 = arith.addf %32, %33 : vector<8x128xf32>
    %c0_22 = arith.constant 0 : index
    %c0_23 = arith.constant 0 : index
    %c0_24 = arith.constant 0 : index
    %35 = vector.load %arg8[%c0_22, %c0_23, %c0_24] : memref<1x8x128xf32, #tpu.memory_space<vmem>>, vector<1x8x128xf32>
    %36 = vector.shape_cast %35 : vector<1x8x128xf32> to vector<8x128xf32>
    %37 = vector.shape_cast %34 : vector<8x128xf32> to vector<1x8x128xf32>
    tpu.vector_store %arg8[%c0_22, %c0_23, %c0_24], %37 {strides = array<i32>} : memref<1x8x128xf32, #tpu.memory_space<vmem>>, vector<1x8x128xf32>,
    %c0_25 = arith.constant 0 : index
    %c0_26 = arith.constant 0 : index
    %c0_27 = arith.constant 0 : index
    %38 = vector.load %arg9[%c0_25, %c0_26, %c0_27] : memref<1x8x128xf32, #tpu.memory_space<vmem>>, vector<1x8x128xf32>
    %39 = vector.shape_cast %38 : vector<1x8x128xf32> to vector<8x128xf32>
    %40 = arith.mulf %18, %18 : vector<8x128xf32>
    %41 = arith.addf %39, %40 : vector<8x128xf32>
    %c0_28 = arith.constant 0 : index
    %c0_29 = arith.constant 0 : index
    %c0_30 = arith.constant 0 : index
    %42 = vector.load %arg9[%c0_28, %c0_29, %c0_30] : memref<1x8x128xf32, #tpu.memory_space<vmem>>, vector<1x8x128xf32>
    %43 = vector.shape_cast %42 : vector<1x8x128xf32> to vector<8x128xf32>
    %44 = vector.shape_cast %41 : vector<8x128xf32> to vector<1x8x128xf32>
    tpu.vector_store %arg9[%c0_28, %c0_29, %c0_30], %44 {strides = array<i32>} : memref<1x8x128xf32, #tpu.memory_space<vmem>>, vector<1x8x128xf32>,
    %c0_31 = arith.constant 0 : index
    %c0_32 = arith.constant 0 : index
    %c0_33 = arith.constant 0 : index
    %45 = vector.load %arg10[%c0_31, %c0_32, %c0_33] : memref<1x8x128xf32, #tpu.memory_space<vmem>>, vector<1x8x128xf32>
    %46 = vector.shape_cast %45 : vector<1x8x128xf32> to vector<8x128xf32>
    %47 = arith.mulf %16, %18 : vector<8x128xf32>
    %48 = arith.addf %46, %47 : vector<8x128xf32>
    %c0_34 = arith.constant 0 : index
    %c0_35 = arith.constant 0 : index
    %c0_36 = arith.constant 0 : index
    %49 = vector.load %arg10[%c0_34, %c0_35, %c0_36] : memref<1x8x128xf32, #tpu.memory_space<vmem>>, vector<1x8x128xf32>
    %50 = vector.shape_cast %49 : vector<1x8x128xf32> to vector<8x128xf32>
    %51 = vector.shape_cast %48 : vector<8x128xf32> to vector<1x8x128xf32>
    tpu.vector_store %arg10[%c0_34, %c0_35, %c0_36], %51 {strides = array<i32>} : memref<1x8x128xf32, #tpu.memory_space<vmem>>, vector<1x8x128xf32>,
    %c0_37 = arith.constant 0 : index
    %c128 = arith.constant 128 : index
    %52 = vector.load %arg4[%c0_37, %c128] : memref<8x2560xf32, #tpu.memory_space<vmem>>, vector<8x128xf32>
    %c0_38 = arith.constant 0 : index
    %c128_39 = arith.constant 128 : index
    %53 = vector.load %arg5[%c0_38, %c128_39] : memref<8x2560xf32, #tpu.memory_space<vmem>>, vector<8x128xf32>
    %c128_i32 = arith.constant 128 : i32
    %54 = arith.addi %6, %c128_i32 : i32
    %55 = vector.broadcast %54 : i32 to vector<8x128xi32>
    %56 = arith.addi %55, %7 : vector<8x128xi32>
    %57 = vector.broadcast %3 : i32 to vector<8x128xi32>
    %58 = arith.cmpi slt, %56, %57 : vector<8x128xi32>
    %cst_40 = arith.constant 0.000000e+00 : f32
    %59 = vector.broadcast %cst_40 : f32 to vector<8x128xf32>
    %60 = arith.select %58, %52, %59 : vector<8x128xi1>, vector<8x128xf32>
    %cst_41 = arith.constant 0.000000e+00 : f32
    %61 = vector.broadcast %cst_41 : f32 to vector<8x128xf32>
    %62 = arith.select %58, %53, %61 : vector<8x128xi1>, vector<8x128xf32>
    %c0_42 = arith.constant 0 : index
    %c0_43 = arith.constant 0 : index
    %c0_44 = arith.constant 0 : index
    %63 = vector.load %arg6[%c0_42, %c0_43, %c0_44] : memref<1x8x128xf32, #tpu.memory_space<vmem>>, vector<1x8x128xf32>
    %64 = vector.shape_cast %63 : vector<1x8x128xf32> to vector<8x128xf32>
    %65 = arith.addf %64, %60 : vector<8x128xf32>
    %c0_45 = arith.constant 0 : index
    %c0_46 = arith.constant 0 : index
    %c0_47 = arith.constant 0 : index
    %66 = vector.load %arg6[%c0_45, %c0_46, %c0_47] : memref<1x8x128xf32, #tpu.memory_space<vmem>>, vector<1x8x128xf32>
    %67 = vector.shape_cast %66 : vector<1x8x128xf32> to vector<8x128xf32>
    %68 = vector.shape_cast %65 : vector<8x128xf32> to vector<1x8x128xf32>
    tpu.vector_store %arg6[%c0_45, %c0_46, %c0_47], %68 {strides = array<i32>} : memref<1x8x128xf32, #tpu.memory_space<vmem>>, vector<1x8x128xf32>,
    %c0_48 = arith.constant 0 : index
    %c0_49 = arith.constant 0 : index
    %c0_50 = arith.constant 0 : index
    %69 = vector.load %arg7[%c0_48, %c0_49, %c0_50] : memref<1x8x128xf32, #tpu.memory_space<vmem>>, vector<1x8x128xf32>
    %70 = vector.shape_cast %69 : vector<1x8x128xf32> to vector<8x128xf32>
    %71 = arith.addf %70, %62 : vector<8x128xf32>
    %c0_51 = arith.constant 0 : index
    %c0_52 = arith.constant 0 : index
    %c0_53 = arith.constant 0 : index
    %72 = vector.load %arg7[%c0_51, %c0_52, %c0_53] : memref<1x8x128xf32, #tpu.memory_space<vmem>>, vector<1x8x128xf32>
    %73 = vector.shape_cast %72 : vector<1x8x128xf32> to vector<8x128xf32>
    %74 = vector.shape_cast %71 : vector<8x128xf32> to vector<1x8x128xf32>
    tpu.vector_store %arg7[%c0_51, %c0_52, %c0_53], %74 {strides = array<i32>} : memref<1x8x128xf32, #tpu.memory_space<vmem>>, vector<1x8x128xf32>,
    %c0_54 = arith.constant 0 : index
    %c0_55 = arith.constant 0 : index
    %c0_56 = arith.constant 0 : index
    %75 = vector.load %arg8[%c0_54, %c0_55, %c0_56] : memref<1x8x128xf32, #tpu.memory_space<vmem>>, vector<1x8x128xf32>
    %76 = vector.shape_cast %75 : vector<1x8x128xf32> to vector<8x128xf32>
    %77 = arith.mulf %60, %60 : vector<8x128xf32>
    %78 = arith.addf %76, %77 : vector<8x128xf32>
    %c0_57 = arith.constant 0 : index
    %c0_58 = arith.constant 0 : index
    %c0_59 = arith.constant 0 : index
    %79 = vector.load %arg8[%c0_57, %c0_58, %c0_59] : memref<1x8x128xf32, #tpu.memory_space<vmem>>, vector<1x8x128xf32>
    %80 = vector.shape_cast %79 : vector<1x8x128xf32> to vector<8x128xf32>
    %81 = vector.shape_cast %78 : vector<8x128xf32> to vector<1x8x128xf32>
    tpu.vector_store %arg8[%c0_57, %c0_58, %c0_59], %81 {strides = array<i32>} : memref<1x8x128xf32, #tpu.memory_space<vmem>>, vector<1x8x128xf32>,
    %c0_60 = arith.constant 0 : index
    %c0_61 = arith.constant 0 : index
    %c0_62 = arith.constant 0 : index
    %82 = vector.load %arg9[%c0_60, %c0_61, %c0_62] : memref<1x8x128xf32, #tpu.memory_space<vmem>>, vector<1x8x128xf32>
    %83 = vector.shape_cast %82 : vector<1x8x128xf32> to vector<8x128xf32>
    %84 = arith.mulf %62, %62 : vector<8x128xf32>
    %85 = arith.addf %83, %84 : vector<8x128xf32>
    %c0_63 = arith.constant 0 : index
    %c0_64 = arith.constant 0 : index
    %c0_65 = arith.constant 0 : index
    %86 = vector.load %arg9[%c0_63, %c0_64, %c0_65] : memref<1x8x128xf32, #tpu.memory_space<vmem>>, vector<1x8x128xf32>
    %87 = vector.shape_cast %86 : vector<1x8x128xf32> to vector<8x128xf32>
    %88 = vector.shape_cast %85 : vector<8x128xf32> to vector<1x8x128xf32>
    tpu.vector_store %arg9[%c0_63, %c0_64, %c0_65], %88 {strides = array<i32>} : memref<1x8x128xf32, #tpu.memory_space<vmem>>, vector<1x8x128xf32>,
    %c0_66 = arith.constant 0 : index
    %c0_67 = arith.constant 0 : index
    %c0_68 = arith.constant 0 : index
    %89 = vector.load %arg10[%c0_66, %c0_67, %c0_68] : memref<1x8x128xf32, #tpu.memory_space<vmem>>, vector<1x8x128xf32>
    %90 = vector.shape_cast %89 : vector<1x8x128xf32> to vector<8x128xf32>
    %91 = arith.mulf %60, %62 : vector<8x128xf32>
    %92 = arith.addf %90, %91 : vector<8x128xf32>
    %c0_69 = arith.constant 0 : index
    %c0_70 = arith.constant 0 : index
    %c0_71 = arith.constant 0 : index
    %93 = vector.load %arg10[%c0_69, %c0_70, %c0_71] : memref<1x8x128xf32, #tpu.memory_space<vmem>>, vector<1x8x128xf32>
    %94 = vector.shape_cast %93 : vector<1x8x128xf32> to vector<8x128xf32>
    %95 = vector.shape_cast %92 : vector<8x128xf32> to vector<1x8x128xf32>
    tpu.vector_store %arg10[%c0_69, %c0_70, %c0_71], %95 {strides = array<i32>} : memref<1x8x128xf32, #tpu.memory_space<vmem>>, vector<1x8x128xf32>,
    %c0_72 = arith.constant 0 : index
    %c256 = arith.constant 256 : index
    %96 = vector.load %arg4[%c0_72, %c256] : memref<8x2560xf32, #tpu.memory_space<vmem>>, vector<8x128xf32>
    %c0_73 = arith.constant 0 : index
    %c256_74 = arith.constant 256 : index
    %97 = vector.load %arg5[%c0_73, %c256_74] : memref<8x2560xf32, #tpu.memory_space<vmem>>, vector<8x128xf32>
    %c256_i32 = arith.constant 256 : i32
    %98 = arith.addi %6, %c256_i32 : i32
    %99 = vector.broadcast %98 : i32 to vector<8x128xi32>
    %100 = arith.addi %99, %7 : vector<8x128xi32>
    %101 = vector.broadcast %3 : i32 to vector<8x128xi32>
    %102 = arith.cmpi slt, %100, %101 : vector<8x128xi32>
    %cst_75 = arith.constant 0.000000e+00 : f32
    %103 = vector.broadcast %cst_75 : f32 to vector<8x128xf32>
    %104 = arith.select %102, %96, %103 : vector<8x128xi1>, vector<8x128xf32>
    %cst_76 = arith.constant 0.000000e+00 : f32
    %105 = vector.broadcast %cst_76 : f32 to vector<8x128xf32>
    %106 = arith.select %102, %97, %105 : vector<8x128xi1>, vector<8x128xf32>
    %c0_77 = arith.constant 0 : index
    %c0_78 = arith.constant 0 : index
    %c0_79 = arith.constant 0 : index
    %107 = vector.load %arg6[%c0_77, %c0_78, %c0_79] : memref<1x8x128xf32, #tpu.memory_space<vmem>>, vector<1x8x128xf32>
    %108 = vector.shape_cast %107 : vector<1x8x128xf32> to vector<8x128xf32>
    %109 = arith.addf %108, %104 : vector<8x128xf32>
    %c0_80 = arith.constant 0 : index
    %c0_81 = arith.constant 0 : index
    %c0_82 = arith.constant 0 : index
    %110 = vector.load %arg6[%c0_80, %c0_81, %c0_82] : memref<1x8x128xf32, #tpu.memory_space<vmem>>, vector<1x8x128xf32>
    %111 = vector.shape_cast %110 : vector<1x8x128xf32> to vector<8x128xf32>
    %112 = vector.shape_cast %109 : vector<8x128xf32> to vector<1x8x128xf32>
    tpu.vector_store %arg6[%c0_80, %c0_81, %c0_82], %112 {strides = array<i32>} : memref<1x8x128xf32, #tpu.memory_space<vmem>>, vector<1x8x128xf32>,
    %c0_83 = arith.constant 0 : index
    %c0_84 = arith.constant 0 : index
    %c0_85 = arith.constant 0 : index
    %113 = vector.load %arg7[%c0_83, %c0_84, %c0_85] : memref<1x8x128xf32, #tpu.memory_space<vmem>>, vector<1x8x128xf32>
    %114 = vector.shape_cast %113 : vector<1x8x128xf32> to vector<8x128xf32>
    %115 = arith.addf %114, %106 : vector<8x128xf32>
    %c0_86 = arith.constant 0 : index
    %c0_87 = arith.constant 0 : index
    %c0_88 = arith.constant 0 : index
    %116 = vector.load %arg7[%c0_86, %c0_87, %c0_88] : memref<1x8x128xf32, #tpu.memory_space<vmem>>, vector<1x8x128xf32>
    %117 = vector.shape_cast %116 : vector<1x8x128xf32> to vector<8x128xf32>
    %118 = vector.shape_cast %115 : vector<8x128xf32> to vector<1x8x128xf32>
    tpu.vector_store %arg7[%c0_86, %c0_87, %c0_88], %118 {strides = array<i32>} : memref<1x8x128xf32, #tpu.memory_space<vmem>>, vector<1x8x128xf32>,
    %c0_89 = arith.constant 0 : index
    %c0_90 = arith.constant 0 : index
    %c0_91 = arith.constant 0 : index
    %119 = vector.load %arg8[%c0_89, %c0_90, %c0_91] : memref<1x8x128xf32, #tpu.memory_space<vmem>>, vector<1x8x128xf32>
    %120 = vector.shape_cast %119 : vector<1x8x128xf32> to vector<8x128xf32>
    %121 = arith.mulf %104, %104 : vector<8x128xf32>
    %122 = arith.addf %120, %121 : vector<8x128xf32>
    %c0_92 = arith.constant 0 : index
    %c0_93 = arith.constant 0 : index
    %c0_94 = arith.constant 0 : index
    %123 = vector.load %arg8[%c0_92, %c0_93, %c0_94] : memref<1x8x128xf32, #tpu.memory_space<vmem>>, vector<1x8x128xf32>
    %124 = vector.shape_cast %123 : vector<1x8x128xf32> to vector<8x128xf32>
    %125 = vector.shape_cast %122 : vector<8x128xf32> to vector<1x8x128xf32>
    tpu.vector_store %arg8[%c0_92, %c0_93, %c0_94], %125 {strides = array<i32>} : memref<1x8x128xf32, #tpu.memory_space<vmem>>, vector<1x8x128xf32>,
    %c0_95 = arith.constant 0 : index
    %c0_96 = arith.constant 0 : index
    %c0_97 = arith.constant 0 : index
    %126 = vector.load %arg9[%c0_95, %c0_96, %c0_97] : memref<1x8x128xf32, #tpu.memory_space<vmem>>, vector<1x8x128xf32>
    %127 = vector.shape_cast %126 : vector<1x8x128xf32> to vector<8x128xf32>
    %128 = arith.mulf %106, %106 : vector<8x128xf32>
    %129 = arith.addf %127, %128 : vector<8x128xf32>
    %c0_98 = arith.constant 0 : index
    %c0_99 = arith.constant 0 : index
    %c0_100 = arith.constant 0 : index
    %130 = vector.load %arg9[%c0_98, %c0_99, %c0_100] : memref<1x8x128xf32, #tpu.memory_space<vmem>>, vector<1x8x128xf32>
    %131 = vector.shape_cast %130 : vector<1x8x128xf32> to vector<8x128xf32>
    %132 = vector.shape_cast %129 : vector<8x128xf32> to vector<1x8x128xf32>
    tpu.vector_store %arg9[%c0_98, %c0_99, %c0_100], %132 {strides = array<i32>} : memref<1x8x128xf32, #tpu.memory_space<vmem>>, vector<1x8x128xf32>,
    %c0_101 = arith.constant 0 : index
    %c0_102 = arith.constant 0 : index
    %c0_103 = arith.constant 0 : index
    %133 = vector.load %arg10[%c0_101, %c0_102, %c0_103] : memref<1x8x128xf32, #tpu.memory_space<vmem>>, vector<1x8x128xf32>
    %134 = vector.shape_cast %133 : vector<1x8x128xf32> to vector<8x128xf32>
    %135 = arith.mulf %104, %106 : vector<8x128xf32>
    %136 = arith.addf %134, %135 : vector<8x128xf32>
    %c0_104 = arith.constant 0 : index
    %c0_105 = arith.constant 0 : index
    %c0_106 = arith.constant 0 : index
    %137 = vector.load %arg10[%c0_104, %c0_105, %c0_106] : memref<1x8x128xf32, #tpu.memory_space<vmem>>, vector<1x8x128xf32>
    %138 = vector.shape_cast %137 : vector<1x8x128xf32> to vector<8x128xf32>
    %139 = vector.shape_cast %136 : vector<8x128xf32> to vector<1x8x128xf32>
    tpu.vector_store %arg10[%c0_104, %c0_105, %c0_106], %139 {strides = array<i32>} : memref<1x8x128xf32, #tpu.memory_space<vmem>>, vector<1x8x128xf32>,
    %c0_107 = arith.constant 0 : index
    %c384 = arith.constant 384 : index
    %140 = vector.load %arg4[%c0_107, %c384] : memref<8x2560xf32, #tpu.memory_space<vmem>>, vector<8x128xf32>
    %c0_108 = arith.constant 0 : index
    %c384_109 = arith.constant 384 : index
    %141 = vector.load %arg5[%c0_108, %c384_109] : memref<8x2560xf32, #tpu.memory_space<vmem>>, vector<8x128xf32>
    %c384_i32 = arith.constant 384 : i32
    %142 = arith.addi %6, %c384_i32 : i32
    %143 = vector.broadcast %142 : i32 to vector<8x128xi32>
    %144 = arith.addi %143, %7 : vector<8x128xi32>
    %145 = vector.broadcast %3 : i32 to vector<8x128xi32>
    %146 = arith.cmpi slt, %144, %145 : vector<8x128xi32>
    %cst_110 = arith.constant 0.000000e+00 : f32
    %147 = vector.broadcast %cst_110 : f32 to vector<8x128xf32>
    %148 = arith.select %146, %140, %147 : vector<8x128xi1>, vector<8x128xf32>
    %cst_111 = arith.constant 0.000000e+00 : f32
    %149 = vector.broadcast %cst_111 : f32 to vector<8x128xf32>
    %150 = arith.select %146, %141, %149 : vector<8x128xi1>, vector<8x128xf32>
    %c0_112 = arith.constant 0 : index
    %c0_113 = arith.constant 0 : index
    %c0_114 = arith.constant 0 : index
    %151 = vector.load %arg6[%c0_112, %c0_113, %c0_114] : memref<1x8x128xf32, #tpu.memory_space<vmem>>, vector<1x8x128xf32>
    %152 = vector.shape_cast %151 : vector<1x8x128xf32> to vector<8x128xf32>
    %153 = arith.addf %152, %148 : vector<8x128xf32>
    %c0_115 = arith.constant 0 : index
    %c0_116 = arith.constant 0 : index
    %c0_117 = arith.constant 0 : index
    %154 = vector.load %arg6[%c0_115, %c0_116, %c0_117] : memref<1x8x128xf32, #tpu.memory_space<vmem>>, vector<1x8x128xf32>
    %155 = vector.shape_cast %154 : vector<1x8x128xf32> to vector<8x128xf32>
    %156 = vector.shape_cast %153 : vector<8x128xf32> to vector<1x8x128xf32>
    tpu.vector_store %arg6[%c0_115, %c0_116, %c0_117], %156 {strides = array<i32>} : memref<1x8x128xf32, #tpu.memory_space<vmem>>, vector<1x8x128xf32>,
    %c0_118 = arith.constant 0 : index
    %c0_119 = arith.constant 0 : index
    %c0_120 = arith.constant 0 : index
    %157 = vector.load %arg7[%c0_118, %c0_119, %c0_120] : memref<1x8x128xf32, #tpu.memory_space<vmem>>, vector<1x8x128xf32>
    %158 = vector.shape_cast %157 : vector<1x8x128xf32> to vector<8x128xf32>
    %159 = arith.addf %158, %150 : vector<8x128xf32>
    %c0_121 = arith.constant 0 : index
    %c0_122 = arith.constant 0 : index
    %c0_123 = arith.constant 0 : index
    %160 = vector.load %arg7[%c0_121, %c0_122, %c0_123] : memref<1x8x128xf32, #tpu.memory_space<vmem>>, vector<1x8x128xf32>
    %161 = vector.shape_cast %160 : vector<1x8x128xf32> to vector<8x128xf32>
    %162 = vector.shape_cast %159 : vector<8x128xf32> to vector<1x8x128xf32>
    tpu.vector_store %arg7[%c0_121, %c0_122, %c0_123], %162 {strides = array<i32>} : memref<1x8x128xf32, #tpu.memory_space<vmem>>, vector<1x8x128xf32>,
    %c0_124 = arith.constant 0 : index
    %c0_125 = arith.constant 0 : index
    %c0_126 = arith.constant 0 : index
    %163 = vector.load %arg8[%c0_124, %c0_125, %c0_126] : memref<1x8x128xf32, #tpu.memory_space<vmem>>, vector<1x8x128xf32>
    %164 = vector.shape_cast %163 : vector<1x8x128xf32> to vector<8x128xf32>
    %165 = arith.mulf %148, %148 : vector<8x128xf32>
    %166 = arith.addf %164, %165 : vector<8x128xf32>
    %c0_127 = arith.constant 0 : index
    %c0_128 = arith.constant 0 : index
    %c0_129 = arith.constant 0 : index
    %167 = vector.load %arg8[%c0_127, %c0_128, %c0_129] : memref<1x8x128xf32, #tpu.memory_space<vmem>>, vector<1x8x128xf32>
    %168 = vector.shape_cast %167 : vector<1x8x128xf32> to vector<8x128xf32>
    %169 = vector.shape_cast %166 : vector<8x128xf32> to vector<1x8x128xf32>
    tpu.vector_store %arg8[%c0_127, %c0_128, %c0_129], %169 {strides = array<i32>} : memref<1x8x128xf32, #tpu.memory_space<vmem>>, vector<1x8x128xf32>,
    %c0_130 = arith.constant 0 : index
    %c0_131 = arith.constant 0 : index
    %c0_132 = arith.constant 0 : index
    %170 = vector.load %arg9[%c0_130, %c0_131, %c0_132] : memref<1x8x128xf32, #tpu.memory_space<vmem>>, vector<1x8x128xf32>
    %171 = vector.shape_cast %170 : vector<1x8x128xf32> to vector<8x128xf32>
    %172 = arith.mulf %150, %150 : vector<8x128xf32>
    %173 = arith.addf %171, %172 : vector<8x128xf32>
    %c0_133 = arith.constant 0 : index
    %c0_134 = arith.constant 0 : index
    %c0_135 = arith.constant 0 : index
    %174 = vector.load %arg9[%c0_133, %c0_134, %c0_135] : memref<1x8x128xf32, #tpu.memory_space<vmem>>, vector<1x8x128xf32>
    %175 = vector.shape_cast %174 : vector<1x8x128xf32> to vector<8x128xf32>
    %176 = vector.shape_cast %173 : vector<8x128xf32> to vector<1x8x128xf32>
    tpu.vector_store %arg9[%c0_133, %c0_134, %c0_135], %176 {strides = array<i32>} : memref<1x8x128xf32, #tpu.memory_space<vmem>>, vector<1x8x128xf32>,
    %c0_136 = arith.constant 0 : index
    %c0_137 = arith.constant 0 : index
    %c0_138 = arith.constant 0 : index
    %177 = vector.load %arg10[%c0_136, %c0_137, %c0_138] : memref<1x8x128xf32, #tpu.memory_space<vmem>>, vector<1x8x128xf32>
    %178 = vector.shape_cast %177 : vector<1x8x128xf32> to vector<8x128xf32>
    %179 = arith.mulf %148, %150 : vector<8x128xf32>
    %180 = arith.addf %178, %179 : vector<8x128xf32>
    %c0_139 = arith.constant 0 : index
    %c0_140 = arith.constant 0 : index
    %c0_141 = arith.constant 0 : index
    %181 = vector.load %arg10[%c0_139, %c0_140, %c0_141] : memref<1x8x128xf32, #tpu.memory_space<vmem>>, vector<1x8x128xf32>
    %182 = vector.shape_cast %181 : vector<1x8x128xf32> to vector<8x128xf32>
    %183 = vector.shape_cast %180 : vector<8x128xf32> to vector<1x8x128xf32>
    tpu.vector_store %arg10[%c0_139, %c0_140, %c0_141], %183 {strides = array<i32>} : memref<1x8x128xf32, #tpu.memory_space<vmem>>, vector<1x8x128xf32>,
    %c0_142 = arith.constant 0 : index
    %c512 = arith.constant 512 : index
    %184 = vector.load %arg4[%c0_142, %c512] : memref<8x2560xf32, #tpu.memory_space<vmem>>, vector<8x128xf32>
    %c0_143 = arith.constant 0 : index
    %c512_144 = arith.constant 512 : index
    %185 = vector.load %arg5[%c0_143, %c512_144] : memref<8x2560xf32, #tpu.memory_space<vmem>>, vector<8x128xf32>
    %c512_i32 = arith.constant 512 : i32
    %186 = arith.addi %6, %c512_i32 : i32
    %187 = vector.broadcast %186 : i32 to vector<8x128xi32>
    %188 = arith.addi %187, %7 : vector<8x128xi32>
    %189 = vector.broadcast %3 : i32 to vector<8x128xi32>
    %190 = arith.cmpi slt, %188, %189 : vector<8x128xi32>
    %cst_145 = arith.constant 0.000000e+00 : f32
    %191 = vector.broadcast %cst_145 : f32 to vector<8x128xf32>
    %192 = arith.select %190, %184, %191 : vector<8x128xi1>, vector<8x128xf32>
    %cst_146 = arith.constant 0.000000e+00 : f32
    %193 = vector.broadcast %cst_146 : f32 to vector<8x128xf32>
    %194 = arith.select %190, %185, %193 : vector<8x128xi1>, vector<8x128xf32>
    %c0_147 = arith.constant 0 : index
    %c0_148 = arith.constant 0 : index
    %c0_149 = arith.constant 0 : index
    %195 = vector.load %arg6[%c0_147, %c0_148, %c0_149] : memref<1x8x128xf32, #tpu.memory_space<vmem>>, vector<1x8x128xf32>
    %196 = vector.shape_cast %195 : vector<1x8x128xf32> to vector<8x128xf32>
    %197 = arith.addf %196, %192 : vector<8x128xf32>
    %c0_150 = arith.constant 0 : index
    %c0_151 = arith.constant 0 : index
    %c0_152 = arith.constant 0 : index
    %198 = vector.load %arg6[%c0_150, %c0_151, %c0_152] : memref<1x8x128xf32, #tpu.memory_space<vmem>>, vector<1x8x128xf32>
    %199 = vector.shape_cast %198 : vector<1x8x128xf32> to vector<8x128xf32>
    %200 = vector.shape_cast %197 : vector<8x128xf32> to vector<1x8x128xf32>
    tpu.vector_store %arg6[%c0_150, %c0_151, %c0_152], %200 {strides = array<i32>} : memref<1x8x128xf32, #tpu.memory_space<vmem>>, vector<1x8x128xf32>,
    %c0_153 = arith.constant 0 : index
    %c0_154 = arith.constant 0 : index
    %c0_155 = arith.constant 0 : index
    %201 = vector.load %arg7[%c0_153, %c0_154, %c0_155] : memref<1x8x128xf32, #tpu.memory_space<vmem>>, vector<1x8x128xf32>
    %202 = vector.shape_cast %201 : vector<1x8x128xf32> to vector<8x128xf32>
    %203 = arith.addf %202, %194 : vector<8x128xf32>
    %c0_156 = arith.constant 0 : index
    %c0_157 = arith.constant 0 : index
    %c0_158 = arith.constant 0 : index
    %204 = vector.load %arg7[%c0_156, %c0_157, %c0_158] : memref<1x8x128xf32, #tpu.memory_space<vmem>>, vector<1x8x128xf32>
    %205 = vector.shape_cast %204 : vector<1x8x128xf32> to vector<8x128xf32>
    %206 = vector.shape_cast %203 : vector<8x128xf32> to vector<1x8x128xf32>
    tpu.vector_store %arg7[%c0_156, %c0_157, %c0_158], %206 {strides = array<i32>} : memref<1x8x128xf32, #tpu.memory_space<vmem>>, vector<1x8x128xf32>,
    %c0_159 = arith.constant 0 : index
    %c0_160 = arith.constant 0 : index
    %c0_161 = arith.constant 0 : index
    %207 = vector.load %arg8[%c0_159, %c0_160, %c0_161] : memref<1x8x128xf32, #tpu.memory_space<vmem>>, vector<1x8x128xf32>
    %208 = vector.shape_cast %207 : vector<1x8x128xf32> to vector<8x128xf32>
    %209 = arith.mulf %192, %192 : vector<8x128xf32>
    %210 = arith.addf %208, %209 : vector<8x128xf32>
    %c0_162 = arith.constant 0 : index
    %c0_163 = arith.constant 0 : index
    %c0_164 = arith.constant 0 : index
    %211 = vector.load %arg8[%c0_162, %c0_163, %c0_164] : memref<1x8x128xf32, #tpu.memory_space<vmem>>, vector<1x8x128xf32>
    %212 = vector.shape_cast %211 : vector<1x8x128xf32> to vector<8x128xf32>
    %213 = vector.shape_cast %210 : vector<8x128xf32> to vector<1x8x128xf32>
    tpu.vector_store %arg8[%c0_162, %c0_163, %c0_164], %213 {strides = array<i32>} : memref<1x8x128xf32, #tpu.memory_space<vmem>>, vector<1x8x128xf32>,
    %c0_165 = arith.constant 0 : index
    %c0_166 = arith.constant 0 : index
    %c0_167 = arith.constant 0 : index
    %214 = vector.load %arg9[%c0_165, %c0_166, %c0_167] : memref<1x8x128xf32, #tpu.memory_space<vmem>>, vector<1x8x128xf32>
    %215 = vector.shape_cast %214 : vector<1x8x128xf32> to vector<8x128xf32>
    %216 = arith.mulf %194, %194 : vector<8x128xf32>
    %217 = arith.addf %215, %216 : vector<8x128xf32>
    %c0_168 = arith.constant 0 : index
    %c0_169 = arith.constant 0 : index
    %c0_170 = arith.constant 0 : index
    %218 = vector.load %arg9[%c0_168, %c0_169, %c0_170] : memref<1x8x128xf32, #tpu.memory_space<vmem>>, vector<1x8x128xf32>
    %219 = vector.shape_cast %218 : vector<1x8x128xf32> to vector<8x128xf32>
    %220 = vector.shape_cast %217 : vector<8x128xf32> to vector<1x8x128xf32>
    tpu.vector_store %arg9[%c0_168, %c0_169, %c0_170], %220 {strides = array<i32>} : memref<1x8x128xf32, #tpu.memory_space<vmem>>, vector<1x8x128xf32>,
    %c0_171 = arith.constant 0 : index
    %c0_172 = arith.constant 0 : index
    %c0_173 = arith.constant 0 : index
    %221 = vector.load %arg10[%c0_171, %c0_172, %c0_173] : memref<1x8x128xf32, #tpu.memory_space<vmem>>, vector<1x8x128xf32>
    %222 = vector.shape_cast %221 : vector<1x8x128xf32> to vector<8x128xf32>
    %223 = arith.mulf %192, %194 : vector<8x128xf32>
    %224 = arith.addf %222, %223 : vector<8x128xf32>
    %c0_174 = arith.constant 0 : index
    %c0_175 = arith.constant 0 : index
    %c0_176 = arith.constant 0 : index
    %225 = vector.load %arg10[%c0_174, %c0_175, %c0_176] : memref<1x8x128xf32, #tpu.memory_space<vmem>>, vector<1x8x128xf32>
    %226 = vector.shape_cast %225 : vector<1x8x128xf32> to vector<8x128xf32>
    %227 = vector.shape_cast %224 : vector<8x128xf32> to vector<1x8x128xf32>
    tpu.vector_store %arg10[%c0_174, %c0_175, %c0_176], %227 {strides = array<i32>} : memref<1x8x128xf32, #tpu.memory_space<vmem>>, vector<1x8x128xf32>,
    %c0_177 = arith.constant 0 : index
    %c640 = arith.constant 640 : index
    %228 = vector.load %arg4[%c0_177, %c640] : memref<8x2560xf32, #tpu.memory_space<vmem>>, vector<8x128xf32>
    %c0_178 = arith.constant 0 : index
    %c640_179 = arith.constant 640 : index
    %229 = vector.load %arg5[%c0_178, %c640_179] : memref<8x2560xf32, #tpu.memory_space<vmem>>, vector<8x128xf32>
    %c640_i32 = arith.constant 640 : i32
    %230 = arith.addi %6, %c640_i32 : i32
    %231 = vector.broadcast %230 : i32 to vector<8x128xi32>
    %232 = arith.addi %231, %7 : vector<8x128xi32>
    %233 = vector.broadcast %3 : i32 to vector<8x128xi32>
    %234 = arith.cmpi slt, %232, %233 : vector<8x128xi32>
    %cst_180 = arith.constant 0.000000e+00 : f32
    %235 = vector.broadcast %cst_180 : f32 to vector<8x128xf32>
    %236 = arith.select %234, %228, %235 : vector<8x128xi1>, vector<8x128xf32>
    %cst_181 = arith.constant 0.000000e+00 : f32
    %237 = vector.broadcast %cst_181 : f32 to vector<8x128xf32>
    %238 = arith.select %234, %229, %237 : vector<8x128xi1>, vector<8x128xf32>
    %c0_182 = arith.constant 0 : index
    %c0_183 = arith.constant 0 : index
    %c0_184 = arith.constant 0 : index
    %239 = vector.load %arg6[%c0_182, %c0_183, %c0_184] : memref<1x8x128xf32, #tpu.memory_space<vmem>>, vector<1x8x128xf32>
    %240 = vector.shape_cast %239 : vector<1x8x128xf32> to vector<8x128xf32>
    %241 = arith.addf %240, %236 : vector<8x128xf32>
    %c0_185 = arith.constant 0 : index
    %c0_186 = arith.constant 0 : index
    %c0_187 = arith.constant 0 : index
    %242 = vector.load %arg6[%c0_185, %c0_186, %c0_187] : memref<1x8x128xf32, #tpu.memory_space<vmem>>, vector<1x8x128xf32>
    %243 = vector.shape_cast %242 : vector<1x8x128xf32> to vector<8x128xf32>
    %244 = vector.shape_cast %241 : vector<8x128xf32> to vector<1x8x128xf32>
    tpu.vector_store %arg6[%c0_185, %c0_186, %c0_187], %244 {strides = array<i32>} : memref<1x8x128xf32, #tpu.memory_space<vmem>>, vector<1x8x128xf32>,
    %c0_188 = arith.constant 0 : index
    %c0_189 = arith.constant 0 : index
    %c0_190 = arith.constant 0 : index
    %245 = vector.load %arg7[%c0_188, %c0_189, %c0_190] : memref<1x8x128xf32, #tpu.memory_space<vmem>>, vector<1x8x128xf32>
    %246 = vector.shape_cast %245 : vector<1x8x128xf32> to vector<8x128xf32>
    %247 = arith.addf %246, %238 : vector<8x128xf32>
    %c0_191 = arith.constant 0 : index
    %c0_192 = arith.constant 0 : index
    %c0_193 = arith.constant 0 : index
    %248 = vector.load %arg7[%c0_191, %c0_192, %c0_193] : memref<1x8x128xf32, #tpu.memory_space<vmem>>, vector<1x8x128xf32>
    %249 = vector.shape_cast %248 : vector<1x8x128xf32> to vector<8x128xf32>
    %250 = vector.shape_cast %247 : vector<8x128xf32> to vector<1x8x128xf32>
    tpu.vector_store %arg7[%c0_191, %c0_192, %c0_193], %250 {strides = array<i32>} : memref<1x8x128xf32, #tpu.memory_space<vmem>>, vector<1x8x128xf32>,
    %c0_194 = arith.constant 0 : index
    %c0_195 = arith.constant 0 : index
    %c0_196 = arith.constant 0 : index
    %251 = vector.load %arg8[%c0_194, %c0_195, %c0_196] : memref<1x8x128xf32, #tpu.memory_space<vmem>>, vector<1x8x128xf32>
    %252 = vector.shape_cast %251 : vector<1x8x128xf32> to vector<8x128xf32>
    %253 = arith.mulf %236, %236 : vector<8x128xf32>
    %254 = arith.addf %252, %253 : vector<8x128xf32>
    %c0_197 = arith.constant 0 : index
    %c0_198 = arith.constant 0 : index
    %c0_199 = arith.constant 0 : index
    %255 = vector.load %arg8[%c0_197, %c0_198, %c0_199] : memref<1x8x128xf32, #tpu.memory_space<vmem>>, vector<1x8x128xf32>
    %256 = vector.shape_cast %255 : vector<1x8x128xf32> to vector<8x128xf32>
    %257 = vector.shape_cast %254 : vector<8x128xf32> to vector<1x8x128xf32>
    tpu.vector_store %arg8[%c0_197, %c0_198, %c0_199], %257 {strides = array<i32>} : memref<1x8x128xf32, #tpu.memory_space<vmem>>, vector<1x8x128xf32>,
    %c0_200 = arith.constant 0 : index
    %c0_201 = arith.constant 0 : index
    %c0_202 = arith.constant 0 : index
    %258 = vector.load %arg9[%c0_200, %c0_201, %c0_202] : memref<1x8x128xf32, #tpu.memory_space<vmem>>, vector<1x8x128xf32>
    %259 = vector.shape_cast %258 : vector<1x8x128xf32> to vector<8x128xf32>
    %260 = arith.mulf %238, %238 : vector<8x128xf32>
    %261 = arith.addf %259, %260 : vector<8x128xf32>
    %c0_203 = arith.constant 0 : index
    %c0_204 = arith.constant 0 : index
    %c0_205 = arith.constant 0 : index
    %262 = vector.load %arg9[%c0_203, %c0_204, %c0_205] : memref<1x8x128xf32, #tpu.memory_space<vmem>>, vector<1x8x128xf32>
    %263 = vector.shape_cast %262 : vector<1x8x128xf32> to vector<8x128xf32>
    %264 = vector.shape_cast %261 : vector<8x128xf32> to vector<1x8x128xf32>
    tpu.vector_store %arg9[%c0_203, %c0_204, %c0_205], %264 {strides = array<i32>} : memref<1x8x128xf32, #tpu.memory_space<vmem>>, vector<1x8x128xf32>,
    %c0_206 = arith.constant 0 : index
    %c0_207 = arith.constant 0 : index
    %c0_208 = arith.constant 0 : index
    %265 = vector.load %arg10[%c0_206, %c0_207, %c0_208] : memref<1x8x128xf32, #tpu.memory_space<vmem>>, vector<1x8x128xf32>
    %266 = vector.shape_cast %265 : vector<1x8x128xf32> to vector<8x128xf32>
    %267 = arith.mulf %236, %238 : vector<8x128xf32>
    %268 = arith.addf %266, %267 : vector<8x128xf32>
    %c0_209 = arith.constant 0 : index
    %c0_210 = arith.constant 0 : index
    %c0_211 = arith.constant 0 : index
    %269 = vector.load %arg10[%c0_209, %c0_210, %c0_211] : memref<1x8x128xf32, #tpu.memory_space<vmem>>, vector<1x8x128xf32>
    %270 = vector.shape_cast %269 : vector<1x8x128xf32> to vector<8x128xf32>
    %271 = vector.shape_cast %268 : vector<8x128xf32> to vector<1x8x128xf32>
    tpu.vector_store %arg10[%c0_209, %c0_210, %c0_211], %271 {strides = array<i32>} : memref<1x8x128xf32, #tpu.memory_space<vmem>>, vector<1x8x128xf32>,
    %c0_212 = arith.constant 0 : index
    %c768 = arith.constant 768 : index
    %272 = vector.load %arg4[%c0_212, %c768] : memref<8x2560xf32, #tpu.memory_space<vmem>>, vector<8x128xf32>
    %c0_213 = arith.constant 0 : index
    %c768_214 = arith.constant 768 : index
    %273 = vector.load %arg5[%c0_213, %c768_214] : memref<8x2560xf32, #tpu.memory_space<vmem>>, vector<8x128xf32>
    %c768_i32 = arith.constant 768 : i32
    %274 = arith.addi %6, %c768_i32 : i32
    %275 = vector.broadcast %274 : i32 to vector<8x128xi32>
    %276 = arith.addi %275, %7 : vector<8x128xi32>
    %277 = vector.broadcast %3 : i32 to vector<8x128xi32>
    %278 = arith.cmpi slt, %276, %277 : vector<8x128xi32>
    %cst_215 = arith.constant 0.000000e+00 : f32
    %279 = vector.broadcast %cst_215 : f32 to vector<8x128xf32>
    %280 = arith.select %278, %272, %279 : vector<8x128xi1>, vector<8x128xf32>
    %cst_216 = arith.constant 0.000000e+00 : f32
    %281 = vector.broadcast %cst_216 : f32 to vector<8x128xf32>
    %282 = arith.select %278, %273, %281 : vector<8x128xi1>, vector<8x128xf32>
    %c0_217 = arith.constant 0 : index
    %c0_218 = arith.constant 0 : index
    %c0_219 = arith.constant 0 : index
    %283 = vector.load %arg6[%c0_217, %c0_218, %c0_219] : memref<1x8x128xf32, #tpu.memory_space<vmem>>, vector<1x8x128xf32>
    %284 = vector.shape_cast %283 : vector<1x8x128xf32> to vector<8x128xf32>
    %285 = arith.addf %284, %280 : vector<8x128xf32>
    %c0_220 = arith.constant 0 : index
    %c0_221 = arith.constant 0 : index
    %c0_222 = arith.constant 0 : index
    %286 = vector.load %arg6[%c0_220, %c0_221, %c0_222] : memref<1x8x128xf32, #tpu.memory_space<vmem>>, vector<1x8x128xf32>
    %287 = vector.shape_cast %286 : vector<1x8x128xf32> to vector<8x128xf32>
    %288 = vector.shape_cast %285 : vector<8x128xf32> to vector<1x8x128xf32>
    tpu.vector_store %arg6[%c0_220, %c0_221, %c0_222], %288 {strides = array<i32>} : memref<1x8x128xf32, #tpu.memory_space<vmem>>, vector<1x8x128xf32>,
    %c0_223 = arith.constant 0 : index
    %c0_224 = arith.constant 0 : index
    %c0_225 = arith.constant 0 : index
    %289 = vector.load %arg7[%c0_223, %c0_224, %c0_225] : memref<1x8x128xf32, #tpu.memory_space<vmem>>, vector<1x8x128xf32>
    %290 = vector.shape_cast %289 : vector<1x8x128xf32> to vector<8x128xf32>
    %291 = arith.addf %290, %282 : vector<8x128xf32>
    %c0_226 = arith.constant 0 : index
    %c0_227 = arith.constant 0 : index
    %c0_228 = arith.constant 0 : index
    %292 = vector.load %arg7[%c0_226, %c0_227, %c0_228] : memref<1x8x128xf32, #tpu.memory_space<vmem>>, vector<1x8x128xf32>
    %293 = vector.shape_cast %292 : vector<1x8x128xf32> to vector<8x128xf32>
    %294 = vector.shape_cast %291 : vector<8x128xf32> to vector<1x8x128xf32>
    tpu.vector_store %arg7[%c0_226, %c0_227, %c0_228], %294 {strides = array<i32>} : memref<1x8x128xf32, #tpu.memory_space<vmem>>, vector<1x8x128xf32>,
    %c0_229 = arith.constant 0 : index
    %c0_230 = arith.constant 0 : index
    %c0_231 = arith.constant 0 : index
    %295 = vector.load %arg8[%c0_229, %c0_230, %c0_231] : memref<1x8x128xf32, #tpu.memory_space<vmem>>, vector<1x8x128xf32>
    %296 = vector.shape_cast %295 : vector<1x8x128xf32> to vector<8x128xf32>
    %297 = arith.mulf %280, %280 : vector<8x128xf32>
    %298 = arith.addf %296, %297 : vector<8x128xf32>
    %c0_232 = arith.constant 0 : index
    %c0_233 = arith.constant 0 : index
    %c0_234 = arith.constant 0 : index
    %299 = vector.load %arg8[%c0_232, %c0_233, %c0_234] : memref<1x8x128xf32, #tpu.memory_space<vmem>>, vector<1x8x128xf32>
    %300 = vector.shape_cast %299 : vector<1x8x128xf32> to vector<8x128xf32>
    %301 = vector.shape_cast %298 : vector<8x128xf32> to vector<1x8x128xf32>
    tpu.vector_store %arg8[%c0_232, %c0_233, %c0_234], %301 {strides = array<i32>} : memref<1x8x128xf32, #tpu.memory_space<vmem>>, vector<1x8x128xf32>,
    %c0_235 = arith.constant 0 : index
    %c0_236 = arith.constant 0 : index
    %c0_237 = arith.constant 0 : index
    %302 = vector.load %arg9[%c0_235, %c0_236, %c0_237] : memref<1x8x128xf32, #tpu.memory_space<vmem>>, vector<1x8x128xf32>
    %303 = vector.shape_cast %302 : vector<1x8x128xf32> to vector<8x128xf32>
    %304 = arith.mulf %282, %282 : vector<8x128xf32>
    %305 = arith.addf %303, %304 : vector<8x128xf32>
    %c0_238 = arith.constant 0 : index
    %c0_239 = arith.constant 0 : index
    %c0_240 = arith.constant 0 : index
    %306 = vector.load %arg9[%c0_238, %c0_239, %c0_240] : memref<1x8x128xf32, #tpu.memory_space<vmem>>, vector<1x8x128xf32>
    %307 = vector.shape_cast %306 : vector<1x8x128xf32> to vector<8x128xf32>
    %308 = vector.shape_cast %305 : vector<8x128xf32> to vector<1x8x128xf32>
    tpu.vector_store %arg9[%c0_238, %c0_239, %c0_240], %308 {strides = array<i32>} : memref<1x8x128xf32, #tpu.memory_space<vmem>>, vector<1x8x128xf32>,
    %c0_241 = arith.constant 0 : index
    %c0_242 = arith.constant 0 : index
    %c0_243 = arith.constant 0 : index
    %309 = vector.load %arg10[%c0_241, %c0_242, %c0_243] : memref<1x8x128xf32, #tpu.memory_space<vmem>>, vector<1x8x128xf32>
    %310 = vector.shape_cast %309 : vector<1x8x128xf32> to vector<8x128xf32>
    %311 = arith.mulf %280, %282 : vector<8x128xf32>
    %312 = arith.addf %310, %311 : vector<8x128xf32>
    %c0_244 = arith.constant 0 : index
    %c0_245 = arith.constant 0 : index
    %c0_246 = arith.constant 0 : index
    %313 = vector.load %arg10[%c0_244, %c0_245, %c0_246] : memref<1x8x128xf32, #tpu.memory_space<vmem>>, vector<1x8x128xf32>
    %314 = vector.shape_cast %313 : vector<1x8x128xf32> to vector<8x128xf32>
    %315 = vector.shape_cast %312 : vector<8x128xf32> to vector<1x8x128xf32>
    tpu.vector_store %arg10[%c0_244, %c0_245, %c0_246], %315 {strides = array<i32>} : memref<1x8x128xf32, #tpu.memory_space<vmem>>, vector<1x8x128xf32>,
    %c0_247 = arith.constant 0 : index
    %c896 = arith.constant 896 : index
    %316 = vector.load %arg4[%c0_247, %c896] : memref<8x2560xf32, #tpu.memory_space<vmem>>, vector<8x128xf32>
    %c0_248 = arith.constant 0 : index
    %c896_249 = arith.constant 896 : index
    %317 = vector.load %arg5[%c0_248, %c896_249] : memref<8x2560xf32, #tpu.memory_space<vmem>>, vector<8x128xf32>
    %c896_i32 = arith.constant 896 : i32
    %318 = arith.addi %6, %c896_i32 : i32
    %319 = vector.broadcast %318 : i32 to vector<8x128xi32>
    %320 = arith.addi %319, %7 : vector<8x128xi32>
    %321 = vector.broadcast %3 : i32 to vector<8x128xi32>
    %322 = arith.cmpi slt, %320, %321 : vector<8x128xi32>
    %cst_250 = arith.constant 0.000000e+00 : f32
    %323 = vector.broadcast %cst_250 : f32 to vector<8x128xf32>
    %324 = arith.select %322, %316, %323 : vector<8x128xi1>, vector<8x128xf32>
    %cst_251 = arith.constant 0.000000e+00 : f32
    %325 = vector.broadcast %cst_251 : f32 to vector<8x128xf32>
    %326 = arith.select %322, %317, %325 : vector<8x128xi1>, vector<8x128xf32>
    %c0_252 = arith.constant 0 : index
    %c0_253 = arith.constant 0 : index
    %c0_254 = arith.constant 0 : index
    %327 = vector.load %arg6[%c0_252, %c0_253, %c0_254] : memref<1x8x128xf32, #tpu.memory_space<vmem>>, vector<1x8x128xf32>
    %328 = vector.shape_cast %327 : vector<1x8x128xf32> to vector<8x128xf32>
    %329 = arith.addf %328, %324 : vector<8x128xf32>
    %c0_255 = arith.constant 0 : index
    %c0_256 = arith.constant 0 : index
    %c0_257 = arith.constant 0 : index
    %330 = vector.load %arg6[%c0_255, %c0_256, %c0_257] : memref<1x8x128xf32, #tpu.memory_space<vmem>>, vector<1x8x128xf32>
    %331 = vector.shape_cast %330 : vector<1x8x128xf32> to vector<8x128xf32>
    %332 = vector.shape_cast %329 : vector<8x128xf32> to vector<1x8x128xf32>
    tpu.vector_store %arg6[%c0_255, %c0_256, %c0_257], %332 {strides = array<i32>} : memref<1x8x128xf32, #tpu.memory_space<vmem>>, vector<1x8x128xf32>,
    %c0_258 = arith.constant 0 : index
    %c0_259 = arith.constant 0 : index
    %c0_260 = arith.constant 0 : index
    %333 = vector.load %arg7[%c0_258, %c0_259, %c0_260] : memref<1x8x128xf32, #tpu.memory_space<vmem>>, vector<1x8x128xf32>
    %334 = vector.shape_cast %333 : vector<1x8x128xf32> to vector<8x128xf32>
    %335 = arith.addf %334, %326 : vector<8x128xf32>
    %c0_261 = arith.constant 0 : index
    %c0_262 = arith.constant 0 : index
    %c0_263 = arith.constant 0 : index
    %336 = vector.load %arg7[%c0_261, %c0_262, %c0_263] : memref<1x8x128xf32, #tpu.memory_space<vmem>>, vector<1x8x128xf32>
    %337 = vector.shape_cast %336 : vector<1x8x128xf32> to vector<8x128xf32>
    %338 = vector.shape_cast %335 : vector<8x128xf32> to vector<1x8x128xf32>
    tpu.vector_store %arg7[%c0_261, %c0_262, %c0_263], %338 {strides = array<i32>} : memref<1x8x128xf32, #tpu.memory_space<vmem>>, vector<1x8x128xf32>,
    %c0_264 = arith.constant 0 : index
    %c0_265 = arith.constant 0 : index
    %c0_266 = arith.constant 0 : index
    %339 = vector.load %arg8[%c0_264, %c0_265, %c0_266] : memref<1x8x128xf32, #tpu.memory_space<vmem>>, vector<1x8x128xf32>
    %340 = vector.shape_cast %339 : vector<1x8x128xf32> to vector<8x128xf32>
    %341 = arith.mulf %324, %324 : vector<8x128xf32>
    %342 = arith.addf %340, %341 : vector<8x128xf32>
    %c0_267 = arith.constant 0 : index
    %c0_268 = arith.constant 0 : index
    %c0_269 = arith.constant 0 : index
    %343 = vector.load %arg8[%c0_267, %c0_268, %c0_269] : memref<1x8x128xf32, #tpu.memory_space<vmem>>, vector<1x8x128xf32>
    %344 = vector.shape_cast %343 : vector<1x8x128xf32> to vector<8x128xf32>
    %345 = vector.shape_cast %342 : vector<8x128xf32> to vector<1x8x128xf32>
    tpu.vector_store %arg8[%c0_267, %c0_268, %c0_269], %345 {strides = array<i32>} : memref<1x8x128xf32, #tpu.memory_space<vmem>>, vector<1x8x128xf32>,
    %c0_270 = arith.constant 0 : index
    %c0_271 = arith.constant 0 : index
    %c0_272 = arith.constant 0 : index
    %346 = vector.load %arg9[%c0_270, %c0_271, %c0_272] : memref<1x8x128xf32, #tpu.memory_space<vmem>>, vector<1x8x128xf32>
    %347 = vector.shape_cast %346 : vector<1x8x128xf32> to vector<8x128xf32>
    %348 = arith.mulf %326, %326 : vector<8x128xf32>
    %349 = arith.addf %347, %348 : vector<8x128xf32>
    %c0_273 = arith.constant 0 : index
    %c0_274 = arith.constant 0 : index
    %c0_275 = arith.constant 0 : index
    %350 = vector.load %arg9[%c0_273, %c0_274, %c0_275] : memref<1x8x128xf32, #tpu.memory_space<vmem>>, vector<1x8x128xf32>
    %351 = vector.shape_cast %350 : vector<1x8x128xf32> to vector<8x128xf32>
    %352 = vector.shape_cast %349 : vector<8x128xf32> to vector<1x8x128xf32>
    tpu.vector_store %arg9[%c0_273, %c0_274, %c0_275], %352 {strides = array<i32>} : memref<1x8x128xf32, #tpu.memory_space<vmem>>, vector<1x8x128xf32>,
    %c0_276 = arith.constant 0 : index
    %c0_277 = arith.constant 0 : index
    %c0_278 = arith.constant 0 : index
    %353 = vector.load %arg10[%c0_276, %c0_277, %c0_278] : memref<1x8x128xf32, #tpu.memory_space<vmem>>, vector<1x8x128xf32>
    %354 = vector.shape_cast %353 : vector<1x8x128xf32> to vector<8x128xf32>
    %355 = arith.mulf %324, %326 : vector<8x128xf32>
    %356 = arith.addf %354, %355 : vector<8x128xf32>
    %c0_279 = arith.constant 0 : index
    %c0_280 = arith.constant 0 : index
    %c0_281 = arith.constant 0 : index
    %357 = vector.load %arg10[%c0_279, %c0_280, %c0_281] : memref<1x8x128xf32, #tpu.memory_space<vmem>>, vector<1x8x128xf32>
    %358 = vector.shape_cast %357 : vector<1x8x128xf32> to vector<8x128xf32>
    %359 = vector.shape_cast %356 : vector<8x128xf32> to vector<1x8x128xf32>
    tpu.vector_store %arg10[%c0_279, %c0_280, %c0_281], %359 {strides = array<i32>} : memref<1x8x128xf32, #tpu.memory_space<vmem>>, vector<1x8x128xf32>,
    %c0_282 = arith.constant 0 : index
    %c1024 = arith.constant 1024 : index
    %360 = vector.load %arg4[%c0_282, %c1024] : memref<8x2560xf32, #tpu.memory_space<vmem>>, vector<8x128xf32>
    %c0_283 = arith.constant 0 : index
    %c1024_284 = arith.constant 1024 : index
    %361 = vector.load %arg5[%c0_283, %c1024_284] : memref<8x2560xf32, #tpu.memory_space<vmem>>, vector<8x128xf32>
    %c1024_i32 = arith.constant 1024 : i32
    %362 = arith.addi %6, %c1024_i32 : i32
    %363 = vector.broadcast %362 : i32 to vector<8x128xi32>
    %364 = arith.addi %363, %7 : vector<8x128xi32>
    %365 = vector.broadcast %3 : i32 to vector<8x128xi32>
    %366 = arith.cmpi slt, %364, %365 : vector<8x128xi32>
    %cst_285 = arith.constant 0.000000e+00 : f32
    %367 = vector.broadcast %cst_285 : f32 to vector<8x128xf32>
    %368 = arith.select %366, %360, %367 : vector<8x128xi1>, vector<8x128xf32>
    %cst_286 = arith.constant 0.000000e+00 : f32
    %369 = vector.broadcast %cst_286 : f32 to vector<8x128xf32>
    %370 = arith.select %366, %361, %369 : vector<8x128xi1>, vector<8x128xf32>
    %c0_287 = arith.constant 0 : index
    %c0_288 = arith.constant 0 : index
    %c0_289 = arith.constant 0 : index
    %371 = vector.load %arg6[%c0_287, %c0_288, %c0_289] : memref<1x8x128xf32, #tpu.memory_space<vmem>>, vector<1x8x128xf32>
    %372 = vector.shape_cast %371 : vector<1x8x128xf32> to vector<8x128xf32>
    %373 = arith.addf %372, %368 : vector<8x128xf32>
    %c0_290 = arith.constant 0 : index
    %c0_291 = arith.constant 0 : index
    %c0_292 = arith.constant 0 : index
    %374 = vector.load %arg6[%c0_290, %c0_291, %c0_292] : memref<1x8x128xf32, #tpu.memory_space<vmem>>, vector<1x8x128xf32>
    %375 = vector.shape_cast %374 : vector<1x8x128xf32> to vector<8x128xf32>
    %376 = vector.shape_cast %373 : vector<8x128xf32> to vector<1x8x128xf32>
    tpu.vector_store %arg6[%c0_290, %c0_291, %c0_292], %376 {strides = array<i32>} : memref<1x8x128xf32, #tpu.memory_space<vmem>>, vector<1x8x128xf32>,
    %c0_293 = arith.constant 0 : index
    %c0_294 = arith.constant 0 : index
    %c0_295 = arith.constant 0 : index
    %377 = vector.load %arg7[%c0_293, %c0_294, %c0_295] : memref<1x8x128xf32, #tpu.memory_space<vmem>>, vector<1x8x128xf32>
    %378 = vector.shape_cast %377 : vector<1x8x128xf32> to vector<8x128xf32>
    %379 = arith.addf %378, %370 : vector<8x128xf32>
    %c0_296 = arith.constant 0 : index
    %c0_297 = arith.constant 0 : index
    %c0_298 = arith.constant 0 : index
    %380 = vector.load %arg7[%c0_296, %c0_297, %c0_298] : memref<1x8x128xf32, #tpu.memory_space<vmem>>, vector<1x8x128xf32>
    %381 = vector.shape_cast %380 : vector<1x8x128xf32> to vector<8x128xf32>
    %382 = vector.shape_cast %379 : vector<8x128xf32> to vector<1x8x128xf32>
    tpu.vector_store %arg7[%c0_296, %c0_297, %c0_298], %382 {strides = array<i32>} : memref<1x8x128xf32, #tpu.memory_space<vmem>>, vector<1x8x128xf32>,
    %c0_299 = arith.constant 0 : index
    %c0_300 = arith.constant 0 : index
    %c0_301 = arith.constant 0 : index
    %383 = vector.load %arg8[%c0_299, %c0_300, %c0_301] : memref<1x8x128xf32, #tpu.memory_space<vmem>>, vector<1x8x128xf32>
    %384 = vector.shape_cast %383 : vector<1x8x128xf32> to vector<8x128xf32>
    %385 = arith.mulf %368, %368 : vector<8x128xf32>
    %386 = arith.addf %384, %385 : vector<8x128xf32>
    %c0_302 = arith.constant 0 : index
    %c0_303 = arith.constant 0 : index
    %c0_304 = arith.constant 0 : index
    %387 = vector.load %arg8[%c0_302, %c0_303, %c0_304] : memref<1x8x128xf32, #tpu.memory_space<vmem>>, vector<1x8x128xf32>
    %388 = vector.shape_cast %387 : vector<1x8x128xf32> to vector<8x128xf32>
    %389 = vector.shape_cast %386 : vector<8x128xf32> to vector<1x8x128xf32>
    tpu.vector_store %arg8[%c0_302, %c0_303, %c0_304], %389 {strides = array<i32>} : memref<1x8x128xf32, #tpu.memory_space<vmem>>, vector<1x8x128xf32>,
    %c0_305 = arith.constant 0 : index
    %c0_306 = arith.constant 0 : index
    %c0_307 = arith.constant 0 : index
    %390 = vector.load %arg9[%c0_305, %c0_306, %c0_307] : memref<1x8x128xf32, #tpu.memory_space<vmem>>, vector<1x8x128xf32>
    %391 = vector.shape_cast %390 : vector<1x8x128xf32> to vector<8x128xf32>
    %392 = arith.mulf %370, %370 : vector<8x128xf32>
    %393 = arith.addf %391, %392 : vector<8x128xf32>
    %c0_308 = arith.constant 0 : index
    %c0_309 = arith.constant 0 : index
    %c0_310 = arith.constant 0 : index
    %394 = vector.load %arg9[%c0_308, %c0_309, %c0_310] : memref<1x8x128xf32, #tpu.memory_space<vmem>>, vector<1x8x128xf32>
    %395 = vector.shape_cast %394 : vector<1x8x128xf32> to vector<8x128xf32>
    %396 = vector.shape_cast %393 : vector<8x128xf32> to vector<1x8x128xf32>
    tpu.vector_store %arg9[%c0_308, %c0_309, %c0_310], %396 {strides = array<i32>} : memref<1x8x128xf32, #tpu.memory_space<vmem>>, vector<1x8x128xf32>,
    %c0_311 = arith.constant 0 : index
    %c0_312 = arith.constant 0 : index
    %c0_313 = arith.constant 0 : index
    %397 = vector.load %arg10[%c0_311, %c0_312, %c0_313] : memref<1x8x128xf32, #tpu.memory_space<vmem>>, vector<1x8x128xf32>
    %398 = vector.shape_cast %397 : vector<1x8x128xf32> to vector<8x128xf32>
    %399 = arith.mulf %368, %370 : vector<8x128xf32>
    %400 = arith.addf %398, %399 : vector<8x128xf32>
    %c0_314 = arith.constant 0 : index
    %c0_315 = arith.constant 0 : index
    %c0_316 = arith.constant 0 : index
    %401 = vector.load %arg10[%c0_314, %c0_315, %c0_316] : memref<1x8x128xf32, #tpu.memory_space<vmem>>, vector<1x8x128xf32>
    %402 = vector.shape_cast %401 : vector<1x8x128xf32> to vector<8x128xf32>
    %403 = vector.shape_cast %400 : vector<8x128xf32> to vector<1x8x128xf32>
    tpu.vector_store %arg10[%c0_314, %c0_315, %c0_316], %403 {strides = array<i32>} : memref<1x8x128xf32, #tpu.memory_space<vmem>>, vector<1x8x128xf32>,
    %c0_317 = arith.constant 0 : index
    %c1152 = arith.constant 1152 : index
    %404 = vector.load %arg4[%c0_317, %c1152] : memref<8x2560xf32, #tpu.memory_space<vmem>>, vector<8x128xf32>
    %c0_318 = arith.constant 0 : index
    %c1152_319 = arith.constant 1152 : index
    %405 = vector.load %arg5[%c0_318, %c1152_319] : memref<8x2560xf32, #tpu.memory_space<vmem>>, vector<8x128xf32>
    %c1152_i32 = arith.constant 1152 : i32
    %406 = arith.addi %6, %c1152_i32 : i32
    %407 = vector.broadcast %406 : i32 to vector<8x128xi32>
    %408 = arith.addi %407, %7 : vector<8x128xi32>
    %409 = vector.broadcast %3 : i32 to vector<8x128xi32>
    %410 = arith.cmpi slt, %408, %409 : vector<8x128xi32>
    %cst_320 = arith.constant 0.000000e+00 : f32
    %411 = vector.broadcast %cst_320 : f32 to vector<8x128xf32>
    %412 = arith.select %410, %404, %411 : vector<8x128xi1>, vector<8x128xf32>
    %cst_321 = arith.constant 0.000000e+00 : f32
    %413 = vector.broadcast %cst_321 : f32 to vector<8x128xf32>
    %414 = arith.select %410, %405, %413 : vector<8x128xi1>, vector<8x128xf32>
    %c0_322 = arith.constant 0 : index
    %c0_323 = arith.constant 0 : index
    %c0_324 = arith.constant 0 : index
    %415 = vector.load %arg6[%c0_322, %c0_323, %c0_324] : memref<1x8x128xf32, #tpu.memory_space<vmem>>, vector<1x8x128xf32>
    %416 = vector.shape_cast %415 : vector<1x8x128xf32> to vector<8x128xf32>
    %417 = arith.addf %416, %412 : vector<8x128xf32>
    %c0_325 = arith.constant 0 : index
    %c0_326 = arith.constant 0 : index
    %c0_327 = arith.constant 0 : index
    %418 = vector.load %arg6[%c0_325, %c0_326, %c0_327] : memref<1x8x128xf32, #tpu.memory_space<vmem>>, vector<1x8x128xf32>
    %419 = vector.shape_cast %418 : vector<1x8x128xf32> to vector<8x128xf32>
    %420 = vector.shape_cast %417 : vector<8x128xf32> to vector<1x8x128xf32>
    tpu.vector_store %arg6[%c0_325, %c0_326, %c0_327], %420 {strides = array<i32>} : memref<1x8x128xf32, #tpu.memory_space<vmem>>, vector<1x8x128xf32>,
    %c0_328 = arith.constant 0 : index
    %c0_329 = arith.constant 0 : index
    %c0_330 = arith.constant 0 : index
    %421 = vector.load %arg7[%c0_328, %c0_329, %c0_330] : memref<1x8x128xf32, #tpu.memory_space<vmem>>, vector<1x8x128xf32>
    %422 = vector.shape_cast %421 : vector<1x8x128xf32> to vector<8x128xf32>
    %423 = arith.addf %422, %414 : vector<8x128xf32>
    %c0_331 = arith.constant 0 : index
    %c0_332 = arith.constant 0 : index
    %c0_333 = arith.constant 0 : index
    %424 = vector.load %arg7[%c0_331, %c0_332, %c0_333] : memref<1x8x128xf32, #tpu.memory_space<vmem>>, vector<1x8x128xf32>
    %425 = vector.shape_cast %424 : vector<1x8x128xf32> to vector<8x128xf32>
    %426 = vector.shape_cast %423 : vector<8x128xf32> to vector<1x8x128xf32>
    tpu.vector_store %arg7[%c0_331, %c0_332, %c0_333], %426 {strides = array<i32>} : memref<1x8x128xf32, #tpu.memory_space<vmem>>, vector<1x8x128xf32>,
    %c0_334 = arith.constant 0 : index
    %c0_335 = arith.constant 0 : index
    %c0_336 = arith.constant 0 : index
    %427 = vector.load %arg8[%c0_334, %c0_335, %c0_336] : memref<1x8x128xf32, #tpu.memory_space<vmem>>, vector<1x8x128xf32>
    %428 = vector.shape_cast %427 : vector<1x8x128xf32> to vector<8x128xf32>
    %429 = arith.mulf %412, %412 : vector<8x128xf32>
    %430 = arith.addf %428, %429 : vector<8x128xf32>
    %c0_337 = arith.constant 0 : index
    %c0_338 = arith.constant 0 : index
    %c0_339 = arith.constant 0 : index
    %431 = vector.load %arg8[%c0_337, %c0_338, %c0_339] : memref<1x8x128xf32, #tpu.memory_space<vmem>>, vector<1x8x128xf32>
    %432 = vector.shape_cast %431 : vector<1x8x128xf32> to vector<8x128xf32>
    %433 = vector.shape_cast %430 : vector<8x128xf32> to vector<1x8x128xf32>
    tpu.vector_store %arg8[%c0_337, %c0_338, %c0_339], %433 {strides = array<i32>} : memref<1x8x128xf32, #tpu.memory_space<vmem>>, vector<1x8x128xf32>,
    %c0_340 = arith.constant 0 : index
    %c0_341 = arith.constant 0 : index
    %c0_342 = arith.constant 0 : index
    %434 = vector.load %arg9[%c0_340, %c0_341, %c0_342] : memref<1x8x128xf32, #tpu.memory_space<vmem>>, vector<1x8x128xf32>
    %435 = vector.shape_cast %434 : vector<1x8x128xf32> to vector<8x128xf32>
    %436 = arith.mulf %414, %414 : vector<8x128xf32>
    %437 = arith.addf %435, %436 : vector<8x128xf32>
    %c0_343 = arith.constant 0 : index
    %c0_344 = arith.constant 0 : index
    %c0_345 = arith.constant 0 : index
    %438 = vector.load %arg9[%c0_343, %c0_344, %c0_345] : memref<1x8x128xf32, #tpu.memory_space<vmem>>, vector<1x8x128xf32>
    %439 = vector.shape_cast %438 : vector<1x8x128xf32> to vector<8x128xf32>
    %440 = vector.shape_cast %437 : vector<8x128xf32> to vector<1x8x128xf32>
    tpu.vector_store %arg9[%c0_343, %c0_344, %c0_345], %440 {strides = array<i32>} : memref<1x8x128xf32, #tpu.memory_space<vmem>>, vector<1x8x128xf32>,
    %c0_346 = arith.constant 0 : index
    %c0_347 = arith.constant 0 : index
    %c0_348 = arith.constant 0 : index
    %441 = vector.load %arg10[%c0_346, %c0_347, %c0_348] : memref<1x8x128xf32, #tpu.memory_space<vmem>>, vector<1x8x128xf32>
    %442 = vector.shape_cast %441 : vector<1x8x128xf32> to vector<8x128xf32>
    %443 = arith.mulf %412, %414 : vector<8x128xf32>
    %444 = arith.addf %442, %443 : vector<8x128xf32>
    %c0_349 = arith.constant 0 : index
    %c0_350 = arith.constant 0 : index
    %c0_351 = arith.constant 0 : index
    %445 = vector.load %arg10[%c0_349, %c0_350, %c0_351] : memref<1x8x128xf32, #tpu.memory_space<vmem>>, vector<1x8x128xf32>
    %446 = vector.shape_cast %445 : vector<1x8x128xf32> to vector<8x128xf32>
    %447 = vector.shape_cast %444 : vector<8x128xf32> to vector<1x8x128xf32>
    tpu.vector_store %arg10[%c0_349, %c0_350, %c0_351], %447 {strides = array<i32>} : memref<1x8x128xf32, #tpu.memory_space<vmem>>, vector<1x8x128xf32>,
    %c0_352 = arith.constant 0 : index
    %c1280 = arith.constant 1280 : index
    %448 = vector.load %arg4[%c0_352, %c1280] : memref<8x2560xf32, #tpu.memory_space<vmem>>, vector<8x128xf32>
    %c0_353 = arith.constant 0 : index
    %c1280_354 = arith.constant 1280 : index
    %449 = vector.load %arg5[%c0_353, %c1280_354] : memref<8x2560xf32, #tpu.memory_space<vmem>>, vector<8x128xf32>
    %c1280_i32 = arith.constant 1280 : i32
    %450 = arith.addi %6, %c1280_i32 : i32
    %451 = vector.broadcast %450 : i32 to vector<8x128xi32>
    %452 = arith.addi %451, %7 : vector<8x128xi32>
    %453 = vector.broadcast %3 : i32 to vector<8x128xi32>
    %454 = arith.cmpi slt, %452, %453 : vector<8x128xi32>
    %cst_355 = arith.constant 0.000000e+00 : f32
    %455 = vector.broadcast %cst_355 : f32 to vector<8x128xf32>
    %456 = arith.select %454, %448, %455 : vector<8x128xi1>, vector<8x128xf32>
    %cst_356 = arith.constant 0.000000e+00 : f32
    %457 = vector.broadcast %cst_356 : f32 to vector<8x128xf32>
    %458 = arith.select %454, %449, %457 : vector<8x128xi1>, vector<8x128xf32>
    %c0_357 = arith.constant 0 : index
    %c0_358 = arith.constant 0 : index
    %c0_359 = arith.constant 0 : index
    %459 = vector.load %arg6[%c0_357, %c0_358, %c0_359] : memref<1x8x128xf32, #tpu.memory_space<vmem>>, vector<1x8x128xf32>
    %460 = vector.shape_cast %459 : vector<1x8x128xf32> to vector<8x128xf32>
    %461 = arith.addf %460, %456 : vector<8x128xf32>
    %c0_360 = arith.constant 0 : index
    %c0_361 = arith.constant 0 : index
    %c0_362 = arith.constant 0 : index
    %462 = vector.load %arg6[%c0_360, %c0_361, %c0_362] : memref<1x8x128xf32, #tpu.memory_space<vmem>>, vector<1x8x128xf32>
    %463 = vector.shape_cast %462 : vector<1x8x128xf32> to vector<8x128xf32>
    %464 = vector.shape_cast %461 : vector<8x128xf32> to vector<1x8x128xf32>
    tpu.vector_store %arg6[%c0_360, %c0_361, %c0_362], %464 {strides = array<i32>} : memref<1x8x128xf32, #tpu.memory_space<vmem>>, vector<1x8x128xf32>,
    %c0_363 = arith.constant 0 : index
    %c0_364 = arith.constant 0 : index
    %c0_365 = arith.constant 0 : index
    %465 = vector.load %arg7[%c0_363, %c0_364, %c0_365] : memref<1x8x128xf32, #tpu.memory_space<vmem>>, vector<1x8x128xf32>
    %466 = vector.shape_cast %465 : vector<1x8x128xf32> to vector<8x128xf32>
    %467 = arith.addf %466, %458 : vector<8x128xf32>
    %c0_366 = arith.constant 0 : index
    %c0_367 = arith.constant 0 : index
    %c0_368 = arith.constant 0 : index
    %468 = vector.load %arg7[%c0_366, %c0_367, %c0_368] : memref<1x8x128xf32, #tpu.memory_space<vmem>>, vector<1x8x128xf32>
    %469 = vector.shape_cast %468 : vector<1x8x128xf32> to vector<8x128xf32>
    %470 = vector.shape_cast %467 : vector<8x128xf32> to vector<1x8x128xf32>
    tpu.vector_store %arg7[%c0_366, %c0_367, %c0_368], %470 {strides = array<i32>} : memref<1x8x128xf32, #tpu.memory_space<vmem>>, vector<1x8x128xf32>,
    %c0_369 = arith.constant 0 : index
    %c0_370 = arith.constant 0 : index
    %c0_371 = arith.constant 0 : index
    %471 = vector.load %arg8[%c0_369, %c0_370, %c0_371] : memref<1x8x128xf32, #tpu.memory_space<vmem>>, vector<1x8x128xf32>
    %472 = vector.shape_cast %471 : vector<1x8x128xf32> to vector<8x128xf32>
    %473 = arith.mulf %456, %456 : vector<8x128xf32>
    %474 = arith.addf %472, %473 : vector<8x128xf32>
    %c0_372 = arith.constant 0 : index
    %c0_373 = arith.constant 0 : index
    %c0_374 = arith.constant 0 : index
    %475 = vector.load %arg8[%c0_372, %c0_373, %c0_374] : memref<1x8x128xf32, #tpu.memory_space<vmem>>, vector<1x8x128xf32>
    %476 = vector.shape_cast %475 : vector<1x8x128xf32> to vector<8x128xf32>
    %477 = vector.shape_cast %474 : vector<8x128xf32> to vector<1x8x128xf32>
    tpu.vector_store %arg8[%c0_372, %c0_373, %c0_374], %477 {strides = array<i32>} : memref<1x8x128xf32, #tpu.memory_space<vmem>>, vector<1x8x128xf32>,
    %c0_375 = arith.constant 0 : index
    %c0_376 = arith.constant 0 : index
    %c0_377 = arith.constant 0 : index
    %478 = vector.load %arg9[%c0_375, %c0_376, %c0_377] : memref<1x8x128xf32, #tpu.memory_space<vmem>>, vector<1x8x128xf32>
    %479 = vector.shape_cast %478 : vector<1x8x128xf32> to vector<8x128xf32>
    %480 = arith.mulf %458, %458 : vector<8x128xf32>
    %481 = arith.addf %479, %480 : vector<8x128xf32>
    %c0_378 = arith.constant 0 : index
    %c0_379 = arith.constant 0 : index
    %c0_380 = arith.constant 0 : index
    %482 = vector.load %arg9[%c0_378, %c0_379, %c0_380] : memref<1x8x128xf32, #tpu.memory_space<vmem>>, vector<1x8x128xf32>
    %483 = vector.shape_cast %482 : vector<1x8x128xf32> to vector<8x128xf32>
    %484 = vector.shape_cast %481 : vector<8x128xf32> to vector<1x8x128xf32>
    tpu.vector_store %arg9[%c0_378, %c0_379, %c0_380], %484 {strides = array<i32>} : memref<1x8x128xf32, #tpu.memory_space<vmem>>, vector<1x8x128xf32>,
    %c0_381 = arith.constant 0 : index
    %c0_382 = arith.constant 0 : index
    %c0_383 = arith.constant 0 : index
    %485 = vector.load %arg10[%c0_381, %c0_382, %c0_383] : memref<1x8x128xf32, #tpu.memory_space<vmem>>, vector<1x8x128xf32>
    %486 = vector.shape_cast %485 : vector<1x8x128xf32> to vector<8x128xf32>
    %487 = arith.mulf %456, %458 : vector<8x128xf32>
    %488 = arith.addf %486, %487 : vector<8x128xf32>
    %c0_384 = arith.constant 0 : index
    %c0_385 = arith.constant 0 : index
    %c0_386 = arith.constant 0 : index
    %489 = vector.load %arg10[%c0_384, %c0_385, %c0_386] : memref<1x8x128xf32, #tpu.memory_space<vmem>>, vector<1x8x128xf32>
    %490 = vector.shape_cast %489 : vector<1x8x128xf32> to vector<8x128xf32>
    %491 = vector.shape_cast %488 : vector<8x128xf32> to vector<1x8x128xf32>
    tpu.vector_store %arg10[%c0_384, %c0_385, %c0_386], %491 {strides = array<i32>} : memref<1x8x128xf32, #tpu.memory_space<vmem>>, vector<1x8x128xf32>,
    %c0_387 = arith.constant 0 : index
    %c1408 = arith.constant 1408 : index
    %492 = vector.load %arg4[%c0_387, %c1408] : memref<8x2560xf32, #tpu.memory_space<vmem>>, vector<8x128xf32>
    %c0_388 = arith.constant 0 : index
    %c1408_389 = arith.constant 1408 : index
    %493 = vector.load %arg5[%c0_388, %c1408_389] : memref<8x2560xf32, #tpu.memory_space<vmem>>, vector<8x128xf32>
    %c1408_i32 = arith.constant 1408 : i32
    %494 = arith.addi %6, %c1408_i32 : i32
    %495 = vector.broadcast %494 : i32 to vector<8x128xi32>
    %496 = arith.addi %495, %7 : vector<8x128xi32>
    %497 = vector.broadcast %3 : i32 to vector<8x128xi32>
    %498 = arith.cmpi slt, %496, %497 : vector<8x128xi32>
    %cst_390 = arith.constant 0.000000e+00 : f32
    %499 = vector.broadcast %cst_390 : f32 to vector<8x128xf32>
    %500 = arith.select %498, %492, %499 : vector<8x128xi1>, vector<8x128xf32>
    %cst_391 = arith.constant 0.000000e+00 : f32
    %501 = vector.broadcast %cst_391 : f32 to vector<8x128xf32>
    %502 = arith.select %498, %493, %501 : vector<8x128xi1>, vector<8x128xf32>
    %c0_392 = arith.constant 0 : index
    %c0_393 = arith.constant 0 : index
    %c0_394 = arith.constant 0 : index
    %503 = vector.load %arg6[%c0_392, %c0_393, %c0_394] : memref<1x8x128xf32, #tpu.memory_space<vmem>>, vector<1x8x128xf32>
    %504 = vector.shape_cast %503 : vector<1x8x128xf32> to vector<8x128xf32>
    %505 = arith.addf %504, %500 : vector<8x128xf32>
    %c0_395 = arith.constant 0 : index
    %c0_396 = arith.constant 0 : index
    %c0_397 = arith.constant 0 : index
    %506 = vector.load %arg6[%c0_395, %c0_396, %c0_397] : memref<1x8x128xf32, #tpu.memory_space<vmem>>, vector<1x8x128xf32>
    %507 = vector.shape_cast %506 : vector<1x8x128xf32> to vector<8x128xf32>
    %508 = vector.shape_cast %505 : vector<8x128xf32> to vector<1x8x128xf32>
    tpu.vector_store %arg6[%c0_395, %c0_396, %c0_397], %508 {strides = array<i32>} : memref<1x8x128xf32, #tpu.memory_space<vmem>>, vector<1x8x128xf32>,
    %c0_398 = arith.constant 0 : index
    %c0_399 = arith.constant 0 : index
    %c0_400 = arith.constant 0 : index
    %509 = vector.load %arg7[%c0_398, %c0_399, %c0_400] : memref<1x8x128xf32, #tpu.memory_space<vmem>>, vector<1x8x128xf32>
    %510 = vector.shape_cast %509 : vector<1x8x128xf32> to vector<8x128xf32>
    %511 = arith.addf %510, %502 : vector<8x128xf32>
    %c0_401 = arith.constant 0 : index
    %c0_402 = arith.constant 0 : index
    %c0_403 = arith.constant 0 : index
    %512 = vector.load %arg7[%c0_401, %c0_402, %c0_403] : memref<1x8x128xf32, #tpu.memory_space<vmem>>, vector<1x8x128xf32>
    %513 = vector.shape_cast %512 : vector<1x8x128xf32> to vector<8x128xf32>
    %514 = vector.shape_cast %511 : vector<8x128xf32> to vector<1x8x128xf32>
    tpu.vector_store %arg7[%c0_401, %c0_402, %c0_403], %514 {strides = array<i32>} : memref<1x8x128xf32, #tpu.memory_space<vmem>>, vector<1x8x128xf32>,
    %c0_404 = arith.constant 0 : index
    %c0_405 = arith.constant 0 : index
    %c0_406 = arith.constant 0 : index
    %515 = vector.load %arg8[%c0_404, %c0_405, %c0_406] : memref<1x8x128xf32, #tpu.memory_space<vmem>>, vector<1x8x128xf32>
    %516 = vector.shape_cast %515 : vector<1x8x128xf32> to vector<8x128xf32>
    %517 = arith.mulf %500, %500 : vector<8x128xf32>
    %518 = arith.addf %516, %517 : vector<8x128xf32>
    %c0_407 = arith.constant 0 : index
    %c0_408 = arith.constant 0 : index
    %c0_409 = arith.constant 0 : index
    %519 = vector.load %arg8[%c0_407, %c0_408, %c0_409] : memref<1x8x128xf32, #tpu.memory_space<vmem>>, vector<1x8x128xf32>
    %520 = vector.shape_cast %519 : vector<1x8x128xf32> to vector<8x128xf32>
    %521 = vector.shape_cast %518 : vector<8x128xf32> to vector<1x8x128xf32>
    tpu.vector_store %arg8[%c0_407, %c0_408, %c0_409], %521 {strides = array<i32>} : memref<1x8x128xf32, #tpu.memory_space<vmem>>, vector<1x8x128xf32>,
    %c0_410 = arith.constant 0 : index
    %c0_411 = arith.constant 0 : index
    %c0_412 = arith.constant 0 : index
    %522 = vector.load %arg9[%c0_410, %c0_411, %c0_412] : memref<1x8x128xf32, #tpu.memory_space<vmem>>, vector<1x8x128xf32>
    %523 = vector.shape_cast %522 : vector<1x8x128xf32> to vector<8x128xf32>
    %524 = arith.mulf %502, %502 : vector<8x128xf32>
    %525 = arith.addf %523, %524 : vector<8x128xf32>
    %c0_413 = arith.constant 0 : index
    %c0_414 = arith.constant 0 : index
    %c0_415 = arith.constant 0 : index
    %526 = vector.load %arg9[%c0_413, %c0_414, %c0_415] : memref<1x8x128xf32, #tpu.memory_space<vmem>>, vector<1x8x128xf32>
    %527 = vector.shape_cast %526 : vector<1x8x128xf32> to vector<8x128xf32>
    %528 = vector.shape_cast %525 : vector<8x128xf32> to vector<1x8x128xf32>
    tpu.vector_store %arg9[%c0_413, %c0_414, %c0_415], %528 {strides = array<i32>} : memref<1x8x128xf32, #tpu.memory_space<vmem>>, vector<1x8x128xf32>,
    %c0_416 = arith.constant 0 : index
    %c0_417 = arith.constant 0 : index
    %c0_418 = arith.constant 0 : index
    %529 = vector.load %arg10[%c0_416, %c0_417, %c0_418] : memref<1x8x128xf32, #tpu.memory_space<vmem>>, vector<1x8x128xf32>
    %530 = vector.shape_cast %529 : vector<1x8x128xf32> to vector<8x128xf32>
    %531 = arith.mulf %500, %502 : vector<8x128xf32>
    %532 = arith.addf %530, %531 : vector<8x128xf32>
    %c0_419 = arith.constant 0 : index
    %c0_420 = arith.constant 0 : index
    %c0_421 = arith.constant 0 : index
    %533 = vector.load %arg10[%c0_419, %c0_420, %c0_421] : memref<1x8x128xf32, #tpu.memory_space<vmem>>, vector<1x8x128xf32>
    %534 = vector.shape_cast %533 : vector<1x8x128xf32> to vector<8x128xf32>
    %535 = vector.shape_cast %532 : vector<8x128xf32> to vector<1x8x128xf32>
    tpu.vector_store %arg10[%c0_419, %c0_420, %c0_421], %535 {strides = array<i32>} : memref<1x8x128xf32, #tpu.memory_space<vmem>>, vector<1x8x128xf32>,
    %c0_422 = arith.constant 0 : index
    %c1536 = arith.constant 1536 : index
    %536 = vector.load %arg4[%c0_422, %c1536] : memref<8x2560xf32, #tpu.memory_space<vmem>>, vector<8x128xf32>
    %c0_423 = arith.constant 0 : index
    %c1536_424 = arith.constant 1536 : index
    %537 = vector.load %arg5[%c0_423, %c1536_424] : memref<8x2560xf32, #tpu.memory_space<vmem>>, vector<8x128xf32>
    %c1536_i32 = arith.constant 1536 : i32
    %538 = arith.addi %6, %c1536_i32 : i32
    %539 = vector.broadcast %538 : i32 to vector<8x128xi32>
    %540 = arith.addi %539, %7 : vector<8x128xi32>
    %541 = vector.broadcast %3 : i32 to vector<8x128xi32>
    %542 = arith.cmpi slt, %540, %541 : vector<8x128xi32>
    %cst_425 = arith.constant 0.000000e+00 : f32
    %543 = vector.broadcast %cst_425 : f32 to vector<8x128xf32>
    %544 = arith.select %542, %536, %543 : vector<8x128xi1>, vector<8x128xf32>
    %cst_426 = arith.constant 0.000000e+00 : f32
    %545 = vector.broadcast %cst_426 : f32 to vector<8x128xf32>
    %546 = arith.select %542, %537, %545 : vector<8x128xi1>, vector<8x128xf32>
    %c0_427 = arith.constant 0 : index
    %c0_428 = arith.constant 0 : index
    %c0_429 = arith.constant 0 : index
    %547 = vector.load %arg6[%c0_427, %c0_428, %c0_429] : memref<1x8x128xf32, #tpu.memory_space<vmem>>, vector<1x8x128xf32>
    %548 = vector.shape_cast %547 : vector<1x8x128xf32> to vector<8x128xf32>
    %549 = arith.addf %548, %544 : vector<8x128xf32>
    %c0_430 = arith.constant 0 : index
    %c0_431 = arith.constant 0 : index
    %c0_432 = arith.constant 0 : index
    %550 = vector.load %arg6[%c0_430, %c0_431, %c0_432] : memref<1x8x128xf32, #tpu.memory_space<vmem>>, vector<1x8x128xf32>
    %551 = vector.shape_cast %550 : vector<1x8x128xf32> to vector<8x128xf32>
    %552 = vector.shape_cast %549 : vector<8x128xf32> to vector<1x8x128xf32>
    tpu.vector_store %arg6[%c0_430, %c0_431, %c0_432], %552 {strides = array<i32>} : memref<1x8x128xf32, #tpu.memory_space<vmem>>, vector<1x8x128xf32>,
    %c0_433 = arith.constant 0 : index
    %c0_434 = arith.constant 0 : index
    %c0_435 = arith.constant 0 : index
    %553 = vector.load %arg7[%c0_433, %c0_434, %c0_435] : memref<1x8x128xf32, #tpu.memory_space<vmem>>, vector<1x8x128xf32>
    %554 = vector.shape_cast %553 : vector<1x8x128xf32> to vector<8x128xf32>
    %555 = arith.addf %554, %546 : vector<8x128xf32>
    %c0_436 = arith.constant 0 : index
    %c0_437 = arith.constant 0 : index
    %c0_438 = arith.constant 0 : index
    %556 = vector.load %arg7[%c0_436, %c0_437, %c0_438] : memref<1x8x128xf32, #tpu.memory_space<vmem>>, vector<1x8x128xf32>
    %557 = vector.shape_cast %556 : vector<1x8x128xf32> to vector<8x128xf32>
    %558 = vector.shape_cast %555 : vector<8x128xf32> to vector<1x8x128xf32>
    tpu.vector_store %arg7[%c0_436, %c0_437, %c0_438], %558 {strides = array<i32>} : memref<1x8x128xf32, #tpu.memory_space<vmem>>, vector<1x8x128xf32>,
    %c0_439 = arith.constant 0 : index
    %c0_440 = arith.constant 0 : index
    %c0_441 = arith.constant 0 : index
    %559 = vector.load %arg8[%c0_439, %c0_440, %c0_441] : memref<1x8x128xf32, #tpu.memory_space<vmem>>, vector<1x8x128xf32>
    %560 = vector.shape_cast %559 : vector<1x8x128xf32> to vector<8x128xf32>
    %561 = arith.mulf %544, %544 : vector<8x128xf32>
    %562 = arith.addf %560, %561 : vector<8x128xf32>
    %c0_442 = arith.constant 0 : index
    %c0_443 = arith.constant 0 : index
    %c0_444 = arith.constant 0 : index
    %563 = vector.load %arg8[%c0_442, %c0_443, %c0_444] : memref<1x8x128xf32, #tpu.memory_space<vmem>>, vector<1x8x128xf32>
    %564 = vector.shape_cast %563 : vector<1x8x128xf32> to vector<8x128xf32>
    %565 = vector.shape_cast %562 : vector<8x128xf32> to vector<1x8x128xf32>
    tpu.vector_store %arg8[%c0_442, %c0_443, %c0_444], %565 {strides = array<i32>} : memref<1x8x128xf32, #tpu.memory_space<vmem>>, vector<1x8x128xf32>,
    %c0_445 = arith.constant 0 : index
    %c0_446 = arith.constant 0 : index
    %c0_447 = arith.constant 0 : index
    %566 = vector.load %arg9[%c0_445, %c0_446, %c0_447] : memref<1x8x128xf32, #tpu.memory_space<vmem>>, vector<1x8x128xf32>
    %567 = vector.shape_cast %566 : vector<1x8x128xf32> to vector<8x128xf32>
    %568 = arith.mulf %546, %546 : vector<8x128xf32>
    %569 = arith.addf %567, %568 : vector<8x128xf32>
    %c0_448 = arith.constant 0 : index
    %c0_449 = arith.constant 0 : index
    %c0_450 = arith.constant 0 : index
    %570 = vector.load %arg9[%c0_448, %c0_449, %c0_450] : memref<1x8x128xf32, #tpu.memory_space<vmem>>, vector<1x8x128xf32>
    %571 = vector.shape_cast %570 : vector<1x8x128xf32> to vector<8x128xf32>
    %572 = vector.shape_cast %569 : vector<8x128xf32> to vector<1x8x128xf32>
    tpu.vector_store %arg9[%c0_448, %c0_449, %c0_450], %572 {strides = array<i32>} : memref<1x8x128xf32, #tpu.memory_space<vmem>>, vector<1x8x128xf32>,
    %c0_451 = arith.constant 0 : index
    %c0_452 = arith.constant 0 : index
    %c0_453 = arith.constant 0 : index
    %573 = vector.load %arg10[%c0_451, %c0_452, %c0_453] : memref<1x8x128xf32, #tpu.memory_space<vmem>>, vector<1x8x128xf32>
    %574 = vector.shape_cast %573 : vector<1x8x128xf32> to vector<8x128xf32>
    %575 = arith.mulf %544, %546 : vector<8x128xf32>
    %576 = arith.addf %574, %575 : vector<8x128xf32>
    %c0_454 = arith.constant 0 : index
    %c0_455 = arith.constant 0 : index
    %c0_456 = arith.constant 0 : index
    %577 = vector.load %arg10[%c0_454, %c0_455, %c0_456] : memref<1x8x128xf32, #tpu.memory_space<vmem>>, vector<1x8x128xf32>
    %578 = vector.shape_cast %577 : vector<1x8x128xf32> to vector<8x128xf32>
    %579 = vector.shape_cast %576 : vector<8x128xf32> to vector<1x8x128xf32>
    tpu.vector_store %arg10[%c0_454, %c0_455, %c0_456], %579 {strides = array<i32>} : memref<1x8x128xf32, #tpu.memory_space<vmem>>, vector<1x8x128xf32>,
    %c0_457 = arith.constant 0 : index
    %c1664 = arith.constant 1664 : index
    %580 = vector.load %arg4[%c0_457, %c1664] : memref<8x2560xf32, #tpu.memory_space<vmem>>, vector<8x128xf32>
    %c0_458 = arith.constant 0 : index
    %c1664_459 = arith.constant 1664 : index
    %581 = vector.load %arg5[%c0_458, %c1664_459] : memref<8x2560xf32, #tpu.memory_space<vmem>>, vector<8x128xf32>
    %c1664_i32 = arith.constant 1664 : i32
    %582 = arith.addi %6, %c1664_i32 : i32
    %583 = vector.broadcast %582 : i32 to vector<8x128xi32>
    %584 = arith.addi %583, %7 : vector<8x128xi32>
    %585 = vector.broadcast %3 : i32 to vector<8x128xi32>
    %586 = arith.cmpi slt, %584, %585 : vector<8x128xi32>
    %cst_460 = arith.constant 0.000000e+00 : f32
    %587 = vector.broadcast %cst_460 : f32 to vector<8x128xf32>
    %588 = arith.select %586, %580, %587 : vector<8x128xi1>, vector<8x128xf32>
    %cst_461 = arith.constant 0.000000e+00 : f32
    %589 = vector.broadcast %cst_461 : f32 to vector<8x128xf32>
    %590 = arith.select %586, %581, %589 : vector<8x128xi1>, vector<8x128xf32>
    %c0_462 = arith.constant 0 : index
    %c0_463 = arith.constant 0 : index
    %c0_464 = arith.constant 0 : index
    %591 = vector.load %arg6[%c0_462, %c0_463, %c0_464] : memref<1x8x128xf32, #tpu.memory_space<vmem>>, vector<1x8x128xf32>
    %592 = vector.shape_cast %591 : vector<1x8x128xf32> to vector<8x128xf32>
    %593 = arith.addf %592, %588 : vector<8x128xf32>
    %c0_465 = arith.constant 0 : index
    %c0_466 = arith.constant 0 : index
    %c0_467 = arith.constant 0 : index
    %594 = vector.load %arg6[%c0_465, %c0_466, %c0_467] : memref<1x8x128xf32, #tpu.memory_space<vmem>>, vector<1x8x128xf32>
    %595 = vector.shape_cast %594 : vector<1x8x128xf32> to vector<8x128xf32>
    %596 = vector.shape_cast %593 : vector<8x128xf32> to vector<1x8x128xf32>
    tpu.vector_store %arg6[%c0_465, %c0_466, %c0_467], %596 {strides = array<i32>} : memref<1x8x128xf32, #tpu.memory_space<vmem>>, vector<1x8x128xf32>,
    %c0_468 = arith.constant 0 : index
    %c0_469 = arith.constant 0 : index
    %c0_470 = arith.constant 0 : index
    %597 = vector.load %arg7[%c0_468, %c0_469, %c0_470] : memref<1x8x128xf32, #tpu.memory_space<vmem>>, vector<1x8x128xf32>
    %598 = vector.shape_cast %597 : vector<1x8x128xf32> to vector<8x128xf32>
    %599 = arith.addf %598, %590 : vector<8x128xf32>
    %c0_471 = arith.constant 0 : index
    %c0_472 = arith.constant 0 : index
    %c0_473 = arith.constant 0 : index
    %600 = vector.load %arg7[%c0_471, %c0_472, %c0_473] : memref<1x8x128xf32, #tpu.memory_space<vmem>>, vector<1x8x128xf32>
    %601 = vector.shape_cast %600 : vector<1x8x128xf32> to vector<8x128xf32>
    %602 = vector.shape_cast %599 : vector<8x128xf32> to vector<1x8x128xf32>
    tpu.vector_store %arg7[%c0_471, %c0_472, %c0_473], %602 {strides = array<i32>} : memref<1x8x128xf32, #tpu.memory_space<vmem>>, vector<1x8x128xf32>,
    %c0_474 = arith.constant 0 : index
    %c0_475 = arith.constant 0 : index
    %c0_476 = arith.constant 0 : index
    %603 = vector.load %arg8[%c0_474, %c0_475, %c0_476] : memref<1x8x128xf32, #tpu.memory_space<vmem>>, vector<1x8x128xf32>
    %604 = vector.shape_cast %603 : vector<1x8x128xf32> to vector<8x128xf32>
    %605 = arith.mulf %588, %588 : vector<8x128xf32>
    %606 = arith.addf %604, %605 : vector<8x128xf32>
    %c0_477 = arith.constant 0 : index
    %c0_478 = arith.constant 0 : index
    %c0_479 = arith.constant 0 : index
    %607 = vector.load %arg8[%c0_477, %c0_478, %c0_479] : memref<1x8x128xf32, #tpu.memory_space<vmem>>, vector<1x8x128xf32>
    %608 = vector.shape_cast %607 : vector<1x8x128xf32> to vector<8x128xf32>
    %609 = vector.shape_cast %606 : vector<8x128xf32> to vector<1x8x128xf32>
    tpu.vector_store %arg8[%c0_477, %c0_478, %c0_479], %609 {strides = array<i32>} : memref<1x8x128xf32, #tpu.memory_space<vmem>>, vector<1x8x128xf32>,
    %c0_480 = arith.constant 0 : index
    %c0_481 = arith.constant 0 : index
    %c0_482 = arith.constant 0 : index
    %610 = vector.load %arg9[%c0_480, %c0_481, %c0_482] : memref<1x8x128xf32, #tpu.memory_space<vmem>>, vector<1x8x128xf32>
    %611 = vector.shape_cast %610 : vector<1x8x128xf32> to vector<8x128xf32>
    %612 = arith.mulf %590, %590 : vector<8x128xf32>
    %613 = arith.addf %611, %612 : vector<8x128xf32>
    %c0_483 = arith.constant 0 : index
    %c0_484 = arith.constant 0 : index
    %c0_485 = arith.constant 0 : index
    %614 = vector.load %arg9[%c0_483, %c0_484, %c0_485] : memref<1x8x128xf32, #tpu.memory_space<vmem>>, vector<1x8x128xf32>
    %615 = vector.shape_cast %614 : vector<1x8x128xf32> to vector<8x128xf32>
    %616 = vector.shape_cast %613 : vector<8x128xf32> to vector<1x8x128xf32>
    tpu.vector_store %arg9[%c0_483, %c0_484, %c0_485], %616 {strides = array<i32>} : memref<1x8x128xf32, #tpu.memory_space<vmem>>, vector<1x8x128xf32>,
    %c0_486 = arith.constant 0 : index
    %c0_487 = arith.constant 0 : index
    %c0_488 = arith.constant 0 : index
    %617 = vector.load %arg10[%c0_486, %c0_487, %c0_488] : memref<1x8x128xf32, #tpu.memory_space<vmem>>, vector<1x8x128xf32>
    %618 = vector.shape_cast %617 : vector<1x8x128xf32> to vector<8x128xf32>
    %619 = arith.mulf %588, %590 : vector<8x128xf32>
    %620 = arith.addf %618, %619 : vector<8x128xf32>
    %c0_489 = arith.constant 0 : index
    %c0_490 = arith.constant 0 : index
    %c0_491 = arith.constant 0 : index
    %621 = vector.load %arg10[%c0_489, %c0_490, %c0_491] : memref<1x8x128xf32, #tpu.memory_space<vmem>>, vector<1x8x128xf32>
    %622 = vector.shape_cast %621 : vector<1x8x128xf32> to vector<8x128xf32>
    %623 = vector.shape_cast %620 : vector<8x128xf32> to vector<1x8x128xf32>
    tpu.vector_store %arg10[%c0_489, %c0_490, %c0_491], %623 {strides = array<i32>} : memref<1x8x128xf32, #tpu.memory_space<vmem>>, vector<1x8x128xf32>,
    %c0_492 = arith.constant 0 : index
    %c1792 = arith.constant 1792 : index
    %624 = vector.load %arg4[%c0_492, %c1792] : memref<8x2560xf32, #tpu.memory_space<vmem>>, vector<8x128xf32>
    %c0_493 = arith.constant 0 : index
    %c1792_494 = arith.constant 1792 : index
    %625 = vector.load %arg5[%c0_493, %c1792_494] : memref<8x2560xf32, #tpu.memory_space<vmem>>, vector<8x128xf32>
    %c1792_i32 = arith.constant 1792 : i32
    %626 = arith.addi %6, %c1792_i32 : i32
    %627 = vector.broadcast %626 : i32 to vector<8x128xi32>
    %628 = arith.addi %627, %7 : vector<8x128xi32>
    %629 = vector.broadcast %3 : i32 to vector<8x128xi32>
    %630 = arith.cmpi slt, %628, %629 : vector<8x128xi32>
    %cst_495 = arith.constant 0.000000e+00 : f32
    %631 = vector.broadcast %cst_495 : f32 to vector<8x128xf32>
    %632 = arith.select %630, %624, %631 : vector<8x128xi1>, vector<8x128xf32>
    %cst_496 = arith.constant 0.000000e+00 : f32
    %633 = vector.broadcast %cst_496 : f32 to vector<8x128xf32>
    %634 = arith.select %630, %625, %633 : vector<8x128xi1>, vector<8x128xf32>
    %c0_497 = arith.constant 0 : index
    %c0_498 = arith.constant 0 : index
    %c0_499 = arith.constant 0 : index
    %635 = vector.load %arg6[%c0_497, %c0_498, %c0_499] : memref<1x8x128xf32, #tpu.memory_space<vmem>>, vector<1x8x128xf32>
    %636 = vector.shape_cast %635 : vector<1x8x128xf32> to vector<8x128xf32>
    %637 = arith.addf %636, %632 : vector<8x128xf32>
    %c0_500 = arith.constant 0 : index
    %c0_501 = arith.constant 0 : index
    %c0_502 = arith.constant 0 : index
    %638 = vector.load %arg6[%c0_500, %c0_501, %c0_502] : memref<1x8x128xf32, #tpu.memory_space<vmem>>, vector<1x8x128xf32>
    %639 = vector.shape_cast %638 : vector<1x8x128xf32> to vector<8x128xf32>
    %640 = vector.shape_cast %637 : vector<8x128xf32> to vector<1x8x128xf32>
    tpu.vector_store %arg6[%c0_500, %c0_501, %c0_502], %640 {strides = array<i32>} : memref<1x8x128xf32, #tpu.memory_space<vmem>>, vector<1x8x128xf32>,
    %c0_503 = arith.constant 0 : index
    %c0_504 = arith.constant 0 : index
    %c0_505 = arith.constant 0 : index
    %641 = vector.load %arg7[%c0_503, %c0_504, %c0_505] : memref<1x8x128xf32, #tpu.memory_space<vmem>>, vector<1x8x128xf32>
    %642 = vector.shape_cast %641 : vector<1x8x128xf32> to vector<8x128xf32>
    %643 = arith.addf %642, %634 : vector<8x128xf32>
    %c0_506 = arith.constant 0 : index
    %c0_507 = arith.constant 0 : index
    %c0_508 = arith.constant 0 : index
    %644 = vector.load %arg7[%c0_506, %c0_507, %c0_508] : memref<1x8x128xf32, #tpu.memory_space<vmem>>, vector<1x8x128xf32>
    %645 = vector.shape_cast %644 : vector<1x8x128xf32> to vector<8x128xf32>
    %646 = vector.shape_cast %643 : vector<8x128xf32> to vector<1x8x128xf32>
    tpu.vector_store %arg7[%c0_506, %c0_507, %c0_508], %646 {strides = array<i32>} : memref<1x8x128xf32, #tpu.memory_space<vmem>>, vector<1x8x128xf32>,
    %c0_509 = arith.constant 0 : index
    %c0_510 = arith.constant 0 : index
    %c0_511 = arith.constant 0 : index
    %647 = vector.load %arg8[%c0_509, %c0_510, %c0_511] : memref<1x8x128xf32, #tpu.memory_space<vmem>>, vector<1x8x128xf32>
    %648 = vector.shape_cast %647 : vector<1x8x128xf32> to vector<8x128xf32>
    %649 = arith.mulf %632, %632 : vector<8x128xf32>
    %650 = arith.addf %648, %649 : vector<8x128xf32>
    %c0_512 = arith.constant 0 : index
    %c0_513 = arith.constant 0 : index
    %c0_514 = arith.constant 0 : index
    %651 = vector.load %arg8[%c0_512, %c0_513, %c0_514] : memref<1x8x128xf32, #tpu.memory_space<vmem>>, vector<1x8x128xf32>
    %652 = vector.shape_cast %651 : vector<1x8x128xf32> to vector<8x128xf32>
    %653 = vector.shape_cast %650 : vector<8x128xf32> to vector<1x8x128xf32>
    tpu.vector_store %arg8[%c0_512, %c0_513, %c0_514], %653 {strides = array<i32>} : memref<1x8x128xf32, #tpu.memory_space<vmem>>, vector<1x8x128xf32>,
    %c0_515 = arith.constant 0 : index
    %c0_516 = arith.constant 0 : index
    %c0_517 = arith.constant 0 : index
    %654 = vector.load %arg9[%c0_515, %c0_516, %c0_517] : memref<1x8x128xf32, #tpu.memory_space<vmem>>, vector<1x8x128xf32>
    %655 = vector.shape_cast %654 : vector<1x8x128xf32> to vector<8x128xf32>
    %656 = arith.mulf %634, %634 : vector<8x128xf32>
    %657 = arith.addf %655, %656 : vector<8x128xf32>
    %c0_518 = arith.constant 0 : index
    %c0_519 = arith.constant 0 : index
    %c0_520 = arith.constant 0 : index
    %658 = vector.load %arg9[%c0_518, %c0_519, %c0_520] : memref<1x8x128xf32, #tpu.memory_space<vmem>>, vector<1x8x128xf32>
    %659 = vector.shape_cast %658 : vector<1x8x128xf32> to vector<8x128xf32>
    %660 = vector.shape_cast %657 : vector<8x128xf32> to vector<1x8x128xf32>
    tpu.vector_store %arg9[%c0_518, %c0_519, %c0_520], %660 {strides = array<i32>} : memref<1x8x128xf32, #tpu.memory_space<vmem>>, vector<1x8x128xf32>,
    %c0_521 = arith.constant 0 : index
    %c0_522 = arith.constant 0 : index
    %c0_523 = arith.constant 0 : index
    %661 = vector.load %arg10[%c0_521, %c0_522, %c0_523] : memref<1x8x128xf32, #tpu.memory_space<vmem>>, vector<1x8x128xf32>
    %662 = vector.shape_cast %661 : vector<1x8x128xf32> to vector<8x128xf32>
    %663 = arith.mulf %632, %634 : vector<8x128xf32>
    %664 = arith.addf %662, %663 : vector<8x128xf32>
    %c0_524 = arith.constant 0 : index
    %c0_525 = arith.constant 0 : index
    %c0_526 = arith.constant 0 : index
    %665 = vector.load %arg10[%c0_524, %c0_525, %c0_526] : memref<1x8x128xf32, #tpu.memory_space<vmem>>, vector<1x8x128xf32>
    %666 = vector.shape_cast %665 : vector<1x8x128xf32> to vector<8x128xf32>
    %667 = vector.shape_cast %664 : vector<8x128xf32> to vector<1x8x128xf32>
    tpu.vector_store %arg10[%c0_524, %c0_525, %c0_526], %667 {strides = array<i32>} : memref<1x8x128xf32, #tpu.memory_space<vmem>>, vector<1x8x128xf32>,
    %c0_527 = arith.constant 0 : index
    %c1920 = arith.constant 1920 : index
    %668 = vector.load %arg4[%c0_527, %c1920] : memref<8x2560xf32, #tpu.memory_space<vmem>>, vector<8x128xf32>
    %c0_528 = arith.constant 0 : index
    %c1920_529 = arith.constant 1920 : index
    %669 = vector.load %arg5[%c0_528, %c1920_529] : memref<8x2560xf32, #tpu.memory_space<vmem>>, vector<8x128xf32>
    %c1920_i32 = arith.constant 1920 : i32
    %670 = arith.addi %6, %c1920_i32 : i32
    %671 = vector.broadcast %670 : i32 to vector<8x128xi32>
    %672 = arith.addi %671, %7 : vector<8x128xi32>
    %673 = vector.broadcast %3 : i32 to vector<8x128xi32>
    %674 = arith.cmpi slt, %672, %673 : vector<8x128xi32>
    %cst_530 = arith.constant 0.000000e+00 : f32
    %675 = vector.broadcast %cst_530 : f32 to vector<8x128xf32>
    %676 = arith.select %674, %668, %675 : vector<8x128xi1>, vector<8x128xf32>
    %cst_531 = arith.constant 0.000000e+00 : f32
    %677 = vector.broadcast %cst_531 : f32 to vector<8x128xf32>
    %678 = arith.select %674, %669, %677 : vector<8x128xi1>, vector<8x128xf32>
    %c0_532 = arith.constant 0 : index
    %c0_533 = arith.constant 0 : index
    %c0_534 = arith.constant 0 : index
    %679 = vector.load %arg6[%c0_532, %c0_533, %c0_534] : memref<1x8x128xf32, #tpu.memory_space<vmem>>, vector<1x8x128xf32>
    %680 = vector.shape_cast %679 : vector<1x8x128xf32> to vector<8x128xf32>
    %681 = arith.addf %680, %676 : vector<8x128xf32>
    %c0_535 = arith.constant 0 : index
    %c0_536 = arith.constant 0 : index
    %c0_537 = arith.constant 0 : index
    %682 = vector.load %arg6[%c0_535, %c0_536, %c0_537] : memref<1x8x128xf32, #tpu.memory_space<vmem>>, vector<1x8x128xf32>
    %683 = vector.shape_cast %682 : vector<1x8x128xf32> to vector<8x128xf32>
    %684 = vector.shape_cast %681 : vector<8x128xf32> to vector<1x8x128xf32>
    tpu.vector_store %arg6[%c0_535, %c0_536, %c0_537], %684 {strides = array<i32>} : memref<1x8x128xf32, #tpu.memory_space<vmem>>, vector<1x8x128xf32>,
    %c0_538 = arith.constant 0 : index
    %c0_539 = arith.constant 0 : index
    %c0_540 = arith.constant 0 : index
    %685 = vector.load %arg7[%c0_538, %c0_539, %c0_540] : memref<1x8x128xf32, #tpu.memory_space<vmem>>, vector<1x8x128xf32>
    %686 = vector.shape_cast %685 : vector<1x8x128xf32> to vector<8x128xf32>
    %687 = arith.addf %686, %678 : vector<8x128xf32>
    %c0_541 = arith.constant 0 : index
    %c0_542 = arith.constant 0 : index
    %c0_543 = arith.constant 0 : index
    %688 = vector.load %arg7[%c0_541, %c0_542, %c0_543] : memref<1x8x128xf32, #tpu.memory_space<vmem>>, vector<1x8x128xf32>
    %689 = vector.shape_cast %688 : vector<1x8x128xf32> to vector<8x128xf32>
    %690 = vector.shape_cast %687 : vector<8x128xf32> to vector<1x8x128xf32>
    tpu.vector_store %arg7[%c0_541, %c0_542, %c0_543], %690 {strides = array<i32>} : memref<1x8x128xf32, #tpu.memory_space<vmem>>, vector<1x8x128xf32>,
    %c0_544 = arith.constant 0 : index
    %c0_545 = arith.constant 0 : index
    %c0_546 = arith.constant 0 : index
    %691 = vector.load %arg8[%c0_544, %c0_545, %c0_546] : memref<1x8x128xf32, #tpu.memory_space<vmem>>, vector<1x8x128xf32>
    %692 = vector.shape_cast %691 : vector<1x8x128xf32> to vector<8x128xf32>
    %693 = arith.mulf %676, %676 : vector<8x128xf32>
    %694 = arith.addf %692, %693 : vector<8x128xf32>
    %c0_547 = arith.constant 0 : index
    %c0_548 = arith.constant 0 : index
    %c0_549 = arith.constant 0 : index
    %695 = vector.load %arg8[%c0_547, %c0_548, %c0_549] : memref<1x8x128xf32, #tpu.memory_space<vmem>>, vector<1x8x128xf32>
    %696 = vector.shape_cast %695 : vector<1x8x128xf32> to vector<8x128xf32>
    %697 = vector.shape_cast %694 : vector<8x128xf32> to vector<1x8x128xf32>
    tpu.vector_store %arg8[%c0_547, %c0_548, %c0_549], %697 {strides = array<i32>} : memref<1x8x128xf32, #tpu.memory_space<vmem>>, vector<1x8x128xf32>,
    %c0_550 = arith.constant 0 : index
    %c0_551 = arith.constant 0 : index
    %c0_552 = arith.constant 0 : index
    %698 = vector.load %arg9[%c0_550, %c0_551, %c0_552] : memref<1x8x128xf32, #tpu.memory_space<vmem>>, vector<1x8x128xf32>
    %699 = vector.shape_cast %698 : vector<1x8x128xf32> to vector<8x128xf32>
    %700 = arith.mulf %678, %678 : vector<8x128xf32>
    %701 = arith.addf %699, %700 : vector<8x128xf32>
    %c0_553 = arith.constant 0 : index
    %c0_554 = arith.constant 0 : index
    %c0_555 = arith.constant 0 : index
    %702 = vector.load %arg9[%c0_553, %c0_554, %c0_555] : memref<1x8x128xf32, #tpu.memory_space<vmem>>, vector<1x8x128xf32>
    %703 = vector.shape_cast %702 : vector<1x8x128xf32> to vector<8x128xf32>
    %704 = vector.shape_cast %701 : vector<8x128xf32> to vector<1x8x128xf32>
    tpu.vector_store %arg9[%c0_553, %c0_554, %c0_555], %704 {strides = array<i32>} : memref<1x8x128xf32, #tpu.memory_space<vmem>>, vector<1x8x128xf32>,
    %c0_556 = arith.constant 0 : index
    %c0_557 = arith.constant 0 : index
    %c0_558 = arith.constant 0 : index
    %705 = vector.load %arg10[%c0_556, %c0_557, %c0_558] : memref<1x8x128xf32, #tpu.memory_space<vmem>>, vector<1x8x128xf32>
    %706 = vector.shape_cast %705 : vector<1x8x128xf32> to vector<8x128xf32>
    %707 = arith.mulf %676, %678 : vector<8x128xf32>
    %708 = arith.addf %706, %707 : vector<8x128xf32>
    %c0_559 = arith.constant 0 : index
    %c0_560 = arith.constant 0 : index
    %c0_561 = arith.constant 0 : index
    %709 = vector.load %arg10[%c0_559, %c0_560, %c0_561] : memref<1x8x128xf32, #tpu.memory_space<vmem>>, vector<1x8x128xf32>
    %710 = vector.shape_cast %709 : vector<1x8x128xf32> to vector<8x128xf32>
    %711 = vector.shape_cast %708 : vector<8x128xf32> to vector<1x8x128xf32>
    tpu.vector_store %arg10[%c0_559, %c0_560, %c0_561], %711 {strides = array<i32>} : memref<1x8x128xf32, #tpu.memory_space<vmem>>, vector<1x8x128xf32>,
    %c0_562 = arith.constant 0 : index
    %c2048 = arith.constant 2048 : index
    %712 = vector.load %arg4[%c0_562, %c2048] : memref<8x2560xf32, #tpu.memory_space<vmem>>, vector<8x128xf32>
    %c0_563 = arith.constant 0 : index
    %c2048_564 = arith.constant 2048 : index
    %713 = vector.load %arg5[%c0_563, %c2048_564] : memref<8x2560xf32, #tpu.memory_space<vmem>>, vector<8x128xf32>
    %c2048_i32 = arith.constant 2048 : i32
    %714 = arith.addi %6, %c2048_i32 : i32
    %715 = vector.broadcast %714 : i32 to vector<8x128xi32>
    %716 = arith.addi %715, %7 : vector<8x128xi32>
    %717 = vector.broadcast %3 : i32 to vector<8x128xi32>
    %718 = arith.cmpi slt, %716, %717 : vector<8x128xi32>
    %cst_565 = arith.constant 0.000000e+00 : f32
    %719 = vector.broadcast %cst_565 : f32 to vector<8x128xf32>
    %720 = arith.select %718, %712, %719 : vector<8x128xi1>, vector<8x128xf32>
    %cst_566 = arith.constant 0.000000e+00 : f32
    %721 = vector.broadcast %cst_566 : f32 to vector<8x128xf32>
    %722 = arith.select %718, %713, %721 : vector<8x128xi1>, vector<8x128xf32>
    %c0_567 = arith.constant 0 : index
    %c0_568 = arith.constant 0 : index
    %c0_569 = arith.constant 0 : index
    %723 = vector.load %arg6[%c0_567, %c0_568, %c0_569] : memref<1x8x128xf32, #tpu.memory_space<vmem>>, vector<1x8x128xf32>
    %724 = vector.shape_cast %723 : vector<1x8x128xf32> to vector<8x128xf32>
    %725 = arith.addf %724, %720 : vector<8x128xf32>
    %c0_570 = arith.constant 0 : index
    %c0_571 = arith.constant 0 : index
    %c0_572 = arith.constant 0 : index
    %726 = vector.load %arg6[%c0_570, %c0_571, %c0_572] : memref<1x8x128xf32, #tpu.memory_space<vmem>>, vector<1x8x128xf32>
    %727 = vector.shape_cast %726 : vector<1x8x128xf32> to vector<8x128xf32>
    %728 = vector.shape_cast %725 : vector<8x128xf32> to vector<1x8x128xf32>
    tpu.vector_store %arg6[%c0_570, %c0_571, %c0_572], %728 {strides = array<i32>} : memref<1x8x128xf32, #tpu.memory_space<vmem>>, vector<1x8x128xf32>,
    %c0_573 = arith.constant 0 : index
    %c0_574 = arith.constant 0 : index
    %c0_575 = arith.constant 0 : index
    %729 = vector.load %arg7[%c0_573, %c0_574, %c0_575] : memref<1x8x128xf32, #tpu.memory_space<vmem>>, vector<1x8x128xf32>
    %730 = vector.shape_cast %729 : vector<1x8x128xf32> to vector<8x128xf32>
    %731 = arith.addf %730, %722 : vector<8x128xf32>
    %c0_576 = arith.constant 0 : index
    %c0_577 = arith.constant 0 : index
    %c0_578 = arith.constant 0 : index
    %732 = vector.load %arg7[%c0_576, %c0_577, %c0_578] : memref<1x8x128xf32, #tpu.memory_space<vmem>>, vector<1x8x128xf32>
    %733 = vector.shape_cast %732 : vector<1x8x128xf32> to vector<8x128xf32>
    %734 = vector.shape_cast %731 : vector<8x128xf32> to vector<1x8x128xf32>
    tpu.vector_store %arg7[%c0_576, %c0_577, %c0_578], %734 {strides = array<i32>} : memref<1x8x128xf32, #tpu.memory_space<vmem>>, vector<1x8x128xf32>,
    %c0_579 = arith.constant 0 : index
    %c0_580 = arith.constant 0 : index
    %c0_581 = arith.constant 0 : index
    %735 = vector.load %arg8[%c0_579, %c0_580, %c0_581] : memref<1x8x128xf32, #tpu.memory_space<vmem>>, vector<1x8x128xf32>
    %736 = vector.shape_cast %735 : vector<1x8x128xf32> to vector<8x128xf32>
    %737 = arith.mulf %720, %720 : vector<8x128xf32>
    %738 = arith.addf %736, %737 : vector<8x128xf32>
    %c0_582 = arith.constant 0 : index
    %c0_583 = arith.constant 0 : index
    %c0_584 = arith.constant 0 : index
    %739 = vector.load %arg8[%c0_582, %c0_583, %c0_584] : memref<1x8x128xf32, #tpu.memory_space<vmem>>, vector<1x8x128xf32>
    %740 = vector.shape_cast %739 : vector<1x8x128xf32> to vector<8x128xf32>
    %741 = vector.shape_cast %738 : vector<8x128xf32> to vector<1x8x128xf32>
    tpu.vector_store %arg8[%c0_582, %c0_583, %c0_584], %741 {strides = array<i32>} : memref<1x8x128xf32, #tpu.memory_space<vmem>>, vector<1x8x128xf32>,
    %c0_585 = arith.constant 0 : index
    %c0_586 = arith.constant 0 : index
    %c0_587 = arith.constant 0 : index
    %742 = vector.load %arg9[%c0_585, %c0_586, %c0_587] : memref<1x8x128xf32, #tpu.memory_space<vmem>>, vector<1x8x128xf32>
    %743 = vector.shape_cast %742 : vector<1x8x128xf32> to vector<8x128xf32>
    %744 = arith.mulf %722, %722 : vector<8x128xf32>
    %745 = arith.addf %743, %744 : vector<8x128xf32>
    %c0_588 = arith.constant 0 : index
    %c0_589 = arith.constant 0 : index
    %c0_590 = arith.constant 0 : index
    %746 = vector.load %arg9[%c0_588, %c0_589, %c0_590] : memref<1x8x128xf32, #tpu.memory_space<vmem>>, vector<1x8x128xf32>
    %747 = vector.shape_cast %746 : vector<1x8x128xf32> to vector<8x128xf32>
    %748 = vector.shape_cast %745 : vector<8x128xf32> to vector<1x8x128xf32>
    tpu.vector_store %arg9[%c0_588, %c0_589, %c0_590], %748 {strides = array<i32>} : memref<1x8x128xf32, #tpu.memory_space<vmem>>, vector<1x8x128xf32>,
    %c0_591 = arith.constant 0 : index
    %c0_592 = arith.constant 0 : index
    %c0_593 = arith.constant 0 : index
    %749 = vector.load %arg10[%c0_591, %c0_592, %c0_593] : memref<1x8x128xf32, #tpu.memory_space<vmem>>, vector<1x8x128xf32>
    %750 = vector.shape_cast %749 : vector<1x8x128xf32> to vector<8x128xf32>
    %751 = arith.mulf %720, %722 : vector<8x128xf32>
    %752 = arith.addf %750, %751 : vector<8x128xf32>
    %c0_594 = arith.constant 0 : index
    %c0_595 = arith.constant 0 : index
    %c0_596 = arith.constant 0 : index
    %753 = vector.load %arg10[%c0_594, %c0_595, %c0_596] : memref<1x8x128xf32, #tpu.memory_space<vmem>>, vector<1x8x128xf32>
    %754 = vector.shape_cast %753 : vector<1x8x128xf32> to vector<8x128xf32>
    %755 = vector.shape_cast %752 : vector<8x128xf32> to vector<1x8x128xf32>
    tpu.vector_store %arg10[%c0_594, %c0_595, %c0_596], %755 {strides = array<i32>} : memref<1x8x128xf32, #tpu.memory_space<vmem>>, vector<1x8x128xf32>,
    %c0_597 = arith.constant 0 : index
    %c2176 = arith.constant 2176 : index
    %756 = vector.load %arg4[%c0_597, %c2176] : memref<8x2560xf32, #tpu.memory_space<vmem>>, vector<8x128xf32>
    %c0_598 = arith.constant 0 : index
    %c2176_599 = arith.constant 2176 : index
    %757 = vector.load %arg5[%c0_598, %c2176_599] : memref<8x2560xf32, #tpu.memory_space<vmem>>, vector<8x128xf32>
    %c2176_i32 = arith.constant 2176 : i32
    %758 = arith.addi %6, %c2176_i32 : i32
    %759 = vector.broadcast %758 : i32 to vector<8x128xi32>
    %760 = arith.addi %759, %7 : vector<8x128xi32>
    %761 = vector.broadcast %3 : i32 to vector<8x128xi32>
    %762 = arith.cmpi slt, %760, %761 : vector<8x128xi32>
    %cst_600 = arith.constant 0.000000e+00 : f32
    %763 = vector.broadcast %cst_600 : f32 to vector<8x128xf32>
    %764 = arith.select %762, %756, %763 : vector<8x128xi1>, vector<8x128xf32>
    %cst_601 = arith.constant 0.000000e+00 : f32
    %765 = vector.broadcast %cst_601 : f32 to vector<8x128xf32>
    %766 = arith.select %762, %757, %765 : vector<8x128xi1>, vector<8x128xf32>
    %c0_602 = arith.constant 0 : index
    %c0_603 = arith.constant 0 : index
    %c0_604 = arith.constant 0 : index
    %767 = vector.load %arg6[%c0_602, %c0_603, %c0_604] : memref<1x8x128xf32, #tpu.memory_space<vmem>>, vector<1x8x128xf32>
    %768 = vector.shape_cast %767 : vector<1x8x128xf32> to vector<8x128xf32>
    %769 = arith.addf %768, %764 : vector<8x128xf32>
    %c0_605 = arith.constant 0 : index
    %c0_606 = arith.constant 0 : index
    %c0_607 = arith.constant 0 : index
    %770 = vector.load %arg6[%c0_605, %c0_606, %c0_607] : memref<1x8x128xf32, #tpu.memory_space<vmem>>, vector<1x8x128xf32>
    %771 = vector.shape_cast %770 : vector<1x8x128xf32> to vector<8x128xf32>
    %772 = vector.shape_cast %769 : vector<8x128xf32> to vector<1x8x128xf32>
    tpu.vector_store %arg6[%c0_605, %c0_606, %c0_607], %772 {strides = array<i32>} : memref<1x8x128xf32, #tpu.memory_space<vmem>>, vector<1x8x128xf32>,
    %c0_608 = arith.constant 0 : index
    %c0_609 = arith.constant 0 : index
    %c0_610 = arith.constant 0 : index
    %773 = vector.load %arg7[%c0_608, %c0_609, %c0_610] : memref<1x8x128xf32, #tpu.memory_space<vmem>>, vector<1x8x128xf32>
    %774 = vector.shape_cast %773 : vector<1x8x128xf32> to vector<8x128xf32>
    %775 = arith.addf %774, %766 : vector<8x128xf32>
    %c0_611 = arith.constant 0 : index
    %c0_612 = arith.constant 0 : index
    %c0_613 = arith.constant 0 : index
    %776 = vector.load %arg7[%c0_611, %c0_612, %c0_613] : memref<1x8x128xf32, #tpu.memory_space<vmem>>, vector<1x8x128xf32>
    %777 = vector.shape_cast %776 : vector<1x8x128xf32> to vector<8x128xf32>
    %778 = vector.shape_cast %775 : vector<8x128xf32> to vector<1x8x128xf32>
    tpu.vector_store %arg7[%c0_611, %c0_612, %c0_613], %778 {strides = array<i32>} : memref<1x8x128xf32, #tpu.memory_space<vmem>>, vector<1x8x128xf32>,
    %c0_614 = arith.constant 0 : index
    %c0_615 = arith.constant 0 : index
    %c0_616 = arith.constant 0 : index
    %779 = vector.load %arg8[%c0_614, %c0_615, %c0_616] : memref<1x8x128xf32, #tpu.memory_space<vmem>>, vector<1x8x128xf32>
    %780 = vector.shape_cast %779 : vector<1x8x128xf32> to vector<8x128xf32>
    %781 = arith.mulf %764, %764 : vector<8x128xf32>
    %782 = arith.addf %780, %781 : vector<8x128xf32>
    %c0_617 = arith.constant 0 : index
    %c0_618 = arith.constant 0 : index
    %c0_619 = arith.constant 0 : index
    %783 = vector.load %arg8[%c0_617, %c0_618, %c0_619] : memref<1x8x128xf32, #tpu.memory_space<vmem>>, vector<1x8x128xf32>
    %784 = vector.shape_cast %783 : vector<1x8x128xf32> to vector<8x128xf32>
    %785 = vector.shape_cast %782 : vector<8x128xf32> to vector<1x8x128xf32>
    tpu.vector_store %arg8[%c0_617, %c0_618, %c0_619], %785 {strides = array<i32>} : memref<1x8x128xf32, #tpu.memory_space<vmem>>, vector<1x8x128xf32>,
    %c0_620 = arith.constant 0 : index
    %c0_621 = arith.constant 0 : index
    %c0_622 = arith.constant 0 : index
    %786 = vector.load %arg9[%c0_620, %c0_621, %c0_622] : memref<1x8x128xf32, #tpu.memory_space<vmem>>, vector<1x8x128xf32>
    %787 = vector.shape_cast %786 : vector<1x8x128xf32> to vector<8x128xf32>
    %788 = arith.mulf %766, %766 : vector<8x128xf32>
    %789 = arith.addf %787, %788 : vector<8x128xf32>
    %c0_623 = arith.constant 0 : index
    %c0_624 = arith.constant 0 : index
    %c0_625 = arith.constant 0 : index
    %790 = vector.load %arg9[%c0_623, %c0_624, %c0_625] : memref<1x8x128xf32, #tpu.memory_space<vmem>>, vector<1x8x128xf32>
    %791 = vector.shape_cast %790 : vector<1x8x128xf32> to vector<8x128xf32>
    %792 = vector.shape_cast %789 : vector<8x128xf32> to vector<1x8x128xf32>
    tpu.vector_store %arg9[%c0_623, %c0_624, %c0_625], %792 {strides = array<i32>} : memref<1x8x128xf32, #tpu.memory_space<vmem>>, vector<1x8x128xf32>,
    %c0_626 = arith.constant 0 : index
    %c0_627 = arith.constant 0 : index
    %c0_628 = arith.constant 0 : index
    %793 = vector.load %arg10[%c0_626, %c0_627, %c0_628] : memref<1x8x128xf32, #tpu.memory_space<vmem>>, vector<1x8x128xf32>
    %794 = vector.shape_cast %793 : vector<1x8x128xf32> to vector<8x128xf32>
    %795 = arith.mulf %764, %766 : vector<8x128xf32>
    %796 = arith.addf %794, %795 : vector<8x128xf32>
    %c0_629 = arith.constant 0 : index
    %c0_630 = arith.constant 0 : index
    %c0_631 = arith.constant 0 : index
    %797 = vector.load %arg10[%c0_629, %c0_630, %c0_631] : memref<1x8x128xf32, #tpu.memory_space<vmem>>, vector<1x8x128xf32>
    %798 = vector.shape_cast %797 : vector<1x8x128xf32> to vector<8x128xf32>
    %799 = vector.shape_cast %796 : vector<8x128xf32> to vector<1x8x128xf32>
    tpu.vector_store %arg10[%c0_629, %c0_630, %c0_631], %799 {strides = array<i32>} : memref<1x8x128xf32, #tpu.memory_space<vmem>>, vector<1x8x128xf32>,
    %c0_632 = arith.constant 0 : index
    %c2304 = arith.constant 2304 : index
    %800 = vector.load %arg4[%c0_632, %c2304] : memref<8x2560xf32, #tpu.memory_space<vmem>>, vector<8x128xf32>
    %c0_633 = arith.constant 0 : index
    %c2304_634 = arith.constant 2304 : index
    %801 = vector.load %arg5[%c0_633, %c2304_634] : memref<8x2560xf32, #tpu.memory_space<vmem>>, vector<8x128xf32>
    %c2304_i32 = arith.constant 2304 : i32
    %802 = arith.addi %6, %c2304_i32 : i32
    %803 = vector.broadcast %802 : i32 to vector<8x128xi32>
    %804 = arith.addi %803, %7 : vector<8x128xi32>
    %805 = vector.broadcast %3 : i32 to vector<8x128xi32>
    %806 = arith.cmpi slt, %804, %805 : vector<8x128xi32>
    %cst_635 = arith.constant 0.000000e+00 : f32
    %807 = vector.broadcast %cst_635 : f32 to vector<8x128xf32>
    %808 = arith.select %806, %800, %807 : vector<8x128xi1>, vector<8x128xf32>
    %cst_636 = arith.constant 0.000000e+00 : f32
    %809 = vector.broadcast %cst_636 : f32 to vector<8x128xf32>
    %810 = arith.select %806, %801, %809 : vector<8x128xi1>, vector<8x128xf32>
    %c0_637 = arith.constant 0 : index
    %c0_638 = arith.constant 0 : index
    %c0_639 = arith.constant 0 : index
    %811 = vector.load %arg6[%c0_637, %c0_638, %c0_639] : memref<1x8x128xf32, #tpu.memory_space<vmem>>, vector<1x8x128xf32>
    %812 = vector.shape_cast %811 : vector<1x8x128xf32> to vector<8x128xf32>
    %813 = arith.addf %812, %808 : vector<8x128xf32>
    %c0_640 = arith.constant 0 : index
    %c0_641 = arith.constant 0 : index
    %c0_642 = arith.constant 0 : index
    %814 = vector.load %arg6[%c0_640, %c0_641, %c0_642] : memref<1x8x128xf32, #tpu.memory_space<vmem>>, vector<1x8x128xf32>
    %815 = vector.shape_cast %814 : vector<1x8x128xf32> to vector<8x128xf32>
    %816 = vector.shape_cast %813 : vector<8x128xf32> to vector<1x8x128xf32>
    tpu.vector_store %arg6[%c0_640, %c0_641, %c0_642], %816 {strides = array<i32>} : memref<1x8x128xf32, #tpu.memory_space<vmem>>, vector<1x8x128xf32>,
    %c0_643 = arith.constant 0 : index
    %c0_644 = arith.constant 0 : index
    %c0_645 = arith.constant 0 : index
    %817 = vector.load %arg7[%c0_643, %c0_644, %c0_645] : memref<1x8x128xf32, #tpu.memory_space<vmem>>, vector<1x8x128xf32>
    %818 = vector.shape_cast %817 : vector<1x8x128xf32> to vector<8x128xf32>
    %819 = arith.addf %818, %810 : vector<8x128xf32>
    %c0_646 = arith.constant 0 : index
    %c0_647 = arith.constant 0 : index
    %c0_648 = arith.constant 0 : index
    %820 = vector.load %arg7[%c0_646, %c0_647, %c0_648] : memref<1x8x128xf32, #tpu.memory_space<vmem>>, vector<1x8x128xf32>
    %821 = vector.shape_cast %820 : vector<1x8x128xf32> to vector<8x128xf32>
    %822 = vector.shape_cast %819 : vector<8x128xf32> to vector<1x8x128xf32>
    tpu.vector_store %arg7[%c0_646, %c0_647, %c0_648], %822 {strides = array<i32>} : memref<1x8x128xf32, #tpu.memory_space<vmem>>, vector<1x8x128xf32>,
    %c0_649 = arith.constant 0 : index
    %c0_650 = arith.constant 0 : index
    %c0_651 = arith.constant 0 : index
    %823 = vector.load %arg8[%c0_649, %c0_650, %c0_651] : memref<1x8x128xf32, #tpu.memory_space<vmem>>, vector<1x8x128xf32>
    %824 = vector.shape_cast %823 : vector<1x8x128xf32> to vector<8x128xf32>
    %825 = arith.mulf %808, %808 : vector<8x128xf32>
    %826 = arith.addf %824, %825 : vector<8x128xf32>
    %c0_652 = arith.constant 0 : index
    %c0_653 = arith.constant 0 : index
    %c0_654 = arith.constant 0 : index
    %827 = vector.load %arg8[%c0_652, %c0_653, %c0_654] : memref<1x8x128xf32, #tpu.memory_space<vmem>>, vector<1x8x128xf32>
    %828 = vector.shape_cast %827 : vector<1x8x128xf32> to vector<8x128xf32>
    %829 = vector.shape_cast %826 : vector<8x128xf32> to vector<1x8x128xf32>
    tpu.vector_store %arg8[%c0_652, %c0_653, %c0_654], %829 {strides = array<i32>} : memref<1x8x128xf32, #tpu.memory_space<vmem>>, vector<1x8x128xf32>,
    %c0_655 = arith.constant 0 : index
    %c0_656 = arith.constant 0 : index
    %c0_657 = arith.constant 0 : index
    %830 = vector.load %arg9[%c0_655, %c0_656, %c0_657] : memref<1x8x128xf32, #tpu.memory_space<vmem>>, vector<1x8x128xf32>
    %831 = vector.shape_cast %830 : vector<1x8x128xf32> to vector<8x128xf32>
    %832 = arith.mulf %810, %810 : vector<8x128xf32>
    %833 = arith.addf %831, %832 : vector<8x128xf32>
    %c0_658 = arith.constant 0 : index
    %c0_659 = arith.constant 0 : index
    %c0_660 = arith.constant 0 : index
    %834 = vector.load %arg9[%c0_658, %c0_659, %c0_660] : memref<1x8x128xf32, #tpu.memory_space<vmem>>, vector<1x8x128xf32>
    %835 = vector.shape_cast %834 : vector<1x8x128xf32> to vector<8x128xf32>
    %836 = vector.shape_cast %833 : vector<8x128xf32> to vector<1x8x128xf32>
    tpu.vector_store %arg9[%c0_658, %c0_659, %c0_660], %836 {strides = array<i32>} : memref<1x8x128xf32, #tpu.memory_space<vmem>>, vector<1x8x128xf32>,
    %c0_661 = arith.constant 0 : index
    %c0_662 = arith.constant 0 : index
    %c0_663 = arith.constant 0 : index
    %837 = vector.load %arg10[%c0_661, %c0_662, %c0_663] : memref<1x8x128xf32, #tpu.memory_space<vmem>>, vector<1x8x128xf32>
    %838 = vector.shape_cast %837 : vector<1x8x128xf32> to vector<8x128xf32>
    %839 = arith.mulf %808, %810 : vector<8x128xf32>
    %840 = arith.addf %838, %839 : vector<8x128xf32>
    %c0_664 = arith.constant 0 : index
    %c0_665 = arith.constant 0 : index
    %c0_666 = arith.constant 0 : index
    %841 = vector.load %arg10[%c0_664, %c0_665, %c0_666] : memref<1x8x128xf32, #tpu.memory_space<vmem>>, vector<1x8x128xf32>
    %842 = vector.shape_cast %841 : vector<1x8x128xf32> to vector<8x128xf32>
    %843 = vector.shape_cast %840 : vector<8x128xf32> to vector<1x8x128xf32>
    tpu.vector_store %arg10[%c0_664, %c0_665, %c0_666], %843 {strides = array<i32>} : memref<1x8x128xf32, #tpu.memory_space<vmem>>, vector<1x8x128xf32>,
    %c0_667 = arith.constant 0 : index
    %c2432 = arith.constant 2432 : index
    %844 = vector.load %arg4[%c0_667, %c2432] : memref<8x2560xf32, #tpu.memory_space<vmem>>, vector<8x128xf32>
    %c0_668 = arith.constant 0 : index
    %c2432_669 = arith.constant 2432 : index
    %845 = vector.load %arg5[%c0_668, %c2432_669] : memref<8x2560xf32, #tpu.memory_space<vmem>>, vector<8x128xf32>
    %c2432_i32 = arith.constant 2432 : i32
    %846 = arith.addi %6, %c2432_i32 : i32
    %847 = vector.broadcast %846 : i32 to vector<8x128xi32>
    %848 = arith.addi %847, %7 : vector<8x128xi32>
    %849 = vector.broadcast %3 : i32 to vector<8x128xi32>
    %850 = arith.cmpi slt, %848, %849 : vector<8x128xi32>
    %cst_670 = arith.constant 0.000000e+00 : f32
    %851 = vector.broadcast %cst_670 : f32 to vector<8x128xf32>
    %852 = arith.select %850, %844, %851 : vector<8x128xi1>, vector<8x128xf32>
    %cst_671 = arith.constant 0.000000e+00 : f32
    %853 = vector.broadcast %cst_671 : f32 to vector<8x128xf32>
    %854 = arith.select %850, %845, %853 : vector<8x128xi1>, vector<8x128xf32>
    %c0_672 = arith.constant 0 : index
    %c0_673 = arith.constant 0 : index
    %c0_674 = arith.constant 0 : index
    %855 = vector.load %arg6[%c0_672, %c0_673, %c0_674] : memref<1x8x128xf32, #tpu.memory_space<vmem>>, vector<1x8x128xf32>
    %856 = vector.shape_cast %855 : vector<1x8x128xf32> to vector<8x128xf32>
    %857 = arith.addf %856, %852 : vector<8x128xf32>
    %c0_675 = arith.constant 0 : index
    %c0_676 = arith.constant 0 : index
    %c0_677 = arith.constant 0 : index
    %858 = vector.load %arg6[%c0_675, %c0_676, %c0_677] : memref<1x8x128xf32, #tpu.memory_space<vmem>>, vector<1x8x128xf32>
    %859 = vector.shape_cast %858 : vector<1x8x128xf32> to vector<8x128xf32>
    %860 = vector.shape_cast %857 : vector<8x128xf32> to vector<1x8x128xf32>
    tpu.vector_store %arg6[%c0_675, %c0_676, %c0_677], %860 {strides = array<i32>} : memref<1x8x128xf32, #tpu.memory_space<vmem>>, vector<1x8x128xf32>,
    %c0_678 = arith.constant 0 : index
    %c0_679 = arith.constant 0 : index
    %c0_680 = arith.constant 0 : index
    %861 = vector.load %arg7[%c0_678, %c0_679, %c0_680] : memref<1x8x128xf32, #tpu.memory_space<vmem>>, vector<1x8x128xf32>
    %862 = vector.shape_cast %861 : vector<1x8x128xf32> to vector<8x128xf32>
    %863 = arith.addf %862, %854 : vector<8x128xf32>
    %c0_681 = arith.constant 0 : index
    %c0_682 = arith.constant 0 : index
    %c0_683 = arith.constant 0 : index
    %864 = vector.load %arg7[%c0_681, %c0_682, %c0_683] : memref<1x8x128xf32, #tpu.memory_space<vmem>>, vector<1x8x128xf32>
    %865 = vector.shape_cast %864 : vector<1x8x128xf32> to vector<8x128xf32>
    %866 = vector.shape_cast %863 : vector<8x128xf32> to vector<1x8x128xf32>
    tpu.vector_store %arg7[%c0_681, %c0_682, %c0_683], %866 {strides = array<i32>} : memref<1x8x128xf32, #tpu.memory_space<vmem>>, vector<1x8x128xf32>,
    %c0_684 = arith.constant 0 : index
    %c0_685 = arith.constant 0 : index
    %c0_686 = arith.constant 0 : index
    %867 = vector.load %arg8[%c0_684, %c0_685, %c0_686] : memref<1x8x128xf32, #tpu.memory_space<vmem>>, vector<1x8x128xf32>
    %868 = vector.shape_cast %867 : vector<1x8x128xf32> to vector<8x128xf32>
    %869 = arith.mulf %852, %852 : vector<8x128xf32>
    %870 = arith.addf %868, %869 : vector<8x128xf32>
    %c0_687 = arith.constant 0 : index
    %c0_688 = arith.constant 0 : index
    %c0_689 = arith.constant 0 : index
    %871 = vector.load %arg8[%c0_687, %c0_688, %c0_689] : memref<1x8x128xf32, #tpu.memory_space<vmem>>, vector<1x8x128xf32>
    %872 = vector.shape_cast %871 : vector<1x8x128xf32> to vector<8x128xf32>
    %873 = vector.shape_cast %870 : vector<8x128xf32> to vector<1x8x128xf32>
    tpu.vector_store %arg8[%c0_687, %c0_688, %c0_689], %873 {strides = array<i32>} : memref<1x8x128xf32, #tpu.memory_space<vmem>>, vector<1x8x128xf32>,
    %c0_690 = arith.constant 0 : index
    %c0_691 = arith.constant 0 : index
    %c0_692 = arith.constant 0 : index
    %874 = vector.load %arg9[%c0_690, %c0_691, %c0_692] : memref<1x8x128xf32, #tpu.memory_space<vmem>>, vector<1x8x128xf32>
    %875 = vector.shape_cast %874 : vector<1x8x128xf32> to vector<8x128xf32>
    %876 = arith.mulf %854, %854 : vector<8x128xf32>
    %877 = arith.addf %875, %876 : vector<8x128xf32>
    %c0_693 = arith.constant 0 : index
    %c0_694 = arith.constant 0 : index
    %c0_695 = arith.constant 0 : index
    %878 = vector.load %arg9[%c0_693, %c0_694, %c0_695] : memref<1x8x128xf32, #tpu.memory_space<vmem>>, vector<1x8x128xf32>
    %879 = vector.shape_cast %878 : vector<1x8x128xf32> to vector<8x128xf32>
    %880 = vector.shape_cast %877 : vector<8x128xf32> to vector<1x8x128xf32>
    tpu.vector_store %arg9[%c0_693, %c0_694, %c0_695], %880 {strides = array<i32>} : memref<1x8x128xf32, #tpu.memory_space<vmem>>, vector<1x8x128xf32>,
    %c0_696 = arith.constant 0 : index
    %c0_697 = arith.constant 0 : index
    %c0_698 = arith.constant 0 : index
    %881 = vector.load %arg10[%c0_696, %c0_697, %c0_698] : memref<1x8x128xf32, #tpu.memory_space<vmem>>, vector<1x8x128xf32>
    %882 = vector.shape_cast %881 : vector<1x8x128xf32> to vector<8x128xf32>
    %883 = arith.mulf %852, %854 : vector<8x128xf32>
    %884 = arith.addf %882, %883 : vector<8x128xf32>
    %c0_699 = arith.constant 0 : index
    %c0_700 = arith.constant 0 : index
    %c0_701 = arith.constant 0 : index
    %885 = vector.load %arg10[%c0_699, %c0_700, %c0_701] : memref<1x8x128xf32, #tpu.memory_space<vmem>>, vector<1x8x128xf32>
    %886 = vector.shape_cast %885 : vector<1x8x128xf32> to vector<8x128xf32>
    %887 = vector.shape_cast %884 : vector<8x128xf32> to vector<1x8x128xf32>
    tpu.vector_store %arg10[%c0_699, %c0_700, %c0_701], %887 {strides = array<i32>} : memref<1x8x128xf32, #tpu.memory_space<vmem>>, vector<1x8x128xf32>,
    return
  }
  func.func @transform_0(%arg0: i32, %arg1: i32, %arg2: i32, %arg3: memref<1xi32, #tpu.memory_space<smem>>) -> (i32, i32) {
    %c1_i32 = arith.constant 1 : i32
    %0 = arith.muli %arg0, %c1_i32 : i32
    %1 = arith.addi %0, %arg2 : i32
    %c0_i32 = arith.constant 0 : i32
    return %arg1, %1 : i32, i32
  }
  func.func @transform_1(%arg0: i32, %arg1: i32, %arg2: i32, %arg3: memref<1xi32, #tpu.memory_space<smem>>) -> (i32, i32) {
    %c1_i32 = arith.constant 1 : i32
    %0 = arith.muli %arg0, %c1_i32 : i32
    %1 = arith.addi %0, %arg2 : i32
    %c0_i32 = arith.constant 0 : i32
    return %arg1, %1 : i32, i32
  }
  func.func @transform_2(%arg0: i32, %arg1: i32, %arg2: i32, %arg3: memref<1xi32, #tpu.memory_space<smem>>) -> (i32, i32, i32) {
    %c0_i32 = arith.constant 0 : i32
    %c0_i32_0 = arith.constant 0 : i32
    return %arg0, %arg1, %c0_i32 : i32, i32, i32
  }
  func.func @transform_3(%arg0: i32, %arg1: i32, %arg2: i32, %arg3: memref<1xi32, #tpu.memory_space<smem>>) -> (i32, i32, i32) {
    %c0_i32 = arith.constant 0 : i32
    %c0_i32_0 = arith.constant 0 : i32
    return %arg0, %arg1, %c0_i32 : i32, i32, i32
  }
  func.func @transform_4(%arg0: i32, %arg1: i32, %arg2: i32, %arg3: memref<1xi32, #tpu.memory_space<smem>>) -> (i32, i32, i32) {
    %c0_i32 = arith.constant 0 : i32
    %c0_i32_0 = arith.constant 0 : i32
    return %arg0, %arg1, %c0_i32 : i32, i32, i32
  }
  func.func @transform_5(%arg0: i32, %arg1: i32, %arg2: i32, %arg3: memref<1xi32, #tpu.memory_space<smem>>) -> (i32, i32, i32) {
    %c0_i32 = arith.constant 0 : i32
    %c0_i32_0 = arith.constant 0 : i32
    return %arg0, %arg1, %c0_i32 : i32, i32, i32
  }
  func.func @transform_6(%arg0: i32, %arg1: i32, %arg2: i32, %arg3: memref<1xi32, #tpu.memory_space<smem>>) -> (i32, i32, i32) {
    %c0_i32 = arith.constant 0 : i32
    %c0_i32_0 = arith.constant 0 : i32
    return %arg0, %arg1, %c0_i32 : i32, i32, i32
  }
}

</mosaic_0001>

<bundles_post_ra>
// kernel: tpu_custom_call.1
= control target key start
LH: loop header
LB: loop body
LE: loop exit
PB: predicated region body
PF: predicated region fallthrough
CT: control target
= control target key end

     0   :  { %14 = vsyncpa [#allocation5], 0  ;;  %s1099_s0 = inlined_call_operand.<no memory space> [shape: s32[1], index: 0, kind: input, shape index: {}]   ;;  %s1100_s1 = inlined_call_operand.hbm [shape: f32[8,2500], index: 1, kind: input, shape index: {}]   ;;  %s1101_s2 = inlined_call_operand.hbm [shape: f32[8,2500], index: 2, kind: input, shape index: {}]   ;;  %s1102_s3 = inlined_call_operand.hbm [shape: f32[1,8,128], index: 3, kind: output, shape index: {0}]   ;;  %s1103_s4 = inlined_call_operand.hbm [shape: f32[1,8,128], index: 4, kind: output, shape index: {1}]   ;;  %s1104_s5 = inlined_call_operand.hbm [shape: f32[1,8,128], index: 5, kind: output, shape index: {2}]   ;;  %s1105_s6 = inlined_call_operand.hbm [shape: f32[1,8,128], index: 6, kind: output, shape index: {3}]   ;;  %s1106_s7 = inlined_call_operand.hbm [shape: f32[1,8,128], index: 7, kind: output, shape index: {4}]  }
   0x1   :  { %15 = vsyncpa [#allocation8], 0 }
   0x2   :  { %16 = vsyncpa [#allocation6], 0 }
   0x3   :  { %17 = vsyncpa [#allocation11], 0 }
   0x4   :  { %18 = vsyncpa [#allocation14], 0  ;;  %s833_s24 = smov [#allocation4]   ;;  %s834_s26 = smov [#allocation7]  }
   0x5   :  { %s29_s25 = sshll.u32 %s833_s24, 4  ;;  %s43_s27 = sshll.u32 %s834_s26, 4  ;;  %s30_s25 = int_to_ptr.vmem [resolvable:$true] %s29_s25  ;;  %s44_s27 = int_to_ptr.vmem [resolvable:$true] %s43_s27 }
   0x6   :  { %s669_s30 = scalar_lea.hbm %s1100_s1, 2560 }
   0x7   :  { %p670_p0 = scmp.ne.s32.totalorder %s1100_s1, %s669_s30  ;;  %p673_p1 = scmp.lt.u32.totalorder %s669_s30, %s1100_s1 }
   0x9   :  { %p675_p2 = pnand %p673_p1, %p670_p0 }
   0xb   :  { %678 = shalt.err (!%p675_p2)
}
   0xc   :  { %s679_s12 = scalar_lea.vmem %s30_s25, 2560  ;;  %p684_p4 = scmp.lt.s32.totalorder %s30_s25, %s30_s25 }
   0xd   :  { %p680_p3 = scmp.ne.s32.totalorder %s30_s25, %s679_s12  ;;  %p685_p5 = scmp.lt.s32.totalorder %s679_s12, %s679_s12 }
   0xf   :  { %p686_p6 = por %p685_p5, %p684_p4 }
  0x11   :  { %p687_p7 = pnand %p686_p6, %p680_p3 }
  0x13   :  { %690 = shalt.err (!%p687_p7)
}
  0x14   :  { %32 = dma.hbm_to_vmem [thread:$0]  %s1100_s1, 2560, %s30_s25, [#allocation5]  }
  0x15   :  { %s691_s17 = scalar_lea.hbm %s1101_s2, 2560 }
  0x16   :  { %p692_p8 = scmp.ne.s32.totalorder %s1101_s2, %s691_s17  ;;  %p695_p9 = scmp.lt.u32.totalorder %s691_s17, %s1101_s2 }
  0x18   :  { %p697_p10 = pnand %p695_p9, %p692_p8 }
  0x1a   :  { %700 = shalt.err (!%p697_p10)
}
  0x1b   :  { %s701_s22 = scalar_lea.vmem %s44_s27, 2560  ;;  %p706_p12 = scmp.lt.s32.totalorder %s44_s27, %s44_s27 }
  0x1c   :  { %p702_p11 = scmp.ne.s32.totalorder %s44_s27, %s701_s22  ;;  %p707_p13 = scmp.lt.s32.totalorder %s701_s22, %s701_s22 }
  0x1e   :  { %p708_p0 = por %p707_p13, %p706_p12 }
  0x20   :  { %p709_p1 = pnand %p708_p0, %p702_p11 }
  0x22   :  { %712 = shalt.err (!%p709_p1)
}
  0x23   :  { %46 = dma.hbm_to_vmem [thread:$0]  %s1101_s2, 2560, %s44_s27, [#allocation8]  }
  0x24   :  { %823 = dma.done.wait [#allocation5], 2560  }
  0x25   :  { %824 = vsyncadd [#allocation5], 4294964736 }
  0x26   :  { %825 = dma.done.wait [#allocation8], 2560  }
  0x27   :  { %826 = vsyncadd [#allocation8], 4294964736  ;;  %v69_v0 = vlaneseq  ;;  %v909_v2 = vstv %s1099_s0  ;;  %v72_v10 = vld [vmem:[#allocation7] sm:$0xff]  ;;  %v98_v12 = vld [vmem:[#allocation7 + $0x8] sm:$0xff]  ;;  %s835_s0 = smov [#allocation10]   ;;  %s836_s26 = smov [#allocation13]  }
  0x28   :  { %v71_v11 = vld [vmem:[#allocation4] sm:$0xff]  ;;  %v97_v17 = vld [vmem:[#allocation4 + $0x8] sm:$0xff]  ;;  %v124_v18 = vld [vmem:[#allocation7 + $0x10] sm:$0xff]  ;;  %s607_s2 = sshll.u32 %s835_s0, 4  ;;  %s627_s27 = sshll.u32 %s836_s26, 4  ;;  %s608_s2 = int_to_ptr.vmem [resolvable:$true] %s607_s2  ;;  %s1011_s27 = int_to_ptr.vmem [resolvable:$true] %s627_s27 }
  0x29   :  { %v904_v1 = vand.u32 127, %v69_v0  ;;  %v123_v25 = vld [vmem:[#allocation4 + $0x10] sm:$0xff]  ;;  %v150_v26 = vld [vmem:[#allocation7 + $0x18] sm:$0xff]  ;;  %v176_v37 = vld [vmem:[#allocation7 + $0x20] sm:$0xff]  ;;  %s837_s28 = smov [#allocation9]   ;;  %s838_s30 = smov [#allocation12]  }
  0x2a   :  { %v149_v36 = vld [vmem:[#allocation4 + $0x18] sm:$0xff]  ;;  %v175_v38 = vld [vmem:[#allocation4 + $0x20] sm:$0xff]  ;;  %v202_v51 = vld [vmem:[#allocation7 + $0x28] sm:$0xff]  ;;  %s597_s29 = sshll.u32 %s837_s28, 4  ;;  %s617_s8 = sshll.u32 %s838_s30, 4  ;;  %s1013_s29 = int_to_ptr.vmem [resolvable:$true] %s597_s29  ;;  %s1015_s8 = int_to_ptr.vmem [resolvable:$true] %s617_s8 }
  0x2b   :  { %v101_v3 = vadd.s32 128, %v904_v1  ;;  %v127_v4 = vadd.s32 256, %v904_v1  ;;  %v153_v5 = vadd.s32 384, %v904_v1  ;;  %vm76_vm0 = vcmp.lt.s32.totalorder %v904_v1, %v909_v2  ;;  %v201_v60 = vld [vmem:[#allocation4 + $0x28] sm:$0xff]  ;;  %v228_v61 = vld [vmem:[#allocation7 + $0x30] sm:$0xff]  ;;  %s839_s9 = smov [#allocation15]   ;;  %p718_p3 = scmp.lt.s32.totalorder %s608_s2, %s608_s2 }
  0x2c   :  { %v179_v6 = vadd.s32 512, %v904_v1  ;;  %v918_v7 = vadd.s32 640, %v904_v1  ;;  %v922_v8 = vadd.s32 768, %v904_v1  ;;  %v925_v9 = vadd.s32 896, %v904_v1  ;;  %v227_v62 = vld [vmem:[#allocation4 + $0x30] sm:$0xff]  ;;  %s637_s10 = sshll.u32 %s839_s9, 4  ;;  %s1017_s10 = int_to_ptr.vmem [resolvable:$true] %s637_s10 }
  0x2d   :  { %vm102_vm1 = vcmp.lt.s32.totalorder %v101_v3, %v909_v2  ;;  %vm128_vm2 = vcmp.lt.s32.totalorder %v127_v4, %v909_v2  ;;  %vm154_vm3 = vcmp.lt.s32.totalorder %v153_v5, %v909_v2  ;;  %v931_v13 = vadd.s32 1024, %v904_v1  ;;  %s713_s11 = scalar_lea.vmem %s608_s2, 128 }
  0x2e   :  { %vm180_vm4 = vcmp.lt.s32.totalorder %v179_v6, %v909_v2  ;;  %v78_v14 = vsel %vm76_vm0, %v72_v10, 0.0  ;;  %v77_v15 = vsel %vm76_vm0, %v71_v11, 0.0  ;;  %v104_v16 = vsel %vm102_vm1, %v98_v12, 0.0  ;;  %p714_p2 = scmp.ne.s32.totalorder %s608_s2, %s713_s11  ;;  %p719_p4 = scmp.lt.s32.totalorder %s713_s11, %s713_s11 }
  0x2f   :  { %vm206_vm5 = vcmp.lt.s32.totalorder %v918_v7, %v909_v2  ;;  %v90_v19 = vmul.f32 %v78_v14, %v78_v14  ;;  %v86_v20 = vmul.f32 %v77_v15, %v77_v15  ;;  %v94_v21 = vmul.f32 %v78_v14, %v77_v15  ;;  %v280_v7 = vld [vmem:[#allocation7 + $0x40] sm:$0xff] }
  0x30   :  { %v116_v22 = vmul.f32 %v104_v16, %v104_v16  ;;  %v103_v23 = vsel %vm102_vm1, %v97_v17, 0.0  ;;  %v130_v24 = vsel %vm128_vm2, %v124_v18, 0.0  ;;  %vm232_vm6 = vcmp.lt.s32.totalorder %v922_v8, %v909_v2  ;;  %v254_v17 = vld [vmem:[#allocation7 + $0x38] sm:$0xff]  ;;  %p720_p5 = por %p719_p4, %p718_p3 }
  0x31   :  { %v109_v27 = vadd.f32 %v104_v16, %v78_v14  ;;  %v106_v28 = vadd.f32 %v103_v23, %v77_v15  ;;  %v112_v29 = vmul.f32 %v103_v23, %v103_v23  ;;  %v120_v30 = vmul.f32 %v104_v16, %v103_v23 }
  0x32   :  { %v142_v31 = vmul.f32 %v130_v24, %v130_v24  ;;  %v117_v32 = vadd.f32 %v116_v22, %v90_v19  ;;  %v129_v34 = vsel %vm128_vm2, %v123_v25, 0.0  ;;  %v156_v35 = vsel %vm154_vm3, %v150_v26, 0.0  ;;  %v253_v26 = vld [vmem:[#allocation4 + $0x38] sm:$0xff]  ;;  %p721_p6 = pnand %p720_p5, %p714_p2 }
  0x33   :  { %v135_v33 = vadd.f32 %v130_v24, %v109_v27  ;;  %vm258_vm7 = vcmp.lt.s32.totalorder %v925_v9, %v909_v2  ;;  %v113_v39 = vadd.f32 %v112_v29, %v86_v20  ;;  %v121_v40 = vadd.f32 %v120_v30, %v94_v21  ;;  %v279_v27 = vld [vmem:[#allocation4 + $0x40] sm:$0xff] }
  0x34   :  { %v132_v41 = vadd.f32 %v129_v34, %v106_v28  ;;  %v138_v42 = vmul.f32 %v129_v34, %v129_v34  ;;  %v143_v43 = vadd.f32 %v142_v31, %v117_v32  ;;  %v146_v44 = vmul.f32 %v130_v24, %v129_v34 }
  0x35   :  { %v161_v45 = vadd.f32 %v156_v35, %v135_v33  ;;  %v168_v46 = vmul.f32 %v156_v35, %v156_v35  ;;  %vm284_vm8 = vcmp.lt.s32.totalorder %v931_v13, %v909_v2  ;;  %v155_v48 = vsel %vm154_vm3, %v149_v36, 0.0 }
  0x36   :  { %v139_v47 = vadd.f32 %v138_v42, %v113_v39  ;;  %v182_v49 = vsel %vm180_vm4, %v176_v37, 0.0  ;;  %v181_v50 = vsel %vm180_vm4, %v175_v38, 0.0  ;;  %v147_v52 = vadd.f32 %v146_v44, %v121_v40 }
  0x37   :  { %v169_v53 = vadd.f32 %v168_v46, %v143_v43  ;;  %v158_v54 = vadd.f32 %v155_v48, %v132_v41  ;;  %v164_v55 = vmul.f32 %v155_v48, %v155_v48  ;;  %v172_v56 = vmul.f32 %v156_v35, %v155_v48 }
  0x38   :  { %v187_v57 = vadd.f32 %v182_v49, %v161_v45  ;;  %v194_v58 = vmul.f32 %v182_v49, %v182_v49  ;;  %v190_v59 = vmul.f32 %v181_v50, %v181_v50  ;;  %v198_v3 = vmul.f32 %v182_v49, %v181_v50  ;;  %v306_v49 = vld [vmem:[#allocation7 + $0x48] sm:$0xff] }
  0x39   :  { %v165_v63 = vadd.f32 %v164_v55, %v139_v47  ;;  %v184_v0 = vadd.f32 %v181_v50, %v158_v54  ;;  %v208_v4 = vsel %vm206_vm5, %v202_v51, 0.0  ;;  %v173_v5 = vadd.f32 %v172_v56, %v147_v52  ;;  %v305_v51 = vld [vmem:[#allocation4 + $0x48] sm:$0xff]  ;;  %v332_v56 = vld [vmem:[#allocation7 + $0x50] sm:$0xff] }
  0x3a   :  { %v195_v6 = vadd.f32 %v194_v58, %v169_v53  ;;  %v213_v10 = vadd.f32 %v208_v4, %v187_v57  ;;  %v220_v11 = vmul.f32 %v208_v4, %v208_v4  ;;  %v207_v14 = vsel %vm206_vm5, %v201_v60, 0.0  ;;  %v331_v57 = vld [vmem:[#allocation4 + $0x50] sm:$0xff] }
  0x3b   :  { %v191_v12 = vadd.f32 %v190_v59, %v165_v63  ;;  %v234_v15 = vsel %vm232_vm6, %v228_v61, 0.0  ;;  %v233_v16 = vsel %vm232_vm6, %v227_v62, 0.0  ;;  %v199_v18 = vadd.f32 %v198_v3, %v173_v5 }
  0x3c   :  { %v221_v19 = vadd.f32 %v220_v11, %v195_v6  ;;  %v210_v20 = vadd.f32 %v207_v14, %v184_v0  ;;  %v216_v21 = vmul.f32 %v207_v14, %v207_v14  ;;  %v224_v22 = vmul.f32 %v208_v4, %v207_v14  ;;  %v358_v11 = vld [vmem:[#allocation7 + $0x58] sm:$0xff] }
  0x3d   :  { %v239_v23 = vadd.f32 %v234_v15, %v213_v10  ;;  %v246_v24 = vmul.f32 %v234_v15, %v234_v15  ;;  %v242_v25 = vmul.f32 %v233_v16, %v233_v16  ;;  %v250_v30 = vmul.f32 %v234_v15, %v233_v16 }
  0x3e   :  { %v217_v28 = vadd.f32 %v216_v21, %v191_v12  ;;  %v236_v29 = vadd.f32 %v233_v16, %v210_v20  ;;  %v260_v8 = vsel %vm258_vm7, %v254_v17, 0.0  ;;  %v225_v31 = vadd.f32 %v224_v22, %v199_v18  ;;  %v357_v12 = vld [vmem:[#allocation4 + $0x58] sm:$0xff]  ;;  %v384_v22 = vld [vmem:[#allocation7 + $0x60] sm:$0xff] }
  0x3f   :  { %v247_v32 = vadd.f32 %v246_v24, %v221_v19  ;;  %v265_v33 = vadd.f32 %v260_v8, %v239_v23  ;;  %v272_v34 = vmul.f32 %v260_v8, %v260_v8  ;;  %v259_v36 = vsel %vm258_vm7, %v253_v26, 0.0  ;;  %v383_v26 = vld [vmem:[#allocation4 + $0x60] sm:$0xff] }
  0x40   :  { %v243_v35 = vadd.f32 %v242_v25, %v217_v28  ;;  %v286_v37 = vsel %vm284_vm8, %v280_v7, 0.0  ;;  %v285_v38 = vsel %vm284_vm8, %v279_v27, 0.0  ;;  %v251_v39 = vadd.f32 %v250_v30, %v225_v31 }
  0x41   :  { %v273_v40 = vadd.f32 %v272_v34, %v247_v32  ;;  %v262_v41 = vadd.f32 %v259_v36, %v236_v29  ;;  %v268_v42 = vmul.f32 %v259_v36, %v259_v36  ;;  %v276_v43 = vmul.f32 %v260_v8, %v259_v36 }
  0x42   :  { %v291_v44 = vadd.f32 %v286_v37, %v265_v33  ;;  %v298_v45 = vmul.f32 %v286_v37, %v286_v37  ;;  %v294_v46 = vmul.f32 %v285_v38, %v285_v38  ;;  %v302_v9 = vmul.f32 %v286_v37, %v285_v38  ;;  %v410_v37 = vld [vmem:[#allocation7 + $0x68] sm:$0xff] }
  0x43   :  { %v269_v47 = vadd.f32 %v268_v42, %v243_v35  ;;  %v288_v48 = vadd.f32 %v285_v38, %v262_v41  ;;  %v309_v50 = vadd.s32 1152, %v904_v1  ;;  %v277_v52 = vadd.f32 %v276_v43, %v251_v39  ;;  %v409_v38 = vld [vmem:[#allocation4 + $0x68] sm:$0xff] }
  0x44   :  { %v299_v53 = vadd.f32 %v298_v45, %v273_v40  ;;  %v335_v13 = vadd.s32 1280, %v904_v1  ;;  %v361_v54 = vadd.s32 1408, %v904_v1  ;;  %v387_v58 = vadd.s32 1536, %v904_v1 }
  0x45   :  { %v295_v55 = vadd.f32 %v294_v46, %v269_v47  ;;  %vm310_vm9 = vcmp.lt.s32.totalorder %v309_v50, %v909_v2  ;;  %v413_v59 = vadd.s32 1664, %v904_v1  ;;  %v303_v60 = vadd.f32 %v302_v9, %v277_v52  ;;  %v436_v9 = vld [vmem:[#allocation7 + $0x70] sm:$0xff]  ;;  %v462_v50 = vld [vmem:[#allocation7 + $0x78] sm:$0xff] }
  0x46   :  { %v312_v61 = vsel %vm310_vm9, %v306_v49, 0.0  ;;  %v311_v62 = vsel %vm310_vm9, %v305_v51, 0.0  ;;  %vm336_vm10 = vcmp.lt.s32.totalorder %v335_v13, %v909_v2  ;;  %vm362_vm11 = vcmp.lt.s32.totalorder %v361_v54, %v909_v2  ;;  %v435_v49 = vld [vmem:[#allocation4 + $0x70] sm:$0xff] }
  0x47   :  { %v317_v63 = vadd.f32 %v312_v61, %v291_v44  ;;  %v324_v0 = vmul.f32 %v312_v61, %v312_v61  ;;  %v314_v3 = vadd.f32 %v311_v62, %v288_v48  ;;  %v320_v4 = vmul.f32 %v311_v62, %v311_v62 }
  0x48   :  { %v328_v5 = vmul.f32 %v312_v61, %v311_v62  ;;  %v338_v6 = vsel %vm336_vm10, %v332_v56, 0.0  ;;  %v337_v10 = vsel %vm336_vm10, %v331_v57, 0.0  ;;  %v364_v24 = vsel %vm362_vm11, %v358_v11, 0.0  ;;  %v461_v61 = vld [vmem:[#allocation4 + $0x78] sm:$0xff] }
  0x49   :  { %v325_v14 = vadd.f32 %v324_v0, %v299_v53  ;;  %v321_v15 = vadd.f32 %v320_v4, %v295_v55  ;;  %v343_v16 = vadd.f32 %v338_v6, %v317_v63  ;;  %v350_v17 = vmul.f32 %v338_v6, %v338_v6 }
  0x4a   :  { %v329_v18 = vadd.f32 %v328_v5, %v303_v60  ;;  %v340_v19 = vadd.f32 %v337_v10, %v314_v3  ;;  %v346_v20 = vmul.f32 %v337_v10, %v337_v10  ;;  %v354_v21 = vmul.f32 %v338_v6, %v337_v10 }
  0x4b   :  { %v351_v23 = vadd.f32 %v350_v17, %v325_v14  ;;  %v363_v25 = vsel %vm362_vm11, %v357_v12, 0.0  ;;  %vm388_vm12 = vcmp.lt.s32.totalorder %v387_v58, %v909_v2  ;;  %v369_v28 = vadd.f32 %v364_v24, %v343_v16  ;;  %v487_v17 = vld [vmem:[#allocation4 + $0x80] sm:$0xff] }
  0x4c   :  { %v347_v7 = vadd.f32 %v346_v20, %v321_v15  ;;  %v355_v27 = vadd.f32 %v354_v21, %v329_v18  ;;  %v376_v29 = vmul.f32 %v364_v24, %v364_v24  ;;  %v366_v30 = vadd.f32 %v363_v25, %v340_v19  ;;  %v488_v15 = vld [vmem:[#allocation7 + $0x80] sm:$0xff] }
  0x4d   :  { %v372_v8 = vmul.f32 %v363_v25, %v363_v25  ;;  %v380_v31 = vmul.f32 %v364_v24, %v363_v25  ;;  %v390_v32 = vsel %vm388_vm12, %v384_v22, 0.0  ;;  %v389_v36 = vsel %vm388_vm12, %v383_v26, 0.0 }
  0x4e   :  { %v377_v33 = vadd.f32 %v376_v29, %v351_v23  ;;  %v395_v34 = vadd.f32 %v390_v32, %v369_v28  ;;  %v402_v35 = vmul.f32 %v390_v32, %v390_v32  ;;  %v392_v41 = vadd.f32 %v389_v36, %v366_v30  ;;  %v513_v28 = vld [vmem:[#allocation4 + $0x88] sm:$0xff]  ;;  %v540_v29 = vld [vmem:[#allocation7 + $0x90] sm:$0xff] }
  0x4f   :  { %v373_v39 = vadd.f32 %v372_v8, %v347_v7  ;;  %v381_v40 = vadd.f32 %v380_v31, %v355_v27  ;;  %v398_v42 = vmul.f32 %v389_v36, %v389_v36  ;;  %v406_v44 = vmul.f32 %v390_v32, %v389_v36  ;;  %v514_v27 = vld [vmem:[#allocation7 + $0x88] sm:$0xff] }
  0x50   :  { %v403_v43 = vadd.f32 %v402_v35, %v377_v33  ;;  %vm414_vm13 = vcmp.lt.s32.totalorder %v413_v59, %v909_v2  ;;  %v439_v45 = vadd.s32 1792, %v904_v1  ;;  %v465_v51 = vadd.s32 1920, %v904_v1 }
  0x51   :  { %v399_v46 = vadd.f32 %v398_v42, %v373_v39  ;;  %v416_v47 = vsel %vm414_vm13, %v410_v37, 0.0  ;;  %v415_v48 = vsel %vm414_vm13, %v409_v38, 0.0  ;;  %v407_v52 = vadd.f32 %v406_v44, %v381_v40  ;;  %v539_v40 = vld [vmem:[#allocation4 + $0x90] sm:$0xff] }
  0x52   :  { %v421_v53 = vadd.f32 %v416_v47, %v395_v34  ;;  %v428_v13 = vmul.f32 %v416_v47, %v416_v47  ;;  %v418_v54 = vadd.f32 %v415_v48, %v392_v41  ;;  %v424_v55 = vmul.f32 %v415_v48, %v415_v48 }
  0x53   :  { %v432_v56 = vmul.f32 %v416_v47, %v415_v48  ;;  %vm440_vm14 = vcmp.lt.s32.totalorder %v439_v45, %v909_v2  ;;  %vm466_vm15 = vcmp.lt.s32.totalorder %v465_v51, %v909_v2  ;;  %v491_v16 = vadd.s32 2048, %v904_v1  ;;  %v566_v51 = vld [vmem:[#allocation7 + $0x98] sm:$0xff] }
  0x54   :  { %v429_v57 = vadd.f32 %v428_v13, %v403_v43  ;;  %v442_v58 = vsel %vm440_vm14, %v436_v9, 0.0  ;;  %v441_v59 = vsel %vm440_vm14, %v435_v49, 0.0  ;;  %v468_v60 = vsel %vm466_vm15, %v462_v50, 0.0 }
  0x55   :  { %v425_v62 = vadd.f32 %v424_v55, %v399_v46  ;;  %v433_v63 = vadd.f32 %v432_v56, %v407_v52  ;;  %v447_v0 = vadd.f32 %v442_v58, %v421_v53  ;;  %v454_v3 = vmul.f32 %v442_v58, %v442_v58  ;;  %v565_v53 = vld [vmem:[#allocation4 + $0x98] sm:$0xff] }
  0x56   :  { %v444_v4 = vadd.f32 %v441_v59, %v418_v54  ;;  %v450_v5 = vmul.f32 %v441_v59, %v441_v59  ;;  %v458_v6 = vmul.f32 %v442_v58, %v441_v59  ;;  %v480_v10 = vmul.f32 %v468_v60, %v468_v60 }
  0x57   :  { %v455_v11 = vadd.f32 %v454_v3, %v429_v57  ;;  %v473_v12 = vadd.f32 %v468_v60, %v447_v0  ;;  %v467_v14 = vsel %vm466_vm15, %v461_v61, 0.0  ;;  %vm492_vm0 = vcmp.lt.s32.totalorder %v491_v16, %v909_v2 }
  0x58   :  { %v451_v18 = vadd.f32 %v450_v5, %v425_v62  ;;  %v459_v19 = vadd.f32 %v458_v6, %v433_v63  ;;  %v470_v20 = vadd.f32 %v467_v14, %v444_v4  ;;  %v476_v21 = vmul.f32 %v467_v14, %v467_v14 }
  0x59   :  { %v481_v22 = vadd.f32 %v480_v10, %v455_v11  ;;  %v484_v23 = vmul.f32 %v468_v60, %v467_v14  ;;  %v517_v24 = vadd.s32 2176, %v904_v1  ;;  %v494_v26 = vsel %vm492_vm0, %v488_v15, 0.0 }
  0x5a   :  { %v477_v25 = vadd.f32 %v476_v21, %v451_v18  ;;  %v493_v7 = vsel %vm492_vm0, %v487_v17, 0.0  ;;  %v543_v30 = vadd.s32 2304, %v904_v1  ;;  %v499_v31 = vadd.f32 %v494_v26, %v473_v12 }
  0x5b   :  { %v485_v8 = vadd.f32 %v484_v23, %v459_v19  ;;  %v506_v32 = vmul.f32 %v494_v26, %v494_v26  ;;  %v496_v33 = vadd.f32 %v493_v7, %v470_v20  ;;  %v502_v34 = vmul.f32 %v493_v7, %v493_v7 }
  0x5c   :  { %v510_v35 = vmul.f32 %v494_v26, %v493_v7  ;;  %vm518_vm1 = vcmp.lt.s32.totalorder %v517_v24, %v909_v2  ;;  %vm544_vm2 = vcmp.lt.s32.totalorder %v543_v30, %v909_v2  ;;  %v569_v52 = vadd.s32 2432, %v904_v1 }
  0x5d   :  { %v507_v36 = vadd.f32 %v506_v32, %v481_v22  ;;  %v520_v37 = vsel %vm518_vm1, %v514_v27, 0.0  ;;  %v519_v38 = vsel %vm518_vm1, %v513_v28, 0.0  ;;  %v546_v39 = vsel %vm544_vm2, %v540_v29, 0.0 }
  0x5e   :  { %v503_v41 = vadd.f32 %v502_v34, %v477_v25  ;;  %v511_v42 = vadd.f32 %v510_v35, %v485_v8  ;;  %v525_v43 = vadd.f32 %v520_v37, %v499_v31  ;;  %v532_v44 = vmul.f32 %v520_v37, %v520_v37 }
  0x5f   :  { %v522_v45 = vadd.f32 %v519_v38, %v496_v33  ;;  %v528_v46 = vmul.f32 %v519_v38, %v519_v38  ;;  %v536_v47 = vmul.f32 %v520_v37, %v519_v38  ;;  %v558_v48 = vmul.f32 %v546_v39, %v546_v39 }
  0x60   :  { %v533_v9 = vadd.f32 %v532_v44, %v507_v36  ;;  %v551_v49 = vadd.f32 %v546_v39, %v525_v43  ;;  %v545_v50 = vsel %vm544_vm2, %v539_v40, 0.0  ;;  %vm570_vm3 = vcmp.lt.s32.totalorder %v569_v52, %v909_v2 }
  0x61   :  { %v529_v13 = vadd.f32 %v528_v46, %v503_v41  ;;  %v537_v54 = vadd.f32 %v536_v47, %v511_v42  ;;  %v548_v55 = vadd.f32 %v545_v50, %v522_v45  ;;  %v554_v56 = vmul.f32 %v545_v50, %v545_v50 }
  0x62   :  { %v559_v57 = vadd.f32 %v558_v48, %v533_v9  ;;  %v562_v58 = vmul.f32 %v546_v39, %v545_v50  ;;  %v572_v60 = vsel %vm570_vm3, %v566_v51, 0.0  ;;  %v571_v61 = vsel %vm570_vm3, %v565_v53, 0.0 }
  0x63   :  { %v555_v59 = vadd.f32 %v554_v56, %v529_v13  ;;  %v577_v62 = vadd.f32 %v572_v60, %v551_v49  ;;  %v584_v63 = vmul.f32 %v572_v60, %v572_v60  ;;  %v574_v0 = vadd.f32 %v571_v61, %v548_v55 }
  0x64   :  { %v563_v1 = vadd.f32 %v562_v58, %v537_v54  ;;  %v580_v3 = vmul.f32 %v571_v61, %v571_v61  ;;  %v588_v4 = vmul.f32 %v572_v60, %v571_v61 }
  0x65   :  { %578 = vst [vmem:[#allocation10] sm:$0xff] %v577_v62  ;;  %v585_v2 = vadd.f32 %v584_v63, %v559_v57  ;;  %575 = vst [vmem:[#allocation9] sm:$0xff] %v574_v0 }
  0x66   :  { %v581_v5 = vadd.f32 %v580_v3, %v555_v59  ;;  %v589_v6 = vadd.f32 %v588_v4, %v563_v1 }
  0x67   :  { %724 = shalt.err (!%p721_p6)
}
  0x68   :  { %s725_s14 = scalar_lea.hbm %s1103_s4, 128 }
  0x69   :  { %p726_p7 = scmp.ne.s32.totalorder %s1103_s4, %s725_s14  ;;  %p729_p8 = scmp.lt.u32.totalorder %s725_s14, %s1103_s4 }
  0x6b   :  { %p731_p9 = pnand %p729_p8, %p726_p7 }
  0x6d   :  { %734 = shalt.err (!%p731_p9)
}
  0x6e   :  { %610 = dma.vmem_to_hbm [thread:$0]  %s608_s2, 128, %s1103_s4, [#allocation11]   ;;  %586 = vst [vmem:[#allocation13] sm:$0xff] %v585_v2 }
  0x6f   :  { %s735_s21 = scalar_lea.vmem %s1013_s29, 128  ;;  %p740_p11 = scmp.lt.s32.totalorder %s1013_s29, %s1013_s29 }
  0x70   :  { %p736_p10 = scmp.ne.s32.totalorder %s1013_s29, %s735_s21  ;;  %p741_p12 = scmp.lt.s32.totalorder %s735_s21, %s735_s21 }
  0x72   :  { %p742_p13 = por %p741_p12, %p740_p11 }
  0x74   :  { %p743_p0 = pnand %p742_p13, %p736_p10 }
  0x76   :  { %746 = shalt.err (!%p743_p0)
}
  0x77   :  { %s747_s23 = scalar_lea.hbm %s1102_s3, 128 }
  0x78   :  { %p748_p1 = scmp.ne.s32.totalorder %s1102_s3, %s747_s23  ;;  %p751_p2 = scmp.lt.u32.totalorder %s747_s23, %s1102_s3 }
  0x7a   :  { %p753_p3 = pnand %p751_p2, %p748_p1 }
  0x7c   :  { %756 = shalt.err (!%p753_p3)
}
  0x7d   :  { %600 = dma.vmem_to_hbm [thread:$0]  %s1013_s29, 128, %s1102_s3, [#allocation6]   ;;  %582 = vst [vmem:[#allocation12] sm:$0xff] %v581_v5  ;;  %590 = vst [vmem:[#allocation15] sm:$0xff] %v589_v6 }
  0x7e   :  { %s757_s28 = scalar_lea.vmem %s1011_s27, 128  ;;  %p762_p5 = scmp.lt.s32.totalorder %s1011_s27, %s1011_s27 }
  0x7f   :  { %p758_p4 = scmp.ne.s32.totalorder %s1011_s27, %s757_s28  ;;  %p763_p6 = scmp.lt.s32.totalorder %s757_s28, %s757_s28 }
  0x81   :  { %p764_p7 = por %p763_p6, %p762_p5 }
  0x83   :  { %p765_p8 = pnand %p764_p7, %p758_p4 }
  0x85   :  { %768 = shalt.err (!%p765_p8)
}
  0x86   :  { %s769_s11 = scalar_lea.hbm %s1105_s6, 128 }
  0x87   :  { %p770_p9 = scmp.ne.s32.totalorder %s1105_s6, %s769_s11  ;;  %p773_p10 = scmp.lt.u32.totalorder %s769_s11, %s1105_s6 }
  0x89   :  { %p775_p11 = pnand %p773_p10, %p770_p9 }
  0x8b   :  { %778 = shalt.err (!%p775_p11)
}
  0x8c   :  { %630 = dma.vmem_to_hbm [thread:$0]  %s1011_s27, 128, %s1105_s6, [#allocation14]  }
  0x8d   :  { %s779_s16 = scalar_lea.vmem %s1015_s8, 128  ;;  %p784_p13 = scmp.lt.s32.totalorder %s1015_s8, %s1015_s8 }
  0x8e   :  { %p780_p12 = scmp.ne.s32.totalorder %s1015_s8, %s779_s16  ;;  %p785_p0 = scmp.lt.s32.totalorder %s779_s16, %s779_s16 }
  0x90   :  { %p786_p1 = por %p785_p0, %p784_p13 }
  0x92   :  { %p787_p2 = pnand %p786_p1, %p780_p12 }
  0x94   :  { %790 = shalt.err (!%p787_p2)
}
  0x95   :  { %s791_s19 = scalar_lea.hbm %s1104_s5, 128 }
  0x96   :  { %p792_p3 = scmp.ne.s32.totalorder %s1104_s5, %s791_s19  ;;  %p795_p4 = scmp.lt.u32.totalorder %s791_s19, %s1104_s5 }
  0x98   :  { %p797_p5 = pnand %p795_p4, %p792_p3 }
  0x9a   :  { %800 = shalt.err (!%p797_p5)
}
  0x9b   :  { %620 = dma.vmem_to_hbm [thread:$0]  %s1015_s8, 128, %s1104_s5, [#allocation11]  }
  0x9c   :  { %s801_s23 = scalar_lea.vmem %s1017_s10, 128  ;;  %p806_p7 = scmp.lt.s32.totalorder %s1017_s10, %s1017_s10 }
  0x9d   :  { %p802_p6 = scmp.ne.s32.totalorder %s1017_s10, %s801_s23  ;;  %p807_p8 = scmp.lt.s32.totalorder %s801_s23, %s801_s23 }
  0x9f   :  { %p808_p9 = por %p807_p8, %p806_p7 }
  0xa1   :  { %p809_p10 = pnand %p808_p9, %p802_p6 }
  0xa3   :  { %812 = shalt.err (!%p809_p10)
}
  0xa4   :  { %s813_s0 = scalar_lea.hbm %s1106_s7, 128 }
  0xa5   :  { %p814_p11 = scmp.ne.s32.totalorder %s1106_s7, %s813_s0  ;;  %p817_p12 = scmp.lt.u32.totalorder %s813_s0, %s1106_s7 }
  0xa7   :  { %p819_p13 = pnand %p817_p12, %p814_p11 }
  0xa9   :  { %822 = shalt.err (!%p819_p13)
}
  0xaa   :  { %640 = dma.vmem_to_hbm [thread:$0]  %s1017_s10, 128, %s1106_s7, [#allocation14]  }
  0xab   :  { %827 = dma.done.wait [#allocation6], 128  }
  0xac   :  { %828 = vsyncadd [#allocation6], 4294967168 }
  0xad   :  { %829 = dma.done.wait [#allocation11], 256  }
  0xae   :  { %830 = vsyncadd [#allocation11], 4294967040 }
  0xaf   :  { %831 = dma.done.wait [#allocation14], 256  }
  0xb0   :  { %832 = vsyncadd [#allocation14], 4294967040 }
  0xb1   :  { %656 = vsyncpa [#allocation5], 1 }
  0xb2   :  { %657 = vsyncpa [#allocation8], 1 }
  0xb3   :  { %658 = vsyncpa [#allocation6], 1 }
  0xb4   :  { %659 = vsyncpa [#allocation11], 1 }
  0xb5   :  { %660 = vsyncpa [#allocation14], 1 }

</bundles_post_ra>
